<compile_context>
chip_gen: v6e
topology: v6e:2x2x1
jax: 0.10.0
libtpu: 0.0.40
codegen_flags: <defaults>
</compile_context>

<pallas_src>
import functools

import jax
import jax.numpy as jnp
from jax import lax
from jax.experimental import pallas as pl
from jax.experimental.pallas import tpu as pltpu


H = 16
W = 16
HW = H * W              # 256 -> lane axis (multiple of 128)
CHID = 32               # hidden channel width
CIN0_PAD = 8            # layer-0 input channels padded 3 -> 8 (sublane aligned)


def _fused_kernel(x_ref, w0_ref, wmid_ref, w5_ref, b_ref, m_ref, o_ref, col_ref):
    """All 6 layers for one image, activations resident in VMEM / vregs.

    x_ref:    (8, 256)      layer-0 input, channels on sublanes, flat H*W on lanes
    w0_ref:   (32, 72)      layer-0 folded conv+BN weight  (Cout, 9*Cin_pad)
    wmid_ref: (4, 32, 288)  layers 1..4 folded weights     (Cout, 9*Cin)
    w5_ref:   (1, 32)       final 1x1 conv weight
    b_ref:    (32, 6)       per-layer bias columns (layer 5 uses row 0 only)
    m_ref:    (9, 256)      per-tap zero-padding masks (1.0 in-bounds, 0.0 pad)
    o_ref:    (1, 256)      output (Cout=1, flat H*W)
    col_ref:  (288, 256)    VMEM scratch holding the im2col matrix
    """

    def im2col(a, cin):
        # Build col_ref[0:9*cin, :] = masked, lane-rolled copies of `a`,
        # one (cin, 256) block per 3x3 tap.  All sublane offsets are 8-aligned.
        t = 0
        for oy in (-1, 0, 1):
            for ox in (-1, 0, 1):
                s = oy * W + ox
                shifted = a if s == 0 else pltpu.roll(a, shift=(-s) % HW, axis=1)
                col_ref[t * cin:(t + 1) * cin, :] = shifted * m_ref[t:t + 1, :]
                t += 1

    # ---- layer 0: conv3x3 (3->32, padded to 8) + folded BN + ReLU ----------
    a = x_ref[...]                                             # (8, 256)
    im2col(a, CIN0_PAD)
    a = jnp.dot(w0_ref[...], col_ref[0:9 * CIN0_PAD, :],
                preferred_element_type=jnp.float32)            # (32, 256)
    a = jnp.maximum(a + b_ref[:, 0:1], 0.0)

    # ---- layers 1..4: conv3x3 (32->32) + folded BN + ReLU ------------------
    for l in range(4):
        im2col(a, CHID)
        a = jnp.dot(wmid_ref[l], col_ref[...],
                    preferred_element_type=jnp.float32)        # (32, 256)
        a = jnp.maximum(a + b_ref[:, l + 1:l + 2], 0.0)

    # ---- layer 5: conv1x1 (32->1), bias only (no BN / ReLU) ----------------
    out = jnp.dot(w5_ref[...], a, preferred_element_type=jnp.float32)  # (1, 256)
    o_ref[...] = (out + b_ref[0:1, 5:6]).astype(o_ref.dtype)


@jax.jit
def test_net_forward(x_nchw, params):
    """Full Test_Net forward. Input NCHW (PyTorch convention), output NCHW."""
    N, C, Hi, Wi = x_nchw.shape
    # NCHW already has channels-then-spatial; just flatten spatial onto lanes
    # and zero-pad the 3 input channels up to 8 sublanes.
    x_flat = x_nchw.reshape(N, C, Hi * Wi)
    x_flat = jnp.pad(x_flat, ((0, 0), (0, CIN0_PAD - C), (0, 0)))

    out = pl.pallas_call(
        _fused_kernel,
        out_shape=jax.ShapeDtypeStruct((N, 1, HW), jnp.float32),
        grid=(N,),
        in_specs=[
            pl.BlockSpec((None, CIN0_PAD, HW), lambda n: (n, 0, 0)),
            pl.BlockSpec((CHID, 9 * CIN0_PAD), lambda n: (0, 0)),
            pl.BlockSpec((4, CHID, 9 * CHID), lambda n: (0, 0, 0)),
            pl.BlockSpec((1, CHID), lambda n: (0, 0)),
            pl.BlockSpec((CHID, 6), lambda n: (0, 0)),
            pl.BlockSpec((9, HW), lambda n: (0, 0)),
        ],
        out_specs=pl.BlockSpec((None, 1, HW), lambda n: (n, 0, 0)),
        scratch_shapes=[pltpu.VMEM((9 * CHID, HW), jnp.float32)],
        compiler_params=pltpu.CompilerParams(
            dimension_semantics=("parallel",)),
    )(x_flat, params["w0"], params["wmid"], params["w5"],
      params["b"], params["mask"])

    return out.reshape(N, 1, H, W)


# ----------------------------- host-side packing -----------------------------

def _fold_bn(w_hwio, b, gamma, beta, mean, var, eps=1e-5):
    """Fold eval-mode BatchNorm into the preceding conv's weight and bias."""
    s = gamma / jnp.sqrt(var + eps)                 # (Cout,)
    w_eff = w_hwio * s[None, None, None, :]
    b_eff = (b - mean) * s + beta
    return w_eff, b_eff


def _make_tap_masks():
    """(9, H*W) validity masks for the 3x3 taps (zero padding)."""
    h = jnp.arange(HW, dtype=jnp.int32) // W
    w = jnp.arange(HW, dtype=jnp.int32) % W
    rows = []
    for oy in (-1, 0, 1):
        for ox in (-1, 0, 1):
            valid = ((h + oy >= 0) & (h + oy < H) &
                     (w + ox >= 0) & (w + ox < W))
            rows.append(valid.astype(jnp.float32))
    return jnp.stack(rows, axis=0)


def init_params(key):
    """Deterministic synthetic parameters matching Test_Net's layer shapes."""
    # (Cin, Cout, K, has_bn_relu)
    specs = [(3, 32, 3, True), (32, 32, 3, True), (32, 32, 3, True),
             (32, 32, 3, True), (32, 32, 3, True), (32, 1, 1, False)]
    layers = []
    for cin, cout, k, bn_relu in specs:
        key, kw, kb, kg, kbe, km, kv = jax.random.split(key, 7)
        w = 0.1 * jax.random.normal(kw, (k, k, cin, cout), jnp.float32)
        b = 0.1 * jax.random.normal(kb, (cout,), jnp.float32)
        if bn_relu:
            gamma = 1.0 + 0.1 * jax.random.normal(kg, (cout,), jnp.float32)
            beta = 0.1 * jax.random.normal(kbe, (cout,), jnp.float32)
            mean = 0.1 * jax.random.normal(km, (cout,), jnp.float32)
            var = 1.0 + 0.1 * jax.random.uniform(kv, (cout,), jnp.float32)
            w, b = _fold_bn(w, b, gamma, beta, mean, var)
        layers.append({"w": w, "b": b, "relu": bn_relu})
    return layers


def pack_params(layers):
    """Reshape folded HWIO weights into the kernel's matmul-friendly layout."""
    # layer 0: pad Cin 3 -> 8, flatten taps -> (Cout=32, 9*8=72)
    w0 = jnp.pad(layers[0]["w"], ((0, 0), (0, 0), (0, CIN0_PAD - 3), (0, 0)))
    w0 = w0.reshape(9 * CIN0_PAD, CHID).T
    # layers 1..4 -> (4, 32, 288)   [row index = tap*32 + cin, matches im2col]
    wmid = jnp.stack([layers[i]["w"].reshape(9 * CHID, CHID).T
                      for i in range(1, 5)], axis=0)
    # layer 5 (1x1) -> (1, 32)
    w5 = layers[5]["w"].reshape(CHID, 1).T
    # biases packed channel-on-sublane: (32, 6); layer 5 bias lives at [0, 5]
    bcols = [jnp.pad(l["b"], (0, CHID - l["b"].shape[0])) for l in layers]
    b_packed = jnp.stack(bcols, axis=1)
    return {"w0": w0, "wmid": wmid, "w5": w5, "b": b_packed,
            "mask": _make_tap_masks()}


def _reference_forward(x_nchw, layers):
    """Plain-JAX reference (lax.conv) for a correctness cross-check."""
    x = jnp.transpose(x_nchw, (0, 2, 3, 1))
    for layer in layers:
        y = lax.conv_general_dilated(
            x, layer["w"], window_strides=(1, 1), padding="SAME",
            dimension_numbers=("NHWC", "HWIO", "NHWC"))
        y = y + layer["b"].reshape(1, 1, 1, -1)
        x = jnp.maximum(y, 0.0) if layer["relu"] else y
    return jnp.transpose(x, (0, 3, 1, 2))


if __name__ == "__main__":
    key = jax.random.PRNGKey(0)
    kx, kp = jax.random.split(key)

    # PyTorch-style NCHW input: batch=2, channels=3, spatial=16x16
    x = jax.random.normal(kx, (2, 3, H, W), jnp.float32)
    layers = init_params(kp)
    params = pack_params(layers)

    out = jax.block_until_ready(test_net_forward(x, params))
    assert out.shape == (2, 1, H, W), out.shape

    ref = jax.block_until_ready(_reference_forward(x, layers))
    max_err = float(jnp.max(jnp.abs(out - ref)))
    assert jnp.allclose(out, ref, atol=1e-3, rtol=1e-3), max_err

    print("KERNEL_OK")
</pallas_src>

<mosaic_0001>
module attributes {stable_mosaic.version = 11 : i64} {
  func.func @_fused_kernel(%arg0: i32, %arg1: memref<1x8x256xf32, #tpu.memory_space<vmem>>, %arg2: memref<32x72xf32, #tpu.memory_space<vmem>>, %arg3: memref<4x32x288xf32, #tpu.memory_space<vmem>>, %arg4: memref<1x32xf32, #tpu.memory_space<vmem>>, %arg5: memref<32x6xf32, #tpu.memory_space<vmem>>, %arg6: memref<9x256xf32, #tpu.memory_space<vmem>>, %arg7: memref<1x1x256xf32, #tpu.memory_space<vmem>>, %arg8: memref<288x256xf32, #tpu.memory_space<vmem>>) attributes {dimension_semantics = [#tpu.dimension_semantics<parallel>], iteration_bounds = array<i64: 2>, scalar_prefetch = 0 : i64, scratch_operands = 1 : i64, tpu.core_type = #tpu.core_type<tc>, window_params = [{transform_indices = @transform_0, window_bounds = array<i64: 1, 8, 256>}, {pipeline_mode = #tpu.pipeline_mode<synchronous>, transform_indices = @transform_1, window_bounds = array<i64: 32, 72>}, {pipeline_mode = #tpu.pipeline_mode<synchronous>, transform_indices = @transform_2, window_bounds = array<i64: 4, 32, 288>}, {pipeline_mode = #tpu.pipeline_mode<synchronous>, transform_indices = @transform_3, window_bounds = array<i64: 1, 32>}, {pipeline_mode = #tpu.pipeline_mode<synchronous>, transform_indices = @transform_4, window_bounds = array<i64: 32, 6>}, {pipeline_mode = #tpu.pipeline_mode<synchronous>, transform_indices = @transform_5, window_bounds = array<i64: 9, 256>}, {transform_indices = @transform_6, window_bounds = array<i64: 1, 1, 256>}]} {
    %c0 = arith.constant 0 : index
    %c0_0 = arith.constant 0 : index
    %c0_1 = arith.constant 0 : index
    %0 = vector.load %arg1[%c0, %c0_0, %c0_1] : memref<1x8x256xf32, #tpu.memory_space<vmem>>, vector<1x8x256xf32>
    %1 = vector.shape_cast %0 : vector<1x8x256xf32> to vector<8x256xf32>
    %c17_i32 = arith.constant 17 : i32
    %2 = tpu.dynamic_rotate %1 by %c17_i32 dim 1 : vector<8x256xf32>, i32 -> vector<8x256xf32>
    %c0_2 = arith.constant 0 : index
    %c0_3 = arith.constant 0 : index
    %3 = vector.load %arg6[%c0_2, %c0_3] : memref<9x256xf32, #tpu.memory_space<vmem>>, vector<1x256xf32>
    %4 = vector.broadcast %3 : vector<1x256xf32> to vector<8x256xf32>
    %5 = arith.mulf %2, %4 : vector<8x256xf32>
    %c0_4 = arith.constant 0 : index
    %c0_5 = arith.constant 0 : index
    %6 = vector.load %arg8[%c0_4, %c0_5] : memref<288x256xf32, #tpu.memory_space<vmem>>, vector<8x256xf32>
    tpu.vector_store %arg8[%c0_4, %c0_5], %5 {strides = array<i32>} : memref<288x256xf32, #tpu.memory_space<vmem>>, vector<8x256xf32>,
    %c16_i32 = arith.constant 16 : i32
    %7 = tpu.dynamic_rotate %1 by %c16_i32 dim 1 : vector<8x256xf32>, i32 -> vector<8x256xf32>
    %c1 = arith.constant 1 : index
    %c0_6 = arith.constant 0 : index
    %8 = vector.load %arg6[%c1, %c0_6] : memref<9x256xf32, #tpu.memory_space<vmem>>, vector<1x256xf32>
    %9 = vector.broadcast %8 : vector<1x256xf32> to vector<8x256xf32>
    %10 = arith.mulf %7, %9 : vector<8x256xf32>
    %c8 = arith.constant 8 : index
    %c0_7 = arith.constant 0 : index
    %11 = vector.load %arg8[%c8, %c0_7] : memref<288x256xf32, #tpu.memory_space<vmem>>, vector<8x256xf32>
    tpu.vector_store %arg8[%c8, %c0_7], %10 {strides = array<i32>} : memref<288x256xf32, #tpu.memory_space<vmem>>, vector<8x256xf32>,
    %c15_i32 = arith.constant 15 : i32
    %12 = tpu.dynamic_rotate %1 by %c15_i32 dim 1 : vector<8x256xf32>, i32 -> vector<8x256xf32>
    %c2 = arith.constant 2 : index
    %c0_8 = arith.constant 0 : index
    %13 = vector.load %arg6[%c2, %c0_8] : memref<9x256xf32, #tpu.memory_space<vmem>>, vector<1x256xf32>
    %14 = vector.broadcast %13 : vector<1x256xf32> to vector<8x256xf32>
    %15 = arith.mulf %12, %14 : vector<8x256xf32>
    %c16 = arith.constant 16 : index
    %c0_9 = arith.constant 0 : index
    %16 = vector.load %arg8[%c16, %c0_9] : memref<288x256xf32, #tpu.memory_space<vmem>>, vector<8x256xf32>
    tpu.vector_store %arg8[%c16, %c0_9], %15 {strides = array<i32>} : memref<288x256xf32, #tpu.memory_space<vmem>>, vector<8x256xf32>,
    %c1_i32 = arith.constant 1 : i32
    %17 = tpu.dynamic_rotate %1 by %c1_i32 dim 1 : vector<8x256xf32>, i32 -> vector<8x256xf32>
    %c3 = arith.constant 3 : index
    %c0_10 = arith.constant 0 : index
    %18 = vector.load %arg6[%c3, %c0_10] : memref<9x256xf32, #tpu.memory_space<vmem>>, vector<1x256xf32>
    %19 = vector.broadcast %18 : vector<1x256xf32> to vector<8x256xf32>
    %20 = arith.mulf %17, %19 : vector<8x256xf32>
    %c24 = arith.constant 24 : index
    %c0_11 = arith.constant 0 : index
    %21 = vector.load %arg8[%c24, %c0_11] : memref<288x256xf32, #tpu.memory_space<vmem>>, vector<8x256xf32>
    tpu.vector_store %arg8[%c24, %c0_11], %20 {strides = array<i32>} : memref<288x256xf32, #tpu.memory_space<vmem>>, vector<8x256xf32>,
    %c4 = arith.constant 4 : index
    %c0_12 = arith.constant 0 : index
    %22 = vector.load %arg6[%c4, %c0_12] : memref<9x256xf32, #tpu.memory_space<vmem>>, vector<1x256xf32>
    %23 = vector.broadcast %22 : vector<1x256xf32> to vector<8x256xf32>
    %24 = arith.mulf %1, %23 : vector<8x256xf32>
    %c32 = arith.constant 32 : index
    %c0_13 = arith.constant 0 : index
    %25 = vector.load %arg8[%c32, %c0_13] : memref<288x256xf32, #tpu.memory_space<vmem>>, vector<8x256xf32>
    tpu.vector_store %arg8[%c32, %c0_13], %24 {strides = array<i32>} : memref<288x256xf32, #tpu.memory_space<vmem>>, vector<8x256xf32>,
    %c255_i32 = arith.constant 255 : i32
    %26 = tpu.dynamic_rotate %1 by %c255_i32 dim 1 : vector<8x256xf32>, i32 -> vector<8x256xf32>
    %c5 = arith.constant 5 : index
    %c0_14 = arith.constant 0 : index
    %27 = vector.load %arg6[%c5, %c0_14] : memref<9x256xf32, #tpu.memory_space<vmem>>, vector<1x256xf32>
    %28 = vector.broadcast %27 : vector<1x256xf32> to vector<8x256xf32>
    %29 = arith.mulf %26, %28 : vector<8x256xf32>
    %c40 = arith.constant 40 : index
    %c0_15 = arith.constant 0 : index
    %30 = vector.load %arg8[%c40, %c0_15] : memref<288x256xf32, #tpu.memory_space<vmem>>, vector<8x256xf32>
    tpu.vector_store %arg8[%c40, %c0_15], %29 {strides = array<i32>} : memref<288x256xf32, #tpu.memory_space<vmem>>, vector<8x256xf32>,
    %c241_i32 = arith.constant 241 : i32
    %31 = tpu.dynamic_rotate %1 by %c241_i32 dim 1 : vector<8x256xf32>, i32 -> vector<8x256xf32>
    %c6 = arith.constant 6 : index
    %c0_16 = arith.constant 0 : index
    %32 = vector.load %arg6[%c6, %c0_16] : memref<9x256xf32, #tpu.memory_space<vmem>>, vector<1x256xf32>
    %33 = vector.broadcast %32 : vector<1x256xf32> to vector<8x256xf32>
    %34 = arith.mulf %31, %33 : vector<8x256xf32>
    %c48 = arith.constant 48 : index
    %c0_17 = arith.constant 0 : index
    %35 = vector.load %arg8[%c48, %c0_17] : memref<288x256xf32, #tpu.memory_space<vmem>>, vector<8x256xf32>
    tpu.vector_store %arg8[%c48, %c0_17], %34 {strides = array<i32>} : memref<288x256xf32, #tpu.memory_space<vmem>>, vector<8x256xf32>,
    %c240_i32 = arith.constant 240 : i32
    %36 = tpu.dynamic_rotate %1 by %c240_i32 dim 1 : vector<8x256xf32>, i32 -> vector<8x256xf32>
    %c7 = arith.constant 7 : index
    %c0_18 = arith.constant 0 : index
    %37 = vector.load %arg6[%c7, %c0_18] : memref<9x256xf32, #tpu.memory_space<vmem>>, vector<1x256xf32>
    %38 = vector.broadcast %37 : vector<1x256xf32> to vector<8x256xf32>
    %39 = arith.mulf %36, %38 : vector<8x256xf32>
    %c56 = arith.constant 56 : index
    %c0_19 = arith.constant 0 : index
    %40 = vector.load %arg8[%c56, %c0_19] : memref<288x256xf32, #tpu.memory_space<vmem>>, vector<8x256xf32>
    tpu.vector_store %arg8[%c56, %c0_19], %39 {strides = array<i32>} : memref<288x256xf32, #tpu.memory_space<vmem>>, vector<8x256xf32>,
    %c239_i32 = arith.constant 239 : i32
    %41 = tpu.dynamic_rotate %1 by %c239_i32 dim 1 : vector<8x256xf32>, i32 -> vector<8x256xf32>
    %c8_20 = arith.constant 8 : index
    %c0_21 = arith.constant 0 : index
    %42 = vector.load %arg6[%c8_20, %c0_21] : memref<9x256xf32, #tpu.memory_space<vmem>>, vector<1x256xf32>
    %43 = vector.broadcast %42 : vector<1x256xf32> to vector<8x256xf32>
    %44 = arith.mulf %41, %43 : vector<8x256xf32>
    %c64 = arith.constant 64 : index
    %c0_22 = arith.constant 0 : index
    %45 = vector.load %arg8[%c64, %c0_22] : memref<288x256xf32, #tpu.memory_space<vmem>>, vector<8x256xf32>
    tpu.vector_store %arg8[%c64, %c0_22], %44 {strides = array<i32>} : memref<288x256xf32, #tpu.memory_space<vmem>>, vector<8x256xf32>,
    %c0_23 = arith.constant 0 : index
    %c0_24 = arith.constant 0 : index
    %46 = vector.load %arg2[%c0_23, %c0_24] : memref<32x72xf32, #tpu.memory_space<vmem>>, vector<32x72xf32>
    %c0_25 = arith.constant 0 : index
    %c0_26 = arith.constant 0 : index
    %47 = vector.load %arg8[%c0_25, %c0_26] : memref<288x256xf32, #tpu.memory_space<vmem>>, vector<72x256xf32>
    %cst = arith.constant dense<0.000000e+00> : vector<32x256xf32>
    %48 = tpu.matmul %46, %47, %cst {dimension_numbers = #tpu.dot_dimension_numbers<[1], [0], [0], [1], [0, 0, 1, 1], [], []>} : vector<32x72xf32>, vector<72x256xf32>, vector<32x256xf32> -> vector<32x256xf32>
    %c0_27 = arith.constant 0 : index
    %c0_28 = arith.constant 0 : index
    %49 = vector.load %arg5[%c0_27, %c0_28] : memref<32x6xf32, #tpu.memory_space<vmem>>, vector<32x1xf32>
    %50 = vector.broadcast %49 : vector<32x1xf32> to vector<32x256xf32>
    %51 = arith.addf %48, %50 : vector<32x256xf32>
    %cst_29 = arith.constant 0.000000e+00 : f32
    %52 = vector.broadcast %cst_29 : f32 to vector<32x256xf32>
    %53 = arith.maximumf %51, %52 : vector<32x256xf32>
    %c17_i32_30 = arith.constant 17 : i32
    %54 = tpu.dynamic_rotate %53 by %c17_i32_30 dim 1 : vector<32x256xf32>, i32 -> vector<32x256xf32>
    %c0_31 = arith.constant 0 : index
    %c0_32 = arith.constant 0 : index
    %55 = vector.load %arg6[%c0_31, %c0_32] : memref<9x256xf32, #tpu.memory_space<vmem>>, vector<1x256xf32>
    %56 = vector.broadcast %55 : vector<1x256xf32> to vector<32x256xf32>
    %57 = arith.mulf %54, %56 : vector<32x256xf32>
    %c0_33 = arith.constant 0 : index
    %c0_34 = arith.constant 0 : index
    %58 = vector.load %arg8[%c0_33, %c0_34] : memref<288x256xf32, #tpu.memory_space<vmem>>, vector<32x256xf32>
    tpu.vector_store %arg8[%c0_33, %c0_34], %57 {strides = array<i32>} : memref<288x256xf32, #tpu.memory_space<vmem>>, vector<32x256xf32>,
    %c16_i32_35 = arith.constant 16 : i32
    %59 = tpu.dynamic_rotate %53 by %c16_i32_35 dim 1 : vector<32x256xf32>, i32 -> vector<32x256xf32>
    %c1_36 = arith.constant 1 : index
    %c0_37 = arith.constant 0 : index
    %60 = vector.load %arg6[%c1_36, %c0_37] : memref<9x256xf32, #tpu.memory_space<vmem>>, vector<1x256xf32>
    %61 = vector.broadcast %60 : vector<1x256xf32> to vector<32x256xf32>
    %62 = arith.mulf %59, %61 : vector<32x256xf32>
    %c32_38 = arith.constant 32 : index
    %c0_39 = arith.constant 0 : index
    %63 = vector.load %arg8[%c32_38, %c0_39] : memref<288x256xf32, #tpu.memory_space<vmem>>, vector<32x256xf32>
    tpu.vector_store %arg8[%c32_38, %c0_39], %62 {strides = array<i32>} : memref<288x256xf32, #tpu.memory_space<vmem>>, vector<32x256xf32>,
    %c15_i32_40 = arith.constant 15 : i32
    %64 = tpu.dynamic_rotate %53 by %c15_i32_40 dim 1 : vector<32x256xf32>, i32 -> vector<32x256xf32>
    %c2_41 = arith.constant 2 : index
    %c0_42 = arith.constant 0 : index
    %65 = vector.load %arg6[%c2_41, %c0_42] : memref<9x256xf32, #tpu.memory_space<vmem>>, vector<1x256xf32>
    %66 = vector.broadcast %65 : vector<1x256xf32> to vector<32x256xf32>
    %67 = arith.mulf %64, %66 : vector<32x256xf32>
    %c64_43 = arith.constant 64 : index
    %c0_44 = arith.constant 0 : index
    %68 = vector.load %arg8[%c64_43, %c0_44] : memref<288x256xf32, #tpu.memory_space<vmem>>, vector<32x256xf32>
    tpu.vector_store %arg8[%c64_43, %c0_44], %67 {strides = array<i32>} : memref<288x256xf32, #tpu.memory_space<vmem>>, vector<32x256xf32>,
    %c1_i32_45 = arith.constant 1 : i32
    %69 = tpu.dynamic_rotate %53 by %c1_i32_45 dim 1 : vector<32x256xf32>, i32 -> vector<32x256xf32>
    %c3_46 = arith.constant 3 : index
    %c0_47 = arith.constant 0 : index
    %70 = vector.load %arg6[%c3_46, %c0_47] : memref<9x256xf32, #tpu.memory_space<vmem>>, vector<1x256xf32>
    %71 = vector.broadcast %70 : vector<1x256xf32> to vector<32x256xf32>
    %72 = arith.mulf %69, %71 : vector<32x256xf32>
    %c96 = arith.constant 96 : index
    %c0_48 = arith.constant 0 : index
    %73 = vector.load %arg8[%c96, %c0_48] : memref<288x256xf32, #tpu.memory_space<vmem>>, vector<32x256xf32>
    tpu.vector_store %arg8[%c96, %c0_48], %72 {strides = array<i32>} : memref<288x256xf32, #tpu.memory_space<vmem>>, vector<32x256xf32>,
    %c4_49 = arith.constant 4 : index
    %c0_50 = arith.constant 0 : index
    %74 = vector.load %arg6[%c4_49, %c0_50] : memref<9x256xf32, #tpu.memory_space<vmem>>, vector<1x256xf32>
    %75 = vector.broadcast %74 : vector<1x256xf32> to vector<32x256xf32>
    %76 = arith.mulf %53, %75 : vector<32x256xf32>
    %c128 = arith.constant 128 : index
    %c0_51 = arith.constant 0 : index
    %77 = vector.load %arg8[%c128, %c0_51] : memref<288x256xf32, #tpu.memory_space<vmem>>, vector<32x256xf32>
    tpu.vector_store %arg8[%c128, %c0_51], %76 {strides = array<i32>} : memref<288x256xf32, #tpu.memory_space<vmem>>, vector<32x256xf32>,
    %c255_i32_52 = arith.constant 255 : i32
    %78 = tpu.dynamic_rotate %53 by %c255_i32_52 dim 1 : vector<32x256xf32>, i32 -> vector<32x256xf32>
    %c5_53 = arith.constant 5 : index
    %c0_54 = arith.constant 0 : index
    %79 = vector.load %arg6[%c5_53, %c0_54] : memref<9x256xf32, #tpu.memory_space<vmem>>, vector<1x256xf32>
    %80 = vector.broadcast %79 : vector<1x256xf32> to vector<32x256xf32>
    %81 = arith.mulf %78, %80 : vector<32x256xf32>
    %c160 = arith.constant 160 : index
    %c0_55 = arith.constant 0 : index
    %82 = vector.load %arg8[%c160, %c0_55] : memref<288x256xf32, #tpu.memory_space<vmem>>, vector<32x256xf32>
    tpu.vector_store %arg8[%c160, %c0_55], %81 {strides = array<i32>} : memref<288x256xf32, #tpu.memory_space<vmem>>, vector<32x256xf32>,
    %c241_i32_56 = arith.constant 241 : i32
    %83 = tpu.dynamic_rotate %53 by %c241_i32_56 dim 1 : vector<32x256xf32>, i32 -> vector<32x256xf32>
    %c6_57 = arith.constant 6 : index
    %c0_58 = arith.constant 0 : index
    %84 = vector.load %arg6[%c6_57, %c0_58] : memref<9x256xf32, #tpu.memory_space<vmem>>, vector<1x256xf32>
    %85 = vector.broadcast %84 : vector<1x256xf32> to vector<32x256xf32>
    %86 = arith.mulf %83, %85 : vector<32x256xf32>
    %c192 = arith.constant 192 : index
    %c0_59 = arith.constant 0 : index
    %87 = vector.load %arg8[%c192, %c0_59] : memref<288x256xf32, #tpu.memory_space<vmem>>, vector<32x256xf32>
    tpu.vector_store %arg8[%c192, %c0_59], %86 {strides = array<i32>} : memref<288x256xf32, #tpu.memory_space<vmem>>, vector<32x256xf32>,
    %c240_i32_60 = arith.constant 240 : i32
    %88 = tpu.dynamic_rotate %53 by %c240_i32_60 dim 1 : vector<32x256xf32>, i32 -> vector<32x256xf32>
    %c7_61 = arith.constant 7 : index
    %c0_62 = arith.constant 0 : index
    %89 = vector.load %arg6[%c7_61, %c0_62] : memref<9x256xf32, #tpu.memory_space<vmem>>, vector<1x256xf32>
    %90 = vector.broadcast %89 : vector<1x256xf32> to vector<32x256xf32>
    %91 = arith.mulf %88, %90 : vector<32x256xf32>
    %c224 = arith.constant 224 : index
    %c0_63 = arith.constant 0 : index
    %92 = vector.load %arg8[%c224, %c0_63] : memref<288x256xf32, #tpu.memory_space<vmem>>, vector<32x256xf32>
    tpu.vector_store %arg8[%c224, %c0_63], %91 {strides = array<i32>} : memref<288x256xf32, #tpu.memory_space<vmem>>, vector<32x256xf32>,
    %c239_i32_64 = arith.constant 239 : i32
    %93 = tpu.dynamic_rotate %53 by %c239_i32_64 dim 1 : vector<32x256xf32>, i32 -> vector<32x256xf32>
    %c8_65 = arith.constant 8 : index
    %c0_66 = arith.constant 0 : index
    %94 = vector.load %arg6[%c8_65, %c0_66] : memref<9x256xf32, #tpu.memory_space<vmem>>, vector<1x256xf32>
    %95 = vector.broadcast %94 : vector<1x256xf32> to vector<32x256xf32>
    %96 = arith.mulf %93, %95 : vector<32x256xf32>
    %c256 = arith.constant 256 : index
    %c0_67 = arith.constant 0 : index
    %97 = vector.load %arg8[%c256, %c0_67] : memref<288x256xf32, #tpu.memory_space<vmem>>, vector<32x256xf32>
    tpu.vector_store %arg8[%c256, %c0_67], %96 {strides = array<i32>} : memref<288x256xf32, #tpu.memory_space<vmem>>, vector<32x256xf32>,
    %c0_68 = arith.constant 0 : index
    %c0_69 = arith.constant 0 : index
    %c0_70 = arith.constant 0 : index
    %98 = vector.load %arg3[%c0_68, %c0_69, %c0_70] : memref<4x32x288xf32, #tpu.memory_space<vmem>>, vector<1x32x288xf32>
    %99 = vector.shape_cast %98 : vector<1x32x288xf32> to vector<32x288xf32>
    %c0_71 = arith.constant 0 : index
    %c0_72 = arith.constant 0 : index
    %100 = vector.load %arg8[%c0_71, %c0_72] : memref<288x256xf32, #tpu.memory_space<vmem>>, vector<288x256xf32>
    %cst_73 = arith.constant dense<0.000000e+00> : vector<32x256xf32>
    %101 = tpu.matmul %99, %100, %cst_73 {dimension_numbers = #tpu.dot_dimension_numbers<[1], [0], [0], [1], [0, 0, 1, 1], [], []>} : vector<32x288xf32>, vector<288x256xf32>, vector<32x256xf32> -> vector<32x256xf32>
    %c0_74 = arith.constant 0 : index
    %c1_75 = arith.constant 1 : index
    %102 = vector.load %arg5[%c0_74, %c1_75] : memref<32x6xf32, #tpu.memory_space<vmem>>, vector<32x1xf32>
    %103 = vector.broadcast %102 : vector<32x1xf32> to vector<32x256xf32>
    %104 = arith.addf %101, %103 : vector<32x256xf32>
    %cst_76 = arith.constant 0.000000e+00 : f32
    %105 = vector.broadcast %cst_76 : f32 to vector<32x256xf32>
    %106 = arith.maximumf %104, %105 : vector<32x256xf32>
    %c17_i32_77 = arith.constant 17 : i32
    %107 = tpu.dynamic_rotate %106 by %c17_i32_77 dim 1 : vector<32x256xf32>, i32 -> vector<32x256xf32>
    %c0_78 = arith.constant 0 : index
    %c0_79 = arith.constant 0 : index
    %108 = vector.load %arg6[%c0_78, %c0_79] : memref<9x256xf32, #tpu.memory_space<vmem>>, vector<1x256xf32>
    %109 = vector.broadcast %108 : vector<1x256xf32> to vector<32x256xf32>
    %110 = arith.mulf %107, %109 : vector<32x256xf32>
    %c0_80 = arith.constant 0 : index
    %c0_81 = arith.constant 0 : index
    %111 = vector.load %arg8[%c0_80, %c0_81] : memref<288x256xf32, #tpu.memory_space<vmem>>, vector<32x256xf32>
    tpu.vector_store %arg8[%c0_80, %c0_81], %110 {strides = array<i32>} : memref<288x256xf32, #tpu.memory_space<vmem>>, vector<32x256xf32>,
    %c16_i32_82 = arith.constant 16 : i32
    %112 = tpu.dynamic_rotate %106 by %c16_i32_82 dim 1 : vector<32x256xf32>, i32 -> vector<32x256xf32>
    %c1_83 = arith.constant 1 : index
    %c0_84 = arith.constant 0 : index
    %113 = vector.load %arg6[%c1_83, %c0_84] : memref<9x256xf32, #tpu.memory_space<vmem>>, vector<1x256xf32>
    %114 = vector.broadcast %113 : vector<1x256xf32> to vector<32x256xf32>
    %115 = arith.mulf %112, %114 : vector<32x256xf32>
    %c32_85 = arith.constant 32 : index
    %c0_86 = arith.constant 0 : index
    %116 = vector.load %arg8[%c32_85, %c0_86] : memref<288x256xf32, #tpu.memory_space<vmem>>, vector<32x256xf32>
    tpu.vector_store %arg8[%c32_85, %c0_86], %115 {strides = array<i32>} : memref<288x256xf32, #tpu.memory_space<vmem>>, vector<32x256xf32>,
    %c15_i32_87 = arith.constant 15 : i32
    %117 = tpu.dynamic_rotate %106 by %c15_i32_87 dim 1 : vector<32x256xf32>, i32 -> vector<32x256xf32>
    %c2_88 = arith.constant 2 : index
    %c0_89 = arith.constant 0 : index
    %118 = vector.load %arg6[%c2_88, %c0_89] : memref<9x256xf32, #tpu.memory_space<vmem>>, vector<1x256xf32>
    %119 = vector.broadcast %118 : vector<1x256xf32> to vector<32x256xf32>
    %120 = arith.mulf %117, %119 : vector<32x256xf32>
    %c64_90 = arith.constant 64 : index
    %c0_91 = arith.constant 0 : index
    %121 = vector.load %arg8[%c64_90, %c0_91] : memref<288x256xf32, #tpu.memory_space<vmem>>, vector<32x256xf32>
    tpu.vector_store %arg8[%c64_90, %c0_91], %120 {strides = array<i32>} : memref<288x256xf32, #tpu.memory_space<vmem>>, vector<32x256xf32>,
    %c1_i32_92 = arith.constant 1 : i32
    %122 = tpu.dynamic_rotate %106 by %c1_i32_92 dim 1 : vector<32x256xf32>, i32 -> vector<32x256xf32>
    %c3_93 = arith.constant 3 : index
    %c0_94 = arith.constant 0 : index
    %123 = vector.load %arg6[%c3_93, %c0_94] : memref<9x256xf32, #tpu.memory_space<vmem>>, vector<1x256xf32>
    %124 = vector.broadcast %123 : vector<1x256xf32> to vector<32x256xf32>
    %125 = arith.mulf %122, %124 : vector<32x256xf32>
    %c96_95 = arith.constant 96 : index
    %c0_96 = arith.constant 0 : index
    %126 = vector.load %arg8[%c96_95, %c0_96] : memref<288x256xf32, #tpu.memory_space<vmem>>, vector<32x256xf32>
    tpu.vector_store %arg8[%c96_95, %c0_96], %125 {strides = array<i32>} : memref<288x256xf32, #tpu.memory_space<vmem>>, vector<32x256xf32>,
    %c4_97 = arith.constant 4 : index
    %c0_98 = arith.constant 0 : index
    %127 = vector.load %arg6[%c4_97, %c0_98] : memref<9x256xf32, #tpu.memory_space<vmem>>, vector<1x256xf32>
    %128 = vector.broadcast %127 : vector<1x256xf32> to vector<32x256xf32>
    %129 = arith.mulf %106, %128 : vector<32x256xf32>
    %c128_99 = arith.constant 128 : index
    %c0_100 = arith.constant 0 : index
    %130 = vector.load %arg8[%c128_99, %c0_100] : memref<288x256xf32, #tpu.memory_space<vmem>>, vector<32x256xf32>
    tpu.vector_store %arg8[%c128_99, %c0_100], %129 {strides = array<i32>} : memref<288x256xf32, #tpu.memory_space<vmem>>, vector<32x256xf32>,
    %c255_i32_101 = arith.constant 255 : i32
    %131 = tpu.dynamic_rotate %106 by %c255_i32_101 dim 1 : vector<32x256xf32>, i32 -> vector<32x256xf32>
    %c5_102 = arith.constant 5 : index
    %c0_103 = arith.constant 0 : index
    %132 = vector.load %arg6[%c5_102, %c0_103] : memref<9x256xf32, #tpu.memory_space<vmem>>, vector<1x256xf32>
    %133 = vector.broadcast %132 : vector<1x256xf32> to vector<32x256xf32>
    %134 = arith.mulf %131, %133 : vector<32x256xf32>
    %c160_104 = arith.constant 160 : index
    %c0_105 = arith.constant 0 : index
    %135 = vector.load %arg8[%c160_104, %c0_105] : memref<288x256xf32, #tpu.memory_space<vmem>>, vector<32x256xf32>
    tpu.vector_store %arg8[%c160_104, %c0_105], %134 {strides = array<i32>} : memref<288x256xf32, #tpu.memory_space<vmem>>, vector<32x256xf32>,
    %c241_i32_106 = arith.constant 241 : i32
    %136 = tpu.dynamic_rotate %106 by %c241_i32_106 dim 1 : vector<32x256xf32>, i32 -> vector<32x256xf32>
    %c6_107 = arith.constant 6 : index
    %c0_108 = arith.constant 0 : index
    %137 = vector.load %arg6[%c6_107, %c0_108] : memref<9x256xf32, #tpu.memory_space<vmem>>, vector<1x256xf32>
    %138 = vector.broadcast %137 : vector<1x256xf32> to vector<32x256xf32>
    %139 = arith.mulf %136, %138 : vector<32x256xf32>
    %c192_109 = arith.constant 192 : index
    %c0_110 = arith.constant 0 : index
    %140 = vector.load %arg8[%c192_109, %c0_110] : memref<288x256xf32, #tpu.memory_space<vmem>>, vector<32x256xf32>
    tpu.vector_store %arg8[%c192_109, %c0_110], %139 {strides = array<i32>} : memref<288x256xf32, #tpu.memory_space<vmem>>, vector<32x256xf32>,
    %c240_i32_111 = arith.constant 240 : i32
    %141 = tpu.dynamic_rotate %106 by %c240_i32_111 dim 1 : vector<32x256xf32>, i32 -> vector<32x256xf32>
    %c7_112 = arith.constant 7 : index
    %c0_113 = arith.constant 0 : index
    %142 = vector.load %arg6[%c7_112, %c0_113] : memref<9x256xf32, #tpu.memory_space<vmem>>, vector<1x256xf32>
    %143 = vector.broadcast %142 : vector<1x256xf32> to vector<32x256xf32>
    %144 = arith.mulf %141, %143 : vector<32x256xf32>
    %c224_114 = arith.constant 224 : index
    %c0_115 = arith.constant 0 : index
    %145 = vector.load %arg8[%c224_114, %c0_115] : memref<288x256xf32, #tpu.memory_space<vmem>>, vector<32x256xf32>
    tpu.vector_store %arg8[%c224_114, %c0_115], %144 {strides = array<i32>} : memref<288x256xf32, #tpu.memory_space<vmem>>, vector<32x256xf32>,
    %c239_i32_116 = arith.constant 239 : i32
    %146 = tpu.dynamic_rotate %106 by %c239_i32_116 dim 1 : vector<32x256xf32>, i32 -> vector<32x256xf32>
    %c8_117 = arith.constant 8 : index
    %c0_118 = arith.constant 0 : index
    %147 = vector.load %arg6[%c8_117, %c0_118] : memref<9x256xf32, #tpu.memory_space<vmem>>, vector<1x256xf32>
    %148 = vector.broadcast %147 : vector<1x256xf32> to vector<32x256xf32>
    %149 = arith.mulf %146, %148 : vector<32x256xf32>
    %c256_119 = arith.constant 256 : index
    %c0_120 = arith.constant 0 : index
    %150 = vector.load %arg8[%c256_119, %c0_120] : memref<288x256xf32, #tpu.memory_space<vmem>>, vector<32x256xf32>
    tpu.vector_store %arg8[%c256_119, %c0_120], %149 {strides = array<i32>} : memref<288x256xf32, #tpu.memory_space<vmem>>, vector<32x256xf32>,
    %c1_121 = arith.constant 1 : index
    %c0_122 = arith.constant 0 : index
    %c0_123 = arith.constant 0 : index
    %151 = vector.load %arg3[%c1_121, %c0_122, %c0_123] : memref<4x32x288xf32, #tpu.memory_space<vmem>>, vector<1x32x288xf32>
    %152 = vector.shape_cast %151 : vector<1x32x288xf32> to vector<32x288xf32>
    %c0_124 = arith.constant 0 : index
    %c0_125 = arith.constant 0 : index
    %153 = vector.load %arg8[%c0_124, %c0_125] : memref<288x256xf32, #tpu.memory_space<vmem>>, vector<288x256xf32>
    %cst_126 = arith.constant dense<0.000000e+00> : vector<32x256xf32>
    %154 = tpu.matmul %152, %153, %cst_126 {dimension_numbers = #tpu.dot_dimension_numbers<[1], [0], [0], [1], [0, 0, 1, 1], [], []>} : vector<32x288xf32>, vector<288x256xf32>, vector<32x256xf32> -> vector<32x256xf32>
    %c0_127 = arith.constant 0 : index
    %c2_128 = arith.constant 2 : index
    %155 = vector.load %arg5[%c0_127, %c2_128] : memref<32x6xf32, #tpu.memory_space<vmem>>, vector<32x1xf32>
    %156 = vector.broadcast %155 : vector<32x1xf32> to vector<32x256xf32>
    %157 = arith.addf %154, %156 : vector<32x256xf32>
    %cst_129 = arith.constant 0.000000e+00 : f32
    %158 = vector.broadcast %cst_129 : f32 to vector<32x256xf32>
    %159 = arith.maximumf %157, %158 : vector<32x256xf32>
    %c17_i32_130 = arith.constant 17 : i32
    %160 = tpu.dynamic_rotate %159 by %c17_i32_130 dim 1 : vector<32x256xf32>, i32 -> vector<32x256xf32>
    %c0_131 = arith.constant 0 : index
    %c0_132 = arith.constant 0 : index
    %161 = vector.load %arg6[%c0_131, %c0_132] : memref<9x256xf32, #tpu.memory_space<vmem>>, vector<1x256xf32>
    %162 = vector.broadcast %161 : vector<1x256xf32> to vector<32x256xf32>
    %163 = arith.mulf %160, %162 : vector<32x256xf32>
    %c0_133 = arith.constant 0 : index
    %c0_134 = arith.constant 0 : index
    %164 = vector.load %arg8[%c0_133, %c0_134] : memref<288x256xf32, #tpu.memory_space<vmem>>, vector<32x256xf32>
    tpu.vector_store %arg8[%c0_133, %c0_134], %163 {strides = array<i32>} : memref<288x256xf32, #tpu.memory_space<vmem>>, vector<32x256xf32>,
    %c16_i32_135 = arith.constant 16 : i32
    %165 = tpu.dynamic_rotate %159 by %c16_i32_135 dim 1 : vector<32x256xf32>, i32 -> vector<32x256xf32>
    %c1_136 = arith.constant 1 : index
    %c0_137 = arith.constant 0 : index
    %166 = vector.load %arg6[%c1_136, %c0_137] : memref<9x256xf32, #tpu.memory_space<vmem>>, vector<1x256xf32>
    %167 = vector.broadcast %166 : vector<1x256xf32> to vector<32x256xf32>
    %168 = arith.mulf %165, %167 : vector<32x256xf32>
    %c32_138 = arith.constant 32 : index
    %c0_139 = arith.constant 0 : index
    %169 = vector.load %arg8[%c32_138, %c0_139] : memref<288x256xf32, #tpu.memory_space<vmem>>, vector<32x256xf32>
    tpu.vector_store %arg8[%c32_138, %c0_139], %168 {strides = array<i32>} : memref<288x256xf32, #tpu.memory_space<vmem>>, vector<32x256xf32>,
    %c15_i32_140 = arith.constant 15 : i32
    %170 = tpu.dynamic_rotate %159 by %c15_i32_140 dim 1 : vector<32x256xf32>, i32 -> vector<32x256xf32>
    %c2_141 = arith.constant 2 : index
    %c0_142 = arith.constant 0 : index
    %171 = vector.load %arg6[%c2_141, %c0_142] : memref<9x256xf32, #tpu.memory_space<vmem>>, vector<1x256xf32>
    %172 = vector.broadcast %171 : vector<1x256xf32> to vector<32x256xf32>
    %173 = arith.mulf %170, %172 : vector<32x256xf32>
    %c64_143 = arith.constant 64 : index
    %c0_144 = arith.constant 0 : index
    %174 = vector.load %arg8[%c64_143, %c0_144] : memref<288x256xf32, #tpu.memory_space<vmem>>, vector<32x256xf32>
    tpu.vector_store %arg8[%c64_143, %c0_144], %173 {strides = array<i32>} : memref<288x256xf32, #tpu.memory_space<vmem>>, vector<32x256xf32>,
    %c1_i32_145 = arith.constant 1 : i32
    %175 = tpu.dynamic_rotate %159 by %c1_i32_145 dim 1 : vector<32x256xf32>, i32 -> vector<32x256xf32>
    %c3_146 = arith.constant 3 : index
    %c0_147 = arith.constant 0 : index
    %176 = vector.load %arg6[%c3_146, %c0_147] : memref<9x256xf32, #tpu.memory_space<vmem>>, vector<1x256xf32>
    %177 = vector.broadcast %176 : vector<1x256xf32> to vector<32x256xf32>
    %178 = arith.mulf %175, %177 : vector<32x256xf32>
    %c96_148 = arith.constant 96 : index
    %c0_149 = arith.constant 0 : index
    %179 = vector.load %arg8[%c96_148, %c0_149] : memref<288x256xf32, #tpu.memory_space<vmem>>, vector<32x256xf32>
    tpu.vector_store %arg8[%c96_148, %c0_149], %178 {strides = array<i32>} : memref<288x256xf32, #tpu.memory_space<vmem>>, vector<32x256xf32>,
    %c4_150 = arith.constant 4 : index
    %c0_151 = arith.constant 0 : index
    %180 = vector.load %arg6[%c4_150, %c0_151] : memref<9x256xf32, #tpu.memory_space<vmem>>, vector<1x256xf32>
    %181 = vector.broadcast %180 : vector<1x256xf32> to vector<32x256xf32>
    %182 = arith.mulf %159, %181 : vector<32x256xf32>
    %c128_152 = arith.constant 128 : index
    %c0_153 = arith.constant 0 : index
    %183 = vector.load %arg8[%c128_152, %c0_153] : memref<288x256xf32, #tpu.memory_space<vmem>>, vector<32x256xf32>
    tpu.vector_store %arg8[%c128_152, %c0_153], %182 {strides = array<i32>} : memref<288x256xf32, #tpu.memory_space<vmem>>, vector<32x256xf32>,
    %c255_i32_154 = arith.constant 255 : i32
    %184 = tpu.dynamic_rotate %159 by %c255_i32_154 dim 1 : vector<32x256xf32>, i32 -> vector<32x256xf32>
    %c5_155 = arith.constant 5 : index
    %c0_156 = arith.constant 0 : index
    %185 = vector.load %arg6[%c5_155, %c0_156] : memref<9x256xf32, #tpu.memory_space<vmem>>, vector<1x256xf32>
    %186 = vector.broadcast %185 : vector<1x256xf32> to vector<32x256xf32>
    %187 = arith.mulf %184, %186 : vector<32x256xf32>
    %c160_157 = arith.constant 160 : index
    %c0_158 = arith.constant 0 : index
    %188 = vector.load %arg8[%c160_157, %c0_158] : memref<288x256xf32, #tpu.memory_space<vmem>>, vector<32x256xf32>
    tpu.vector_store %arg8[%c160_157, %c0_158], %187 {strides = array<i32>} : memref<288x256xf32, #tpu.memory_space<vmem>>, vector<32x256xf32>,
    %c241_i32_159 = arith.constant 241 : i32
    %189 = tpu.dynamic_rotate %159 by %c241_i32_159 dim 1 : vector<32x256xf32>, i32 -> vector<32x256xf32>
    %c6_160 = arith.constant 6 : index
    %c0_161 = arith.constant 0 : index
    %190 = vector.load %arg6[%c6_160, %c0_161] : memref<9x256xf32, #tpu.memory_space<vmem>>, vector<1x256xf32>
    %191 = vector.broadcast %190 : vector<1x256xf32> to vector<32x256xf32>
    %192 = arith.mulf %189, %191 : vector<32x256xf32>
    %c192_162 = arith.constant 192 : index
    %c0_163 = arith.constant 0 : index
    %193 = vector.load %arg8[%c192_162, %c0_163] : memref<288x256xf32, #tpu.memory_space<vmem>>, vector<32x256xf32>
    tpu.vector_store %arg8[%c192_162, %c0_163], %192 {strides = array<i32>} : memref<288x256xf32, #tpu.memory_space<vmem>>, vector<32x256xf32>,
    %c240_i32_164 = arith.constant 240 : i32
    %194 = tpu.dynamic_rotate %159 by %c240_i32_164 dim 1 : vector<32x256xf32>, i32 -> vector<32x256xf32>
    %c7_165 = arith.constant 7 : index
    %c0_166 = arith.constant 0 : index
    %195 = vector.load %arg6[%c7_165, %c0_166] : memref<9x256xf32, #tpu.memory_space<vmem>>, vector<1x256xf32>
    %196 = vector.broadcast %195 : vector<1x256xf32> to vector<32x256xf32>
    %197 = arith.mulf %194, %196 : vector<32x256xf32>
    %c224_167 = arith.constant 224 : index
    %c0_168 = arith.constant 0 : index
    %198 = vector.load %arg8[%c224_167, %c0_168] : memref<288x256xf32, #tpu.memory_space<vmem>>, vector<32x256xf32>
    tpu.vector_store %arg8[%c224_167, %c0_168], %197 {strides = array<i32>} : memref<288x256xf32, #tpu.memory_space<vmem>>, vector<32x256xf32>,
    %c239_i32_169 = arith.constant 239 : i32
    %199 = tpu.dynamic_rotate %159 by %c239_i32_169 dim 1 : vector<32x256xf32>, i32 -> vector<32x256xf32>
    %c8_170 = arith.constant 8 : index
    %c0_171 = arith.constant 0 : index
    %200 = vector.load %arg6[%c8_170, %c0_171] : memref<9x256xf32, #tpu.memory_space<vmem>>, vector<1x256xf32>
    %201 = vector.broadcast %200 : vector<1x256xf32> to vector<32x256xf32>
    %202 = arith.mulf %199, %201 : vector<32x256xf32>
    %c256_172 = arith.constant 256 : index
    %c0_173 = arith.constant 0 : index
    %203 = vector.load %arg8[%c256_172, %c0_173] : memref<288x256xf32, #tpu.memory_space<vmem>>, vector<32x256xf32>
    tpu.vector_store %arg8[%c256_172, %c0_173], %202 {strides = array<i32>} : memref<288x256xf32, #tpu.memory_space<vmem>>, vector<32x256xf32>,
    %c2_174 = arith.constant 2 : index
    %c0_175 = arith.constant 0 : index
    %c0_176 = arith.constant 0 : index
    %204 = vector.load %arg3[%c2_174, %c0_175, %c0_176] : memref<4x32x288xf32, #tpu.memory_space<vmem>>, vector<1x32x288xf32>
    %205 = vector.shape_cast %204 : vector<1x32x288xf32> to vector<32x288xf32>
    %c0_177 = arith.constant 0 : index
    %c0_178 = arith.constant 0 : index
    %206 = vector.load %arg8[%c0_177, %c0_178] : memref<288x256xf32, #tpu.memory_space<vmem>>, vector<288x256xf32>
    %cst_179 = arith.constant dense<0.000000e+00> : vector<32x256xf32>
    %207 = tpu.matmul %205, %206, %cst_179 {dimension_numbers = #tpu.dot_dimension_numbers<[1], [0], [0], [1], [0, 0, 1, 1], [], []>} : vector<32x288xf32>, vector<288x256xf32>, vector<32x256xf32> -> vector<32x256xf32>
    %c0_180 = arith.constant 0 : index
    %c3_181 = arith.constant 3 : index
    %208 = vector.load %arg5[%c0_180, %c3_181] : memref<32x6xf32, #tpu.memory_space<vmem>>, vector<32x1xf32>
    %209 = vector.broadcast %208 : vector<32x1xf32> to vector<32x256xf32>
    %210 = arith.addf %207, %209 : vector<32x256xf32>
    %cst_182 = arith.constant 0.000000e+00 : f32
    %211 = vector.broadcast %cst_182 : f32 to vector<32x256xf32>
    %212 = arith.maximumf %210, %211 : vector<32x256xf32>
    %c17_i32_183 = arith.constant 17 : i32
    %213 = tpu.dynamic_rotate %212 by %c17_i32_183 dim 1 : vector<32x256xf32>, i32 -> vector<32x256xf32>
    %c0_184 = arith.constant 0 : index
    %c0_185 = arith.constant 0 : index
    %214 = vector.load %arg6[%c0_184, %c0_185] : memref<9x256xf32, #tpu.memory_space<vmem>>, vector<1x256xf32>
    %215 = vector.broadcast %214 : vector<1x256xf32> to vector<32x256xf32>
    %216 = arith.mulf %213, %215 : vector<32x256xf32>
    %c0_186 = arith.constant 0 : index
    %c0_187 = arith.constant 0 : index
    %217 = vector.load %arg8[%c0_186, %c0_187] : memref<288x256xf32, #tpu.memory_space<vmem>>, vector<32x256xf32>
    tpu.vector_store %arg8[%c0_186, %c0_187], %216 {strides = array<i32>} : memref<288x256xf32, #tpu.memory_space<vmem>>, vector<32x256xf32>,
    %c16_i32_188 = arith.constant 16 : i32
    %218 = tpu.dynamic_rotate %212 by %c16_i32_188 dim 1 : vector<32x256xf32>, i32 -> vector<32x256xf32>
    %c1_189 = arith.constant 1 : index
    %c0_190 = arith.constant 0 : index
    %219 = vector.load %arg6[%c1_189, %c0_190] : memref<9x256xf32, #tpu.memory_space<vmem>>, vector<1x256xf32>
    %220 = vector.broadcast %219 : vector<1x256xf32> to vector<32x256xf32>
    %221 = arith.mulf %218, %220 : vector<32x256xf32>
    %c32_191 = arith.constant 32 : index
    %c0_192 = arith.constant 0 : index
    %222 = vector.load %arg8[%c32_191, %c0_192] : memref<288x256xf32, #tpu.memory_space<vmem>>, vector<32x256xf32>
    tpu.vector_store %arg8[%c32_191, %c0_192], %221 {strides = array<i32>} : memref<288x256xf32, #tpu.memory_space<vmem>>, vector<32x256xf32>,
    %c15_i32_193 = arith.constant 15 : i32
    %223 = tpu.dynamic_rotate %212 by %c15_i32_193 dim 1 : vector<32x256xf32>, i32 -> vector<32x256xf32>
    %c2_194 = arith.constant 2 : index
    %c0_195 = arith.constant 0 : index
    %224 = vector.load %arg6[%c2_194, %c0_195] : memref<9x256xf32, #tpu.memory_space<vmem>>, vector<1x256xf32>
    %225 = vector.broadcast %224 : vector<1x256xf32> to vector<32x256xf32>
    %226 = arith.mulf %223, %225 : vector<32x256xf32>
    %c64_196 = arith.constant 64 : index
    %c0_197 = arith.constant 0 : index
    %227 = vector.load %arg8[%c64_196, %c0_197] : memref<288x256xf32, #tpu.memory_space<vmem>>, vector<32x256xf32>
    tpu.vector_store %arg8[%c64_196, %c0_197], %226 {strides = array<i32>} : memref<288x256xf32, #tpu.memory_space<vmem>>, vector<32x256xf32>,
    %c1_i32_198 = arith.constant 1 : i32
    %228 = tpu.dynamic_rotate %212 by %c1_i32_198 dim 1 : vector<32x256xf32>, i32 -> vector<32x256xf32>
    %c3_199 = arith.constant 3 : index
    %c0_200 = arith.constant 0 : index
    %229 = vector.load %arg6[%c3_199, %c0_200] : memref<9x256xf32, #tpu.memory_space<vmem>>, vector<1x256xf32>
    %230 = vector.broadcast %229 : vector<1x256xf32> to vector<32x256xf32>
    %231 = arith.mulf %228, %230 : vector<32x256xf32>
    %c96_201 = arith.constant 96 : index
    %c0_202 = arith.constant 0 : index
    %232 = vector.load %arg8[%c96_201, %c0_202] : memref<288x256xf32, #tpu.memory_space<vmem>>, vector<32x256xf32>
    tpu.vector_store %arg8[%c96_201, %c0_202], %231 {strides = array<i32>} : memref<288x256xf32, #tpu.memory_space<vmem>>, vector<32x256xf32>,
    %c4_203 = arith.constant 4 : index
    %c0_204 = arith.constant 0 : index
    %233 = vector.load %arg6[%c4_203, %c0_204] : memref<9x256xf32, #tpu.memory_space<vmem>>, vector<1x256xf32>
    %234 = vector.broadcast %233 : vector<1x256xf32> to vector<32x256xf32>
    %235 = arith.mulf %212, %234 : vector<32x256xf32>
    %c128_205 = arith.constant 128 : index
    %c0_206 = arith.constant 0 : index
    %236 = vector.load %arg8[%c128_205, %c0_206] : memref<288x256xf32, #tpu.memory_space<vmem>>, vector<32x256xf32>
    tpu.vector_store %arg8[%c128_205, %c0_206], %235 {strides = array<i32>} : memref<288x256xf32, #tpu.memory_space<vmem>>, vector<32x256xf32>,
    %c255_i32_207 = arith.constant 255 : i32
    %237 = tpu.dynamic_rotate %212 by %c255_i32_207 dim 1 : vector<32x256xf32>, i32 -> vector<32x256xf32>
    %c5_208 = arith.constant 5 : index
    %c0_209 = arith.constant 0 : index
    %238 = vector.load %arg6[%c5_208, %c0_209] : memref<9x256xf32, #tpu.memory_space<vmem>>, vector<1x256xf32>
    %239 = vector.broadcast %238 : vector<1x256xf32> to vector<32x256xf32>
    %240 = arith.mulf %237, %239 : vector<32x256xf32>
    %c160_210 = arith.constant 160 : index
    %c0_211 = arith.constant 0 : index
    %241 = vector.load %arg8[%c160_210, %c0_211] : memref<288x256xf32, #tpu.memory_space<vmem>>, vector<32x256xf32>
    tpu.vector_store %arg8[%c160_210, %c0_211], %240 {strides = array<i32>} : memref<288x256xf32, #tpu.memory_space<vmem>>, vector<32x256xf32>,
    %c241_i32_212 = arith.constant 241 : i32
    %242 = tpu.dynamic_rotate %212 by %c241_i32_212 dim 1 : vector<32x256xf32>, i32 -> vector<32x256xf32>
    %c6_213 = arith.constant 6 : index
    %c0_214 = arith.constant 0 : index
    %243 = vector.load %arg6[%c6_213, %c0_214] : memref<9x256xf32, #tpu.memory_space<vmem>>, vector<1x256xf32>
    %244 = vector.broadcast %243 : vector<1x256xf32> to vector<32x256xf32>
    %245 = arith.mulf %242, %244 : vector<32x256xf32>
    %c192_215 = arith.constant 192 : index
    %c0_216 = arith.constant 0 : index
    %246 = vector.load %arg8[%c192_215, %c0_216] : memref<288x256xf32, #tpu.memory_space<vmem>>, vector<32x256xf32>
    tpu.vector_store %arg8[%c192_215, %c0_216], %245 {strides = array<i32>} : memref<288x256xf32, #tpu.memory_space<vmem>>, vector<32x256xf32>,
    %c240_i32_217 = arith.constant 240 : i32
    %247 = tpu.dynamic_rotate %212 by %c240_i32_217 dim 1 : vector<32x256xf32>, i32 -> vector<32x256xf32>
    %c7_218 = arith.constant 7 : index
    %c0_219 = arith.constant 0 : index
    %248 = vector.load %arg6[%c7_218, %c0_219] : memref<9x256xf32, #tpu.memory_space<vmem>>, vector<1x256xf32>
    %249 = vector.broadcast %248 : vector<1x256xf32> to vector<32x256xf32>
    %250 = arith.mulf %247, %249 : vector<32x256xf32>
    %c224_220 = arith.constant 224 : index
    %c0_221 = arith.constant 0 : index
    %251 = vector.load %arg8[%c224_220, %c0_221] : memref<288x256xf32, #tpu.memory_space<vmem>>, vector<32x256xf32>
    tpu.vector_store %arg8[%c224_220, %c0_221], %250 {strides = array<i32>} : memref<288x256xf32, #tpu.memory_space<vmem>>, vector<32x256xf32>,
    %c239_i32_222 = arith.constant 239 : i32
    %252 = tpu.dynamic_rotate %212 by %c239_i32_222 dim 1 : vector<32x256xf32>, i32 -> vector<32x256xf32>
    %c8_223 = arith.constant 8 : index
    %c0_224 = arith.constant 0 : index
    %253 = vector.load %arg6[%c8_223, %c0_224] : memref<9x256xf32, #tpu.memory_space<vmem>>, vector<1x256xf32>
    %254 = vector.broadcast %253 : vector<1x256xf32> to vector<32x256xf32>
    %255 = arith.mulf %252, %254 : vector<32x256xf32>
    %c256_225 = arith.constant 256 : index
    %c0_226 = arith.constant 0 : index
    %256 = vector.load %arg8[%c256_225, %c0_226] : memref<288x256xf32, #tpu.memory_space<vmem>>, vector<32x256xf32>
    tpu.vector_store %arg8[%c256_225, %c0_226], %255 {strides = array<i32>} : memref<288x256xf32, #tpu.memory_space<vmem>>, vector<32x256xf32>,
    %c3_227 = arith.constant 3 : index
    %c0_228 = arith.constant 0 : index
    %c0_229 = arith.constant 0 : index
    %257 = vector.load %arg3[%c3_227, %c0_228, %c0_229] : memref<4x32x288xf32, #tpu.memory_space<vmem>>, vector<1x32x288xf32>
    %258 = vector.shape_cast %257 : vector<1x32x288xf32> to vector<32x288xf32>
    %c0_230 = arith.constant 0 : index
    %c0_231 = arith.constant 0 : index
    %259 = vector.load %arg8[%c0_230, %c0_231] : memref<288x256xf32, #tpu.memory_space<vmem>>, vector<288x256xf32>
    %cst_232 = arith.constant dense<0.000000e+00> : vector<32x256xf32>
    %260 = tpu.matmul %258, %259, %cst_232 {dimension_numbers = #tpu.dot_dimension_numbers<[1], [0], [0], [1], [0, 0, 1, 1], [], []>} : vector<32x288xf32>, vector<288x256xf32>, vector<32x256xf32> -> vector<32x256xf32>
    %c0_233 = arith.constant 0 : index
    %c4_234 = arith.constant 4 : index
    %261 = vector.load %arg5[%c0_233, %c4_234] : memref<32x6xf32, #tpu.memory_space<vmem>>, vector<32x1xf32>
    %262 = vector.broadcast %261 : vector<32x1xf32> to vector<32x256xf32>
    %263 = arith.addf %260, %262 : vector<32x256xf32>
    %cst_235 = arith.constant 0.000000e+00 : f32
    %264 = vector.broadcast %cst_235 : f32 to vector<32x256xf32>
    %265 = arith.maximumf %263, %264 : vector<32x256xf32>
    %c0_236 = arith.constant 0 : index
    %c0_237 = arith.constant 0 : index
    %266 = vector.load %arg4[%c0_236, %c0_237] : memref<1x32xf32, #tpu.memory_space<vmem>>, vector<1x32xf32>
    %cst_238 = arith.constant dense<0.000000e+00> : vector<1x256xf32>
    %267 = tpu.matmul %266, %265, %cst_238 {dimension_numbers = #tpu.dot_dimension_numbers<[1], [0], [0], [1], [0, 0, 1, 1], [], []>} : vector<1x32xf32>, vector<32x256xf32>, vector<1x256xf32> -> vector<1x256xf32>
    %c0_239 = arith.constant 0 : index
    %c5_240 = arith.constant 5 : index
    %268 = vector.load %arg5[%c0_239, %c5_240] : memref<32x6xf32, #tpu.memory_space<vmem>>, vector<1x1xf32>
    %269 = vector.broadcast %268 : vector<1x1xf32> to vector<1x256xf32>
    %270 = arith.addf %267, %269 : vector<1x256xf32>
    %c0_241 = arith.constant 0 : index
    %c0_242 = arith.constant 0 : index
    %c0_243 = arith.constant 0 : index
    %271 = vector.load %arg7[%c0_241, %c0_242, %c0_243] : memref<1x1x256xf32, #tpu.memory_space<vmem>>, vector<1x1x256xf32>
    %272 = vector.shape_cast %271 : vector<1x1x256xf32> to vector<1x256xf32>
    %273 = vector.shape_cast %270 : vector<1x256xf32> to vector<1x1x256xf32>
    tpu.vector_store %arg7[%c0_241, %c0_242, %c0_243], %273 {strides = array<i32>} : memref<1x1x256xf32, #tpu.memory_space<vmem>>, vector<1x1x256xf32>,
    return
  }
  func.func @transform_0(%arg0: i32) -> (i32, i32, i32) {
    %c0_i32 = arith.constant 0 : i32
    %c0_i32_0 = arith.constant 0 : i32
    %c0_i32_1 = arith.constant 0 : i32
    return %arg0, %c0_i32, %c0_i32_0 : i32, i32, i32
  }
  func.func @transform_1(%arg0: i32) -> (i32, i32) {
    %c0_i32 = arith.constant 0 : i32
    %c0_i32_0 = arith.constant 0 : i32
    %c0_i32_1 = arith.constant 0 : i32
    return %c0_i32, %c0_i32_0 : i32, i32
  }
  func.func @transform_2(%arg0: i32) -> (i32, i32, i32) {
    %c0_i32 = arith.constant 0 : i32
    %c0_i32_0 = arith.constant 0 : i32
    %c0_i32_1 = arith.constant 0 : i32
    %c0_i32_2 = arith.constant 0 : i32
    return %c0_i32, %c0_i32_0, %c0_i32_1 : i32, i32, i32
  }
  func.func @transform_3(%arg0: i32) -> (i32, i32) {
    %c0_i32 = arith.constant 0 : i32
    %c0_i32_0 = arith.constant 0 : i32
    %c0_i32_1 = arith.constant 0 : i32
    return %c0_i32, %c0_i32_0 : i32, i32
  }
  func.func @transform_4(%arg0: i32) -> (i32, i32) {
    %c0_i32 = arith.constant 0 : i32
    %c0_i32_0 = arith.constant 0 : i32
    %c0_i32_1 = arith.constant 0 : i32
    return %c0_i32, %c0_i32_0 : i32, i32
  }
  func.func @transform_5(%arg0: i32) -> (i32, i32) {
    %c0_i32 = arith.constant 0 : i32
    %c0_i32_0 = arith.constant 0 : i32
    %c0_i32_1 = arith.constant 0 : i32
    return %c0_i32, %c0_i32_0 : i32, i32
  }
  func.func @transform_6(%arg0: i32) -> (i32, i32, i32) {
    %c0_i32 = arith.constant 0 : i32
    %c0_i32_0 = arith.constant 0 : i32
    %c0_i32_1 = arith.constant 0 : i32
    return %arg0, %c0_i32, %c0_i32_0 : i32, i32, i32
  }
}

</mosaic_0001>

<bundles_post_ra>
// kernel: test_net_forward.1
= control target key start
LH: loop header
LB: loop body
LE: loop exit
PB: predicated region body
PF: predicated region fallthrough
CT: control target
= control target key end

     0   :  { %11 = vsyncpa [#allocation4], 0  ;;  %s4021_s21 = smov 0   ;;  %s6107_s0 = inlined_call_operand.vmem [shape: f32[2,8,256], index: 0, kind: input, shape index: {}]   ;;  %s6108_s1 = inlined_call_operand.vmem [shape: f32[32,72], index: 1, kind: input, shape index: {}]   ;;  %s6109_s2 = inlined_call_operand.hbm [shape: f32[4,32,288], index: 2, kind: input, shape index: {}]   ;;  %s6110_s3 = inlined_call_operand.vmem [shape: f32[1,32], index: 3, kind: input, shape index: {}]   ;;  %s6111_s4 = inlined_call_operand.vmem [shape: f32[32,6], index: 4, kind: input, shape index: {}]   ;;  %s6112_s5 = inlined_call_operand.vmem [shape: f32[9,256], index: 5, kind: input, shape index: {}]   ;;  %s6113_s6 = inlined_call_operand.vmem [shape: f32[2,1,256], index: 6, kind: output, shape index: {}]  }
   0x1 LB: > { %s3806_s22 = sadd.s32 4294967295, %s3965_s21   ;;  %p3808_p0 = scmp.ge.s32.totalorder %s3965_s21, 1  ;;  %s3965_s21 = sphi %s4021_s21, %s17_s21  }
   0x2   : > { %p179_p1 = scmp.lt.s32.totalorder %s3965_s21, 3  ;;  %s3967_s23 = smov [#allocation3]  }
   0x3   : > { %s194_s24 = sshll.u32 %s3967_s23, 4  ;;  %p3888_p3 = scmp.eq.s32.totalorder %s3806_s22, 0  ;;  %s195_s24 = int_to_ptr.vmem [resolvable:$true] %s194_s24 }
   0x4   : > { %p4029_p2 = pnand %p3808_p0, %p179_p1  ;;  %s3940_s26 = scalar_lea.vmem %s195_s24, 6144 }
   0x5   : > { %p3941_p7 = scmp.ne.s32.totalorder %s195_s24, %s3940_s26  ;;  %p3948_p10 = scmp.lt.s32.totalorder %s195_s24, %s195_s24 }
   0x6   : > { %p3884_p4 = pneg %p4029_p2  ;;  %p3949_p11 = scmp.lt.s32.totalorder %s3940_s26, %s3940_s26 }
   0x8   : > { %p3885_p5 = pnand %p3888_p3, %p3884_p4  ;;  %p3950_p12 = por %p3949_p11, %p3948_p10 }
   0xa   : > { %p3931_p6 = pneg %p3885_p5 }
   0xc   : > { %p3943_p8 = pnand %p3941_p7, %p3931_p6 }
   0xe   : > { %p3944_p9 = pneg %p3943_p8 }
  0x10   : > { %p3951_p13 = pnand %p3950_p12, %p3944_p9 }
  0x12   : > { %3954 = shalt.err (!%p3951_p13)
}
  0x13   : > { %s3968_s27 = smov 384   ;;  %s3969_s28 = smov 24  }
  0x14   : > { %3887 = dma.hbm_to_vmem [thread:$0]  (!%p3885_p5), %s6109_s2, 6144, %s195_s24, [#allocation4], %s3968_s27, %s3968_s27, %s3969_s28  }
  0x15   : > { %227 = sbr.rel (%p4029_p2) target bundleno = 2376 (0x948), region = 44 }
  0x1a   : > { %3960 = dma.done.wait (%p3888_p3), [#allocation4], 6144  }
  0x1b   : > { %3962 = vsyncadd (%p3888_p3), [#allocation4], 4294961152  ;;  %p256_p0 = scmp.lt.s32.totalorder %s3806_s22, 1  ;;  %s3970_s11 = smov 112   ;;  %v3975_v2 = vmov 0.0   ;;  %v4089_v3 = vld [vmem:[%s6111_s4 + $0x18] sm:$0xff]  ;;  %v6114_v8 = vlaneseq }
  0x1c   : > { %s3971_s12 = smov 111   ;;  %s3972_s13 = smov 113   ;;  %600 = vmatprep.mubr.f32.mxu0 %v3975_v2  ;;  %v4094_v4 = vld [vmem:[%s6111_s4 + $0x10] sm:$0xff]  ;;  %v3979_v5 = vmov 0   ;;  %v4101_v6 = vld [vmem:[%s6111_s4] sm:$0xff]  ;;  %v4106_v7 = vld [vmem:[%s6111_s4 + $0x8] sm:$0xff] }
  0x1d   : > { %s6118_s22 = smov (!%p256_p0, %s3806_s22), 1  ;;  %s3973_s14 = smov 127   ;;  %3917 = vset.pattern.permute.xlu0 %v3979_v5  ;;  %3918 = vset.pattern.permute.xlu1 %v3979_v5  ;;  %v4111_v9 = vshrl.u32 %v6114_v8, 7  ;;  %v4114_v10 = vand.u32 127, %v6114_v8  ;;  %vm523_vm8 = vcmask 588800   ;;  %vm1185_vm9 = vcmask 261120  }
  0x1e   : > { %s3879_s7 = sshll.u32 %s6118_s22, 4  ;;  %s3974_s15 = smov 1   ;;  %v3823_v13 = vld [vmem:[%s6112_s5 + $0x10] ss:$8 sm:$0x3] }
  0x1f   : > { %s260_s10 = scalar_lea.vmem %s6107_s0, %s3879_s7  ;;  %s3976_s16 = smov 15   ;;  %v4117_v11 = vsub.s32 0, %v4111_v9  ;;  %v4120_v12 = vsub.s32 1, %v4111_v9  ;;  %v3822_v16 = vld [vmem:[%s6112_s5 + $0x7] ss:$8 sm:$0x3] }
  0x20   : > { %v4049_v0 = vld [vmem:[%s260_s10] sm:$0xff]  ;;  %v4055_v1 = vld [vmem:[%s260_s10 + $0x8] sm:$0xff]  ;;  %s3977_s17 = smov 16   ;;  %s3978_s18 = smov 17   ;;  %vm433_vm0 = vcmp.lt.s32.totalorder %v4114_v10, 112  ;;  %vm457_vm1 = vcmp.lt.s32.totalorder %v4114_v10, 111 }
  0x21   : > { %429 = vrot.lane.b32.xlu1 %v4049_v0, %s3970_s11  ;;  %453 = vrot.lane.b32.xlu0 %v4049_v0, %s3971_s12  ;;  %v470_v17 = vrot.slane %v3823_v13, %v4120_v12  ;;  %v466_v18 = vrot.slane %v3823_v13, %v4117_v11  ;;  %v3821_v19 = vld [vmem:[%s6112_s5 + $0x6] ss:$8 sm:$0x3]  ;;  %vm409_vm2 = vcmp.lt.s32.totalorder %v4114_v10, 113  ;;  %v446_v22 = vrot.slane %v3822_v16, %v4120_v12  ;;  %s3815_s9 = sshll.u32 %s6118_s22, 1 }
  0x22   : > { %v442_v23 = vrot.slane %v3822_v16, %v4117_v11  ;;  %v422_v27 = vrot.slane %v3821_v19, %v4120_v12  ;;  %v418_v31 = vrot.slane %v3821_v19, %v4117_v11  ;;  %v3820_v32 = vld [vmem:[%s6112_s5 + $0x5] ss:$8 sm:$0x3]  ;;  %v3819_v33 = vld [vmem:[%s6112_s5 + $0x4] ss:$8 sm:$0x3]  ;;  %s264_s20 = scalar_lea.vmem %s6113_s6, %s3815_s9 }
  0x23   : > { %vm385_vm3 = vcmp.lt.s32.totalorder %v4114_v10, 127  ;;  %v398_v40 = vrot.slane %v3820_v32, %v4120_v12  ;;  %v394_v43 = vrot.slane %v3820_v32, %v4117_v11  ;;  %v374_v44 = vrot.slane %v3819_v33, %v4120_v12  ;;  %v3818_v45 = vld [vmem:[%s6112_s5 + $0x3] ss:$8 sm:$0x3] }
  0x24   : > { %v370_v46 = vrot.slane %v3819_v33, %v4117_v11  ;;  %vm344_vm4 = vcmp.lt.s32.totalorder %v4114_v10, 1  ;;  %v357_v51 = vrot.slane %v3818_v45, %v4120_v12  ;;  %v353_v55 = vrot.slane %v3818_v45, %v4117_v11  ;;  %v3817_v57 = vld [vmem:[%s6112_s5 + $0x2] ss:$8 sm:$0x3] }
  0x25   : > { %431 = vrot.lane.b32.xlu1 %v4055_v1, %s3970_s11  ;;  %455 = vrot.lane.b32.xlu0 %v4055_v1, %s3971_s12  ;;  %v378_v54 = vmul.f32 %v374_v44, %v4055_v1  ;;  %vm320_vm5 = vcmp.lt.s32.totalorder %v4114_v10, 15  ;;  %v3816_v5 = vld [vmem:[%s6112_s5 + $0x1] ss:$8 sm:$0x3]  ;;  %vm296_vm6 = vcmp.lt.s32.totalorder %v4114_v10, 16  ;;  %vm273_vm7 = vcmp.lt.s32.totalorder %v4114_v10, 17 }
  0x26   : > { %v377_v56 = vmul.f32 %v370_v46, %v4049_v0  ;;  %v309_v19 = vrot.slane %v3816_v5, %v4120_v12  ;;  %v3338_v10 = vld [vmem:[#allocation3 + $0x158] sm:$0xff] }
  0x29   : > { %407 = vrot.lane.b32.xlu1 %v4055_v1, %s3972_s13  ;;  %405 = vrot.lane.b32.xlu0 %v4049_v0, %s3972_s13 }
  0x2d   : > { %383 = vrot.lane.b32.xlu1 %v4055_v1, %s3973_s14  ;;  %381 = vrot.lane.b32.xlu0 %v4049_v0, %s3973_s14 }
  0x31   : > { %342 = vrot.lane.b32.xlu1 %v4055_v1, %s3974_s15  ;;  %340 = vrot.lane.b32.xlu0 %v4049_v0, %s3974_s15 }
  0x35   : > { %318 = vrot.lane.b32.xlu1 %v4055_v1, %s3976_s16  ;;  %316 = vrot.lane.b32.xlu0 %v4049_v0, %s3976_s16 }
  0x39   : > { %294 = vrot.lane.b32.xlu1 %v4055_v1, %s3977_s17  ;;  %292 = vrot.lane.b32.xlu0 %v4049_v0, %s3977_s17 }
  0x3d   : > { %269 = vrot.lane.b32.xlu1 %v4055_v1, %s3978_s18  ;;  %267 = vrot.lane.b32.xlu0 %v4049_v0, %s3978_s18  ;;  %v333_v0 = vrot.slane %v3817_v57, %v4120_v12  ;;  %v329_v1 = vrot.slane %v3817_v57, %v4117_v11 }
  0x41   : > { %520 = vperm.xlu0 %3917, %v4089_v3   ;;  %515 = vperm.xlu1 %3918, %v4094_v4  }
  0x45   : > { %505 = vperm.xlu0 %3917, %v4101_v6   ;;  %510 = vperm.xlu1 %3918, %v4106_v7  }
  0x93   : > { %v430_v14 = vpop.permute.xlu1 %429  ;;  %v454_v15 = vpop.permute.xlu0 %453 }
  0x97   : > { %v432_v20 = vpop.permute.xlu1 %431  ;;  %v456_v21 = vpop.permute.xlu0 %455 }
  0x98   : > { %v435_v24 = vsel %vm433_vm0, %v432_v20, %v430_v14  ;;  %v459_v25 = vsel %vm457_vm1, %v456_v21, %v454_v15  ;;  %v458_v26 = vsel %vm457_vm1, %v454_v15, %v456_v21  ;;  %v434_v28 = vsel %vm433_vm0, %v430_v14, %v432_v20  ;;  %v276_v21 = vld [vmem:[%s6112_s5] ss:$8 sm:$0x3] }
  0x99   : > { %v474_v29 = vmul.f32 %v470_v17, %v459_v25  ;;  %v473_v30 = vmul.f32 %v466_v18, %v458_v26  ;;  %v450_v36 = vmul.f32 %v446_v22, %v435_v24  ;;  %v449_v39 = vmul.f32 %v442_v23, %v434_v28 }
  0x9a   : > { %v305_v20 = vrot.slane %v3816_v5, %v4117_v11  ;;  %v285_v28 = vrot.slane %v276_v21, %v4120_v12 }
  0x9b   : > { %v408_v34 = vpop.permute.xlu1 %407  ;;  %550 = vmatprep.subr.mxu0 %v474_v29  ;;  %v406_v35 = vpop.permute.xlu0 %405  ;;  %v281_v29 = vrot.slane %v276_v21, %v4117_v11 }
  0x9c   : > { %v410_v37 = vsel %vm409_vm2, %v406_v35, %v408_v34  ;;  %v411_v38 = vsel %vm409_vm2, %v408_v34, %v406_v35  ;;  %551 = vmatpush1.msra.mxu0 %v473_v30 }
  0x9d   : > { %552 = vmatprep.subr.mxu0 %v450_v36  ;;  %v426_v41 = vmul.f32 %v422_v27, %v411_v38  ;;  %v425_v42 = vmul.f32 %v418_v31, %v410_v37  ;;  %v477_v36 = vld [vmem:[%s6108_s1] sm:$0xff]  ;;  %v478_v37 = vld [vmem:[%s6108_s1 + $0x8] sm:$0xff]  ;;  %v479_v38 = vld [vmem:[%s6108_s1 + $0x10] sm:$0xff] }
  0x9e   : > { %553 = vmatpush1.msra.mxu0 %v449_v39  ;;  %v480_v39 = vld [vmem:[%s6108_s1 + $0x18] sm:$0xff] }
  0x9f   : > { %v384_v47 = vpop.permute.xlu1 %383  ;;  %554 = vmatprep.subr.mxu0 %v426_v41  ;;  %v382_v48 = vpop.permute.xlu0 %381 }
  0xa0   : > { %v386_v49 = vsel %vm385_vm3, %v382_v48, %v384_v47  ;;  %v387_v50 = vsel %vm385_vm3, %v384_v47, %v382_v48  ;;  %555 = vmatpush1.msra.mxu0 %v425_v42 }
  0xa1   : > { %v402_v52 = vmul.f32 %v398_v40, %v387_v50  ;;  %v401_v53 = vmul.f32 %v394_v43, %v386_v49 }
  0xa3   : > { %v343_v58 = vpop.permute.xlu1 %342  ;;  %556 = vmatprep.subr.mxu0 %v402_v52  ;;  %v341_v59 = vpop.permute.xlu0 %340 }
  0xa4   : > { %v345_v60 = vsel %vm344_vm4, %v341_v59, %v343_v58  ;;  %v346_v61 = vsel %vm344_vm4, %v343_v58, %v341_v59  ;;  %557 = vmatpush1.msra.mxu0 %v401_v53 }
  0xa5   : > { %558 = vmatprep.subr.mxu0 %v378_v54  ;;  %v361_v62 = vmul.f32 %v357_v51, %v345_v60  ;;  %v360_v63 = vmul.f32 %v353_v55, %v346_v61 }
  0xa6   : > { %559 = vmatpush1.msra.mxu0 %v377_v56 }
  0xa7   : > { %v319_v13 = vpop.permute.xlu1 %318  ;;  %v317_v14 = vpop.permute.xlu0 %316  ;;  %560 = vmatprep.subr.mxu0 %v361_v62 }
  0xa8   : > { %v321_v15 = vsel %vm320_vm5, %v317_v14, %v319_v13  ;;  %v322_v16 = vsel %vm320_vm5, %v319_v13, %v317_v14  ;;  %561 = vmatpush1.msra.mxu0 %v360_v63 }
  0xa9   : > { %v337_v17 = vmul.f32 %v333_v0, %v321_v15  ;;  %v336_v18 = vmul.f32 %v329_v1, %v322_v16  ;;  %v1078_v15 = vld [vmem:[#allocation3 + $0x8] sm:$0xff] }
  0xaa   : > { %1262 = vmatprep.mubr.f32.mxu1 %v1078_v15  ;;  %v3829_v15 = vld [vmem:[%s6112_s5 + $0x2] ss:$8 sm:$0x3] }
  0xab   : > { %v295_v22 = vpop.permute.xlu1 %294  ;;  %v293_v23 = vpop.permute.xlu0 %292  ;;  %562 = vmatprep.subr.mxu0 %v337_v17 }
  0xac   : > { %v297_v24 = vsel %vm296_vm6, %v293_v23, %v295_v22  ;;  %v298_v25 = vsel %vm296_vm6, %v295_v22, %v293_v23  ;;  %563 = vmatpush1.msra.mxu0 %v336_v18 }
  0xad   : > { %v313_v26 = vmul.f32 %v309_v19, %v297_v24  ;;  %v312_v27 = vmul.f32 %v305_v20, %v298_v25  ;;  %v3980_v24 = vmov 1  }
  0xae   : > { %3919 = vset.pattern.permute.xlu1 %v3980_v24  ;;  %3920 = vset.pattern.permute.xlu0 %v3980_v24 }
  0xaf   : > { %v270_v30 = vpop.permute.xlu1 %269  ;;  %v268_v31 = vpop.permute.xlu0 %267  ;;  %564 = vmatprep.subr.mxu0 %v313_v26 }
  0xb0   : > { %v274_v32 = vsel %vm273_vm7, %v268_v31, %v270_v30  ;;  %v275_v33 = vsel %vm273_vm7, %v270_v30, %v268_v31  ;;  %565 = vmatpush1.msra.mxu0 %v312_v27 }
  0xb1   : > { %v289_v34 = vmul.f32 %v285_v28, %v274_v32  ;;  %v288_v35 = vmul.f32 %v281_v29, %v275_v33 }
  0xb3   : > { %566 = vmatprep.subr.mxu0 %v289_v34 }
  0xb4   : > { %567 = vmatpush1.msra.mxu0 %v288_v35 }
  0xb5   : > { %3824 = vmatmul.mubr.msk.f32.vlgmr.msra.gmra.mxu0 %vm523_vm8, %v477_v36 }
  0xb6   : > { %606 = vmatprep.mubr.f32.mxu0 %v3975_v2 }
  0xb9   : > { %3825 = vmatmul.mubr.msk.f32.gmra.mxu0 %vm523_vm8, %v478_v37 }
  0xba   : > { %612 = vmatprep.mubr.f32.mxu0 %v3975_v2 }
  0xbc   : > { %v521_v40 = vpop.permute.xlu0 %520  ;;  %v516_v48 = vpop.permute.xlu1 %515 }
  0xbd   : > { %3826 = vmatmul.mubr.msk.f32.gmra.mxu0 %vm523_vm8, %v479_v38 }
  0xbe   : > { %618 = vmatprep.mubr.f32.mxu0 %v3975_v2 }
  0xc0   : > { %v506_v41 = vpop.permute.xlu0 %505  ;;  %v511_v50 = vpop.permute.xlu1 %510 }
  0xc1   : > { %3827 = vmatmul.mubr.msk.f32.gmra.mxu0 %vm523_vm8, %v480_v39 }
  0xc2   : > { %1351 = vmatprep.mubr.f32.mxu0 %v3975_v2 }
 0x175   : > { %v602_v42 = vpop.f32.mrf.mxu0 }
 0x176   : > { %v603_v43 = vadd.f32 %v602_v42, %v506_v41  ;;  %v3830_v42 = vld [vmem:[%s6112_s5 + $0x3] ss:$8 sm:$0x3] }
 0x177   : > { %v604_v44 = vpop.f32.mrf.mxu0 }
 0x178   : > { %v4225_v45 = vmax.f32 %v603_v43, 0.0  ;;  %v605_v46 = vadd.f32 %v604_v44, %v506_v41 }
 0x179   : > { %v608_v49 = vpop.f32.mrf.mxu0 }
 0x17a   : > { %v4227_v47 = vmax.f32 %v605_v46, 0.0  ;;  %789 = vrot.lane.b32.xlu1 %v4225_v45, %s3974_s15  ;;  %v609_v51 = vadd.f32 %v608_v49, %v511_v50  ;;  %v822_v46 = vrot.slane %v3830_v42, %v4120_v12 }
 0x17b   : > { %v610_v52 = vpop.f32.mrf.mxu0 }
 0x17c   : > { %797 = vrot.lane.b32.xlu0 %v4227_v47, %s3974_s15  ;;  %v611_v53 = vadd.f32 %v610_v52, %v511_v50  ;;  %v4247_v54 = vmax.f32 %v609_v51, 0.0 }
 0x17d   : > { %v614_v56 = vpop.f32.mrf.mxu0 }
 0x17e   : > { %737 = vrot.lane.b32.xlu1 %v4225_v45, %s3976_s16  ;;  %v4251_v55 = vmax.f32 %v611_v53, 0.0  ;;  %v615_v57 = vadd.f32 %v614_v56, %v516_v48 }
 0x17f   : > { %v616_v58 = vpop.f32.mrf.mxu0 }
 0x180   : > { %745 = vrot.lane.b32.xlu0 %v4227_v47, %s3976_s16  ;;  %v617_v59 = vadd.f32 %v616_v58, %v516_v48  ;;  %v4271_v60 = vmax.f32 %v615_v57, 0.0  ;;  %v818_v48 = vrot.slane %v3830_v42, %v4117_v11 }
 0x181   : > { %v620_v62 = vpop.f32.mrf.mxu0 }
 0x182   : > { %685 = vrot.lane.b32.xlu1 %v4225_v45, %s3977_s17  ;;  %v4275_v61 = vmax.f32 %v617_v59, 0.0  ;;  %v621_v0 = vadd.f32 %v620_v62, %v521_v40 }
 0x183   : > { %v622_v63 = vpop.f32.mrf.mxu0 }
 0x184   : > { %693 = vrot.lane.b32.xlu0 %v4227_v47, %s3977_s17  ;;  %v623_v1 = vadd.f32 %v622_v63, %v521_v40  ;;  %v4295_v5 = vmax.f32 %v621_v0, 0.0 }
 0x186   : > { %633 = vrot.lane.b32.xlu1 %v4225_v45, %s3978_s18  ;;  %v4299_v13 = vmax.f32 %v623_v1, 0.0 }
 0x188   : > { %641 = vrot.lane.b32.xlu0 %v4227_v47, %s3978_s18 }
 0x18a   : > { %973 = vrot.lane.b32.xlu1 %v4225_v45, %s3970_s11 }
 0x18c   : > { %981 = vrot.lane.b32.xlu0 %v4227_v47, %s3970_s11 }
 0x18e   : > { %791 = vrot.lane.b32.xlu1 %v4247_v54, %s3974_s15 }
 0x190   : > { %799 = vrot.lane.b32.xlu0 %v4251_v55, %s3974_s15 }
 0x192   : > { %739 = vrot.lane.b32.xlu1 %v4247_v54, %s3976_s16 }
 0x194   : > { %747 = vrot.lane.b32.xlu0 %v4251_v55, %s3976_s16 }
 0x196   : > { %687 = vrot.lane.b32.xlu1 %v4247_v54, %s3977_s17 }
 0x198   : > { %695 = vrot.lane.b32.xlu0 %v4251_v55, %s3977_s17 }
 0x19a   : > { %635 = vrot.lane.b32.xlu1 %v4247_v54, %s3978_s18 }
 0x19c   : > { %643 = vrot.lane.b32.xlu0 %v4251_v55, %s3978_s18 }
 0x19e   : > { %975 = vrot.lane.b32.xlu1 %v4247_v54, %s3970_s11 }
 0x1a0   : > { %983 = vrot.lane.b32.xlu0 %v4251_v55, %s3970_s11 }
 0x1a2   : > { %793 = vrot.lane.b32.xlu1 %v4271_v60, %s3974_s15 }
 0x1a4   : > { %801 = vrot.lane.b32.xlu0 %v4275_v61, %s3974_s15 }
 0x1a6   : > { %741 = vrot.lane.b32.xlu1 %v4271_v60, %s3976_s16 }
 0x1a8   : > { %749 = vrot.lane.b32.xlu0 %v4275_v61, %s3976_s16 }
 0x1aa   : > { %689 = vrot.lane.b32.xlu1 %v4271_v60, %s3977_s17 }
 0x1ac   : > { %697 = vrot.lane.b32.xlu0 %v4275_v61, %s3977_s17 }
 0x1ae   : > { %637 = vrot.lane.b32.xlu1 %v4271_v60, %s3978_s18 }
 0x1b0   : > { %645 = vrot.lane.b32.xlu0 %v4275_v61, %s3978_s18 }
 0x1b2   : > { %977 = vrot.lane.b32.xlu1 %v4271_v60, %s3970_s11 }
 0x1b4   : > { %985 = vrot.lane.b32.xlu0 %v4275_v61, %s3970_s11 }
 0x1b6   : > { %795 = vrot.lane.b32.xlu1 %v4295_v5, %s3974_s15 }
 0x1b8   : > { %803 = vrot.lane.b32.xlu0 %v4299_v13, %s3974_s15 }
 0x1ba   : > { %925 = vrot.lane.b32.xlu1 %v4271_v60, %s3972_s13 }
 0x1bc   : > { %933 = vrot.lane.b32.xlu0 %v4275_v61, %s3972_s13 }
 0x1be   : > { %743 = vrot.lane.b32.xlu1 %v4295_v5, %s3976_s16 }
 0x1c0   : > { %751 = vrot.lane.b32.xlu0 %v4299_v13, %s3976_s16 }
 0x1c2   : > { %691 = vrot.lane.b32.xlu1 %v4295_v5, %s3977_s17 }
 0x1c4   : > { %931 = vrot.lane.b32.xlu0 %v4251_v55, %s3972_s13 }
 0x1c6   : > { %639 = vrot.lane.b32.xlu1 %v4295_v5, %s3978_s18 }
 0x1c8   : > { %699 = vrot.lane.b32.xlu0 %v4299_v13, %s3977_s17 }
 0x1ca   : > { %979 = vrot.lane.b32.xlu1 %v4295_v5, %s3970_s11 }
 0x1cc   : > { %929 = vrot.lane.b32.xlu0 %v4227_v47, %s3972_s13 }
 0x1ce   : > { %927 = vrot.lane.b32.xlu1 %v4295_v5, %s3972_s13 }
 0x1d0   : > { %647 = vrot.lane.b32.xlu0 %v4299_v13, %s3978_s18 }
 0x1d2   : > { %923 = vrot.lane.b32.xlu1 %v4247_v54, %s3972_s13 }
 0x1d4   : > { %881 = vrot.lane.b32.xlu0 %v4275_v61, %s3973_s14 }
 0x1d6   : > { %921 = vrot.lane.b32.xlu1 %v4225_v45, %s3972_s13 }
 0x1d8   : > { %987 = vrot.lane.b32.xlu0 %v4299_v13, %s3970_s11 }
 0x1da   : > { %875 = vrot.lane.b32.xlu1 %v4295_v5, %s3973_s14 }
 0x1dc   : > { %879 = vrot.lane.b32.xlu0 %v4251_v55, %s3973_s14 }
 0x1de   : > { %873 = vrot.lane.b32.xlu1 %v4271_v60, %s3973_s14 }
 0x1e0   : > { %935 = vrot.lane.b32.xlu0 %v4299_v13, %s3972_s13 }
 0x1e2   : > { %871 = vrot.lane.b32.xlu1 %v4247_v54, %s3973_s14 }
 0x1e4   : > { %877 = vrot.lane.b32.xlu0 %v4227_v47, %s3973_s14 }
 0x1e6   : > { %869 = vrot.lane.b32.xlu1 %v4225_v45, %s3973_s14 }
 0x1e8   : > { %883 = vrot.lane.b32.xlu0 %v4299_v13, %s3973_s14 }
 0x1ea   : > { %1031 = vrot.lane.b32.xlu1 %v4295_v5, %s3971_s12 }
 0x1ec   : > { %1037 = vrot.lane.b32.xlu0 %v4275_v61, %s3971_s12  ;;  %v4357_v14 = vpop.permute.xlu1 %789 }
 0x1ee   : > { %v4359_v16 = vpop.permute.xlu0 %797  ;;  %1029 = vrot.lane.b32.xlu1 %v4271_v60, %s3971_s12 }
 0x1ef   : > { %v805_v0 = vsel %vm344_vm4, %v4357_v14, %v4359_v16  ;;  %v809_v24 = vsel %vm344_vm4, %v4359_v16, %v4357_v14 }
 0x1f0   : > { %1039 = vrot.lane.b32.xlu0 %v4299_v13, %s3971_s12  ;;  %v4365_v17 = vpop.permute.xlu1 %737  ;;  %v826_v42 = vmul.f32 %v822_v46, %v805_v0  ;;  %v825_v16 = vmul.f32 %v818_v48, %v809_v24 }
 0x1f2   : > { %v4367_v18 = vpop.permute.xlu0 %745  ;;  %1027 = vrot.lane.b32.xlu1 %v4247_v54, %s3971_s12 }
 0x1f4   : > { %1035 = vrot.lane.b32.xlu0 %v4251_v55, %s3971_s12  ;;  %v4373_v19 = vpop.permute.xlu1 %685 }
 0x1f6   : > { %v4375_v20 = vpop.permute.xlu0 %693  ;;  %1025 = vrot.lane.b32.xlu1 %v4225_v45, %s3971_s12 }
 0x1f8   : > { %1033 = vrot.lane.b32.xlu0 %v4227_v47, %s3971_s12  ;;  %v4381_v21 = vpop.permute.xlu1 %633 }
 0x1fa   : > { %v4383_v22 = vpop.permute.xlu0 %641  ;;  %1182 = vperm.xlu1 %3919, %v4089_v3  }
 0x1fc   : > { %v4385_v23 = vpop.permute.xlu1 %973  ;;  %1177 = vperm.xlu0 %3920, %v4094_v4  }
 0x1fe   : > { %v4387_v25 = vpop.permute.xlu0 %981  ;;  %1172 = vperm.xlu1 %3919, %v4106_v7  }
 0x200   : > { %v792_v26 = vpop.permute.xlu1 %791 }
 0x202   : > { %v800_v27 = vpop.permute.xlu0 %799  ;;  %1167 = vperm.xlu1 %3919, %v4101_v6  }
 0x203   : > { %v806_v58 = vsel %vm344_vm4, %v792_v26, %v800_v27  ;;  %v810_v59 = vsel %vm344_vm4, %v800_v27, %v792_v26 }
 0x204   : > { %v4392_v28 = vpop.permute.xlu1 %739  ;;  %v828_v27 = vmul.f32 %v822_v46, %v806_v58 }
 0x206   : > { %v4394_v29 = vpop.permute.xlu0 %747 }
 0x207   : > { %v758_v58 = vsel %vm320_vm5, %v4394_v29, %v4392_v28 }
 0x208   : > { %v4397_v30 = vpop.permute.xlu1 %687 }
 0x20a   : > { %v4399_v31 = vpop.permute.xlu0 %695 }
 0x20c   : > { %v4401_v32 = vpop.permute.xlu1 %635 }
 0x20e   : > { %v4403_v33 = vpop.permute.xlu0 %643 }
 0x210   : > { %v4405_v3 = vpop.permute.xlu1 %975 }
 0x212   : > { %v4407_v4 = vpop.permute.xlu0 %983 }
 0x214   : > { %v794_v34 = vpop.permute.xlu1 %793 }
 0x216   : > { %v802_v7 = vpop.permute.xlu0 %801 }
 0x217   : > { %v807_v49 = vsel %vm344_vm4, %v794_v34, %v802_v7  ;;  %v811_v52 = vsel %vm344_vm4, %v802_v7, %v794_v34  ;;  %v827_v34 = vmul.f32 %v818_v48, %v810_v59 }
 0x218   : > { %v742_v35 = vpop.permute.xlu1 %741  ;;  %v830_v63 = vmul.f32 %v822_v46, %v807_v49  ;;  %v829_v1 = vmul.f32 %v818_v48, %v811_v52 }
 0x21a   : > { %v750_v36 = vpop.permute.xlu0 %749 }
 0x21b   : > { %v755_v49 = vsel %vm320_vm5, %v742_v35, %v750_v36 }
 0x21c   : > { %v4409_v37 = vpop.permute.xlu1 %689 }
 0x21e   : > { %v4411_v38 = vpop.permute.xlu0 %697 }
 0x220   : > { %v4413_v6 = vpop.permute.xlu1 %637 }
 0x222   : > { %v4415_v39 = vpop.permute.xlu0 %645 }
 0x224   : > { %v4417_v40 = vpop.permute.xlu1 %977 }
 0x226   : > { %v4419_v41 = vpop.permute.xlu0 %985 }
 0x228   : > { %v796_v43 = vpop.permute.xlu1 %795 }
 0x22a   : > { %v804_v44 = vpop.permute.xlu0 %803 }
 0x22b   : > { %v808_v50 = vsel %vm344_vm4, %v796_v43, %v804_v44  ;;  %v812_v51 = vsel %vm344_vm4, %v804_v44, %v796_v43  ;;  %v770_v43 = vrot.slane %v3829_v15, %v4120_v12  ;;  %v766_v44 = vrot.slane %v3829_v15, %v4117_v11 }
 0x22c   : > { %v4434_v53 = vpop.permute.xlu1 %925  ;;  %v832_v56 = vmul.f32 %v822_v46, %v808_v50  ;;  %v831_v57 = vmul.f32 %v818_v48, %v812_v51  ;;  %v759_v51 = vsel %vm320_vm5, %v750_v36, %v742_v35  ;;  %v753_v35 = vsel %vm320_vm5, %v4365_v17, %v4367_v18 }
 0x22d   : > { %v778_v48 = vmul.f32 %v770_v43, %v755_v49  ;;  %v777_v36 = vmul.f32 %v766_v44, %v759_v51  ;;  %v774_v24 = vmul.f32 %v770_v43, %v753_v35 }
 0x22e   : > { %v4440_v62 = vpop.permute.xlu0 %933  ;;  %1198 = vmatprep.subr.mxu1 %v832_v56 }
 0x22f   : > { %1199 = vmatpush1.msra.mxu1 %v831_v57  ;;  %v754_v57 = vsel %vm320_vm5, %v4392_v28, %v4394_v29  ;;  %v757_v28 = vsel %vm320_vm5, %v4367_v18, %v4365_v17 }
 0x230   : > { %1200 = vmatprep.subr.mxu1 %v830_v63  ;;  %v744_v26 = vpop.permute.xlu1 %743  ;;  %v3828_v63 = vld [vmem:[%s6112_s5 + $0x1] ss:$8 sm:$0x3]  ;;  %v776_v0 = vmul.f32 %v770_v43, %v754_v57 }
 0x231   : > { %1201 = vmatpush1.msra.mxu1 %v829_v1  ;;  %v775_v1 = vmul.f32 %v766_v44, %v758_v58 }
 0x232   : > { %v752_v7 = vpop.permute.xlu0 %751  ;;  %1202 = vmatprep.subr.mxu1 %v828_v27  ;;  %v714_v27 = vrot.slane %v3828_v63, %v4117_v11 }
 0x233   : > { %v756_v50 = vsel %vm320_vm5, %v744_v26, %v752_v7  ;;  %v760_v14 = vsel %vm320_vm5, %v752_v7, %v744_v26  ;;  %1203 = vmatpush1.msra.mxu1 %v827_v34  ;;  %v718_v26 = vrot.slane %v3828_v63, %v4120_v12  ;;  %v703_v34 = vsel %vm296_vm6, %v4409_v37, %v4411_v38 }
 0x234   : > { %1204 = vmatprep.subr.mxu1 %v826_v42  ;;  %v692_v46 = vpop.permute.xlu1 %691  ;;  %v780_v52 = vmul.f32 %v770_v43, %v756_v50  ;;  %v779_v56 = vmul.f32 %v766_v44, %v760_v14  ;;  %v773_v7 = vmul.f32 %v766_v44, %v757_v28  ;;  %v707_v42 = vsel %vm296_vm6, %v4411_v38, %v4409_v37 }
 0x235   : > { %1205 = vmatpush1.msra.mxu1 %v825_v16  ;;  %v702_v14 = vsel %vm296_vm6, %v4397_v30, %v4399_v31  ;;  %v706_v44 = vsel %vm296_vm6, %v4399_v31, %v4397_v30  ;;  %v726_v51 = vmul.f32 %v718_v26, %v703_v34  ;;  %v701_v37 = vsel %vm296_vm6, %v4373_v19, %v4375_v20  ;;  %v3834_v34 = vld [vmem:[%s6112_s5 + $0x7] ss:$8 sm:$0x3] }
 0x236   : > { %v4471_v59 = vpop.permute.xlu0 %931  ;;  %1206 = vmatprep.subr.mxu1 %v780_v52  ;;  %v725_v38 = vmul.f32 %v714_v27, %v707_v42  ;;  %v705_v30 = vsel %vm296_vm6, %v4375_v20, %v4373_v19  ;;  %v724_v52 = vmul.f32 %v718_v26, %v702_v14  ;;  %v722_v58 = vmul.f32 %v718_v26, %v701_v37 }
 0x237   : > { %1207 = vmatpush1.msra.mxu1 %v779_v56  ;;  %v723_v56 = vmul.f32 %v714_v27, %v706_v44  ;;  %v721_v63 = vmul.f32 %v714_v27, %v705_v30  ;;  %v655_v28 = vsel %vm273_vm7, %v4415_v39, %v4413_v6  ;;  %v995_v14 = vsel %vm433_vm0, %v4419_v41, %v4417_v40 }
 0x238   : > { %1208 = vmatprep.subr.mxu1 %v778_v48  ;;  %v640_v29 = vpop.permute.xlu1 %639  ;;  %v994_v30 = vsel %vm433_vm0, %v4407_v4, %v4405_v3 }
 0x239   : > { %1209 = vmatpush1.msra.mxu1 %v777_v36  ;;  %v651_v36 = vsel %vm273_vm7, %v4413_v6, %v4415_v39  ;;  %v649_v39 = vsel %vm273_vm7, %v4381_v21, %v4383_v22 }
 0x23a   : > { %v700_v15 = vpop.permute.xlu0 %699  ;;  %1210 = vmatprep.subr.mxu1 %v776_v0 }
 0x23b   : > { %v704_v17 = vsel %vm296_vm6, %v692_v46, %v700_v15  ;;  %v708_v18 = vsel %vm296_vm6, %v700_v15, %v692_v46  ;;  %1211 = vmatpush1.msra.mxu1 %v775_v1  ;;  %v657_v46 = vld [vmem:[%s6112_s5] ss:$8 sm:$0x3] }
 0x23c   : > { %1212 = vmatprep.subr.mxu1 %v774_v24  ;;  %v980_v43 = vpop.permute.xlu1 %979  ;;  %v728_v49 = vmul.f32 %v718_v26, %v704_v17  ;;  %v727_v50 = vmul.f32 %v714_v27, %v708_v18  ;;  %v666_v48 = vrot.slane %v657_v46, %v4120_v12  ;;  %v662_v35 = vrot.slane %v657_v46, %v4117_v11 }
 0x23d   : > { %1213 = vmatpush1.msra.mxu1 %v773_v7  ;;  %v650_v24 = vsel %vm273_vm7, %v4401_v32, %v4403_v33 }
 0x23e   : > { %v4506_v16 = vpop.permute.xlu0 %929  ;;  %1214 = vmatprep.subr.mxu1 %v728_v49  ;;  %v674_v6 = vmul.f32 %v666_v48, %v651_v36  ;;  %v673_v27 = vmul.f32 %v662_v35, %v655_v28  ;;  %v672_v17 = vmul.f32 %v666_v48, %v650_v24  ;;  %v670_v42 = vmul.f32 %v666_v48, %v649_v39 }
 0x23f   : > { %1215 = vmatpush1.msra.mxu1 %v727_v50  ;;  %v1006_v49 = vrot.slane %v3834_v34, %v4120_v12  ;;  %v1002_v50 = vrot.slane %v3834_v34, %v4117_v11  ;;  %v3832_v34 = vld [vmem:[%s6112_s5 + $0x5] ss:$8 sm:$0x3] }
 0x240   : > { %1216 = vmatprep.subr.mxu1 %v726_v51  ;;  %v4519_v31 = vpop.permute.xlu1 %927  ;;  %v991_v51 = vsel %vm433_vm0, %v4417_v40, %v4419_v41  ;;  %v993_v40 = vsel %vm433_vm0, %v4387_v25, %v4385_v23 }
 0x241   : > { %1217 = vmatpush1.msra.mxu1 %v725_v38  ;;  %v1013_v41 = vmul.f32 %v1002_v50, %v991_v51  ;;  %v1010_v36 = vmul.f32 %v1006_v49, %v993_v40 }
 0x242   : > { %v648_v57 = vpop.permute.xlu0 %647  ;;  %1218 = vmatprep.subr.mxu1 %v724_v52 }
 0x243   : > { %v652_v19 = vsel %vm273_vm7, %v640_v29, %v648_v57  ;;  %v656_v20 = vsel %vm273_vm7, %v648_v57, %v640_v29  ;;  %1219 = vmatpush1.msra.mxu1 %v723_v56  ;;  %v654_v29 = vsel %vm273_vm7, %v4403_v33, %v4401_v32  ;;  %v653_v32 = vsel %vm273_vm7, %v4383_v22, %v4381_v21  ;;  %v3833_v57 = vld [vmem:[%s6112_s5 + $0x6] ss:$8 sm:$0x3] }
 0x244   : > { %1220 = vmatprep.subr.mxu1 %v722_v58  ;;  %v4535_v0 = vpop.permute.xlu1 %923  ;;  %v676_v1 = vmul.f32 %v666_v48, %v652_v19  ;;  %v675_v15 = vmul.f32 %v662_v35, %v656_v20  ;;  %v671_v18 = vmul.f32 %v662_v35, %v654_v29  ;;  %v669_v44 = vmul.f32 %v662_v35, %v653_v32 }
 0x245   : > { %1221 = vmatpush1.msra.mxu1 %v721_v63  ;;  %v1014_v56 = vmul.f32 %v1006_v49, %v995_v14  ;;  %v989_v58 = vsel %vm433_vm0, %v4385_v23, %v4387_v25  ;;  %v954_v19 = vrot.slane %v3833_v57, %v4120_v12  ;;  %v950_v20 = vrot.slane %v3833_v57, %v4117_v11 }
 0x246   : > { %v4545_v26 = vpop.permute.xlu0 %881  ;;  %1222 = vmatprep.subr.mxu1 %v676_v1  ;;  %v943_v63 = vsel %vm409_vm2, %v4440_v62, %v4434_v53  ;;  %v1009_v28 = vmul.f32 %v1002_v50, %v989_v58  ;;  %v939_v1 = vsel %vm409_vm2, %v4434_v53, %v4440_v62 }
 0x247   : > { %1223 = vmatpush1.msra.mxu1 %v675_v15  ;;  %v961_v62 = vmul.f32 %v950_v20, %v939_v1 }
 0x248   : > { %1224 = vmatprep.subr.mxu1 %v674_v6  ;;  %v922_v33 = vpop.permute.xlu1 %921  ;;  %v942_v6 = vsel %vm409_vm2, %v4471_v59, %v4535_v0 }
 0x249   : > { %1225 = vmatpush1.msra.mxu1 %v673_v27  ;;  %v962_v27 = vmul.f32 %v954_v19, %v943_v63  ;;  %v941_v53 = vsel %vm409_vm2, %v4506_v16, %v922_v33  ;;  %v937_v32 = vsel %vm409_vm2, %v922_v33, %v4506_v16 }
 0x24a   : > { %v988_v7 = vpop.permute.xlu0 %987  ;;  %1226 = vmatprep.subr.mxu1 %v672_v17  ;;  %v957_v33 = vmul.f32 %v950_v20, %v937_v32 }
 0x24b   : > { %v992_v21 = vsel %vm433_vm0, %v980_v43, %v988_v7  ;;  %v996_v22 = vsel %vm433_vm0, %v988_v7, %v980_v43  ;;  %1227 = vmatpush1.msra.mxu1 %v671_v18  ;;  %v990_v43 = vsel %vm433_vm0, %v4405_v3, %v4407_v4  ;;  %v1012_v4 = vmul.f32 %v1006_v49, %v994_v30 }
 0x24c   : > { %1228 = vmatprep.subr.mxu1 %v670_v42  ;;  %v876_v37 = vpop.permute.xlu1 %875  ;;  %v1016_v38 = vmul.f32 %v1006_v49, %v996_v22  ;;  %v1015_v46 = vmul.f32 %v1002_v50, %v992_v21  ;;  %v1011_v48 = vmul.f32 %v1002_v50, %v990_v43  ;;  %v958_v7 = vmul.f32 %v954_v19, %v941_v53  ;;  %v3831_v43 = vld [vmem:[%s6112_s5 + $0x4] ss:$8 sm:$0x3] }
 0x24d   : > { %1229 = vmatpush1.msra.mxu1 %v669_v44  ;;  %v902_v42 = vrot.slane %v3832_v34, %v4120_v12  ;;  %v898_v49 = vrot.slane %v3832_v34, %v4117_v11 }
 0x24e   : > { %v880_v52 = vpop.permute.xlu0 %879  ;;  %1230 = vmatprep.subr.mxu1 %v1016_v38 }
 0x24f   : > { %1231 = vmatpush2.msra.mxu1 %v1015_v46 }
 0x250   : > { %1232 = vmatprep.subr.mxu1 %v1014_v56  ;;  %v874_v3 = vpop.permute.xlu1 %873  ;;  %v3835_v56 = vld [vmem:[%s6112_s5 + $0x10] ss:$8 sm:$0x3] }
 0x251   : > { %1233 = vmatpush2.msra.mxu1 %v1013_v41  ;;  %v891_v50 = vsel %vm385_vm3, %v4545_v26, %v874_v3  ;;  %v887_v21 = vsel %vm385_vm3, %v874_v3, %v4545_v26  ;;  %v846_v3 = vrot.slane %v3831_v43, %v4117_v11 }
 0x252   : > { %v936_v35 = vpop.permute.xlu0 %935  ;;  %1234 = vmatprep.subr.mxu1 %v1012_v4  ;;  %v909_v40 = vmul.f32 %v898_v49, %v887_v21  ;;  %v1054_v4 = vrot.slane %v3835_v56, %v4117_v11  ;;  %v1087_v21 = vld [vmem:[#allocation3 + $0x50] sm:$0xff] }
 0x253   : > { %v940_v23 = vsel %vm409_vm2, %v4519_v31, %v936_v35  ;;  %v944_v25 = vsel %vm409_vm2, %v936_v35, %v4519_v31  ;;  %1235 = vmatpush2.msra.mxu1 %v1011_v48  ;;  %v938_v31 = vsel %vm409_vm2, %v4535_v0, %v4471_v59  ;;  %v960_v59 = vmul.f32 %v954_v19, %v942_v6 }
 0x254   : > { %1236 = vmatprep.subr.mxu1 %v1010_v36  ;;  %v872_v15 = vpop.permute.xlu1 %871  ;;  %v964_v24 = vmul.f32 %v954_v19, %v944_v25  ;;  %v963_v29 = vmul.f32 %v950_v20, %v940_v23  ;;  %v959_v0 = vmul.f32 %v950_v20, %v938_v31  ;;  %v850_v36 = vrot.slane %v3831_v43, %v4120_v12 }
 0x255   : > { %1237 = vmatpush2.msra.mxu1 %v1009_v28  ;;  %v890_v38 = vsel %vm385_vm3, %v880_v52, %v872_v15  ;;  %v886_v46 = vsel %vm385_vm3, %v872_v15, %v880_v52  ;;  %v1058_v19 = vrot.slane %v3835_v56, %v4120_v12  ;;  %v859_v6 = vmul.f32 %v846_v3, %v4295_v5 }
 0x256   : > { %v878_v39 = vpop.permute.xlu0 %877  ;;  %1238 = vmatprep.subr.mxu1 %v964_v24  ;;  %v908_v57 = vmul.f32 %v902_v42, %v890_v38  ;;  %v907_v58 = vmul.f32 %v898_v49, %v886_v46  ;;  %v860_v24 = vmul.f32 %v850_v36, %v4299_v13  ;;  %v857_v53 = vmul.f32 %v846_v3, %v4271_v60 }
 0x257   : > { %1239 = vmatpush2.msra.mxu1 %v963_v29  ;;  %v856_v5 = vmul.f32 %v850_v36, %v4251_v55  ;;  %v853_v55 = vmul.f32 %v846_v3, %v4225_v45  ;;  %v1083_v45 = vld [vmem:[#allocation3 + $0x30] sm:$0xff] }
 0x258   : > { %1240 = vmatprep.subr.mxu1 %v962_v27  ;;  %v870_v17 = vpop.permute.xlu1 %869 }
 0x259   : > { %1241 = vmatpush2.msra.mxu1 %v961_v62  ;;  %v889_v26 = vsel %vm385_vm3, %v878_v39, %v870_v17  ;;  %v885_v41 = vsel %vm385_vm3, %v870_v17, %v878_v39  ;;  %v858_v39 = vmul.f32 %v850_v36, %v4275_v61  ;;  %v855_v61 = vmul.f32 %v846_v3, %v4247_v54 }
 0x25a   : > { %v884_v18 = vpop.permute.xlu0 %883  ;;  %1242 = vmatprep.subr.mxu1 %v960_v59  ;;  %v906_v35 = vmul.f32 %v902_v42, %v889_v26  ;;  %v905_v25 = vmul.f32 %v898_v49, %v885_v41 }
 0x25b   : > { %v888_v14 = vsel %vm385_vm3, %v876_v37, %v884_v18  ;;  %v892_v16 = vsel %vm385_vm3, %v884_v18, %v876_v37  ;;  %1243 = vmatpush2.msra.mxu1 %v959_v0  ;;  %v910_v37 = vmul.f32 %v902_v42, %v891_v50  ;;  %v854_v0 = vmul.f32 %v850_v36, %v4227_v47  ;;  %v1081_v50 = vld [vmem:[#allocation3 + $0x20] sm:$0xff]  ;;  %v1080_v47 = vld [vmem:[#allocation3 + $0x18] sm:$0xff] }
 0x25c   : > { %1244 = vmatprep.subr.mxu1 %v958_v7  ;;  %v1032_v22 = vpop.permute.xlu1 %1031  ;;  %v912_v44 = vmul.f32 %v902_v42, %v892_v16  ;;  %v911_v51 = vmul.f32 %v898_v49, %v888_v14  ;;  %v1077_v42 = vld [vmem:[#allocation3] sm:$0xff]  ;;  %v1079_v14 = vld [vmem:[#allocation3 + $0x10] sm:$0xff]  ;;  %v1084_v16 = vld [vmem:[#allocation3 + $0x38] sm:$0xff] }
 0x25d   : > { %1245 = vmatpush2.msra.mxu1 %v957_v33  ;;  %v1082_v33 = vld [vmem:[#allocation3 + $0x28] sm:$0xff] }
 0x25e   : > { %v1038_v30 = vpop.permute.xlu0 %1037  ;;  %1246 = vmatprep.subr.mxu1 %v912_v44  ;;  %v1086_v44 = vld [vmem:[#allocation3 + $0x48] sm:$0xff] }
 0x25f   : > { %1247 = vmatpush2.msra.mxu1 %v911_v51  ;;  %v1088_v51 = vld [vmem:[#allocation3 + $0x58] sm:$0xff] }
 0x260   : > { %1248 = vmatprep.subr.mxu1 %v910_v37  ;;  %v1030_v52 = vpop.permute.xlu1 %1029 }
 0x261   : > { %1249 = vmatpush2.msra.mxu1 %v909_v40  ;;  %v1047_v20 = vsel %vm457_vm1, %v1038_v30, %v1030_v52  ;;  %v1043_v28 = vsel %vm457_vm1, %v1030_v52, %v1038_v30 }
 0x262   : > { %v1040_v48 = vpop.permute.xlu0 %1039  ;;  %1250 = vmatprep.subr.mxu1 %v908_v57  ;;  %v1066_v27 = vmul.f32 %v1058_v19, %v1047_v20  ;;  %v1065_v62 = vmul.f32 %v1054_v4, %v1043_v28 }
 0x263   : > { %v1044_v63 = vsel %vm457_vm1, %v1032_v22, %v1040_v48  ;;  %v1048_v23 = vsel %vm457_vm1, %v1040_v48, %v1032_v22  ;;  %1251 = vmatpush2.msra.mxu1 %v907_v58  ;;  %v1085_v22 = vld [vmem:[#allocation3 + $0x40] sm:$0xff] }
 0x264   : > { %v1067_v1 = vmul.f32 %v1054_v4, %v1044_v63  ;;  %1252 = vmatprep.subr.mxu1 %v906_v35  ;;  %v1028_v15 = vpop.permute.xlu1 %1027  ;;  %v1068_v29 = vmul.f32 %v1058_v19, %v1048_v23 }
 0x265   : > { %1253 = vmatpush2.msra.mxu1 %v905_v25 }
 0x266   : > { %v1036_v31 = vpop.permute.xlu0 %1035  ;;  %1254 = vmatprep.subr.mxu1 %v860_v24  ;;  %1311 = vmatprep.subr.mxu0 %v1068_v29 }
 0x267   : > { %v1042_v34 = vsel %vm457_vm1, %v1028_v15, %v1036_v31  ;;  %v1046_v32 = vsel %vm457_vm1, %v1036_v31, %v1028_v15  ;;  %1255 = vmatpush2.msra.mxu1 %v859_v6  ;;  %1312 = vmatpush1.msra.mxu0 %v1067_v1 }
 0x268   : > { %v1063_v13 = vmul.f32 %v1054_v4, %v1042_v34  ;;  %1256 = vmatprep.subr.mxu1 %v858_v39  ;;  %1313 = vmatprep.subr.mxu0 %v1066_v27  ;;  %v1064_v17 = vmul.f32 %v1058_v19, %v1046_v32  ;;  %v1026_v60 = vpop.permute.xlu1 %1025 }
 0x269   : > { %1257 = vmatpush2.msra.mxu1 %v857_v53  ;;  %1314 = vmatpush1.msra.mxu0 %v1065_v62 }
 0x26a   : > { %v1034_v59 = vpop.permute.xlu0 %1033  ;;  %1258 = vmatprep.subr.mxu1 %v856_v5  ;;  %1315 = vmatprep.subr.mxu0 %v1064_v17 }
 0x26b   : > { %v1041_v18 = vsel %vm457_vm1, %v1026_v60, %v1034_v59  ;;  %v1045_v7 = vsel %vm457_vm1, %v1034_v59, %v1026_v60  ;;  %1259 = vmatpush2.msra.mxu1 %v855_v61  ;;  %1316 = vmatpush1.msra.mxu0 %v1063_v13 }
 0x26c   : > { %v1061_v49 = vmul.f32 %v1054_v4, %v1041_v18  ;;  %1260 = vmatprep.subr.mxu1 %v854_v0  ;;  %v1062_v54 = vmul.f32 %v1058_v19, %v1045_v7 }
 0x26d   : > { %1261 = vmatpush2.msra.mxu1 %v853_v55 }
 0x26e   : > { %1263 = vmatmul.mubr.f32.vlgmr.msra.gmra.mxu1 %v1077_v42  ;;  %1317 = vmatprep.subr.mxu0 %v1062_v54  ;;  %v1830_v42 = vld [vmem:[#allocation3 + $0x68] sm:$0xff] }
 0x26f   : > { %1318 = vmatpush1.msra.mxu0 %v1061_v49  ;;  %1268 = vmatprep.mubr.f32.mxu1 %v1081_v50 }
 0x270   : > { %3836 = vmatmul.mubr.msk.f32.vlgmr.msra.gmra.mxu0 %vm1185_vm9, %v1079_v14 }
 0x271   : > { %1357 = vmatprep.mubr.f32.mxu0 %v3975_v2 }
 0x272   : > { %1269 = vmatmul.mubr.f32.gmra.mxu1 %v1080_v47 }
 0x273   : > { %1274 = vmatprep.mubr.f32.mxu1 %v1084_v16 }
 0x274   : > { %3837 = vmatmul.mubr.msk.f32.gmra.mxu0 %vm1185_vm9, %v1082_v33 }
 0x275   : > { %1363 = vmatprep.mubr.f32.mxu0 %v3975_v2  ;;  %v4686_v38 = vpop.permute.xlu1 %1182 }
 0x276   : > { %1275 = vmatmul.mubr.f32.gmra.mxu1 %v1083_v45 }
 0x277   : > { %1280 = vmatprep.mubr.f32.mxu1 %v1087_v21  ;;  %v1178_v1 = vpop.permute.xlu0 %1177  ;;  %v4855_v21 = vld [vmem:[%s6111_s4 + $0x18] sm:$0xff] }
 0x278   : > { %3838 = vmatmul.mubr.msk.f32.gmra.mxu0 %vm1185_vm9, %v1085_v22  ;;  %v4860_v22 = vld [vmem:[%s6111_s4 + $0x10] sm:$0xff] }
 0x279   : > { %1369 = vmatprep.mubr.f32.mxu0 %v3975_v2  ;;  %v1173_v46 = vpop.permute.xlu1 %1172 }
 0x27a   : > { %1281 = vmatmul.mubr.f32.gmra.mxu1 %v1086_v44  ;;  %v3981_v44 = vmov 2  }
 0x27b   : > { %2102 = vmatprep.mubr.f32.mxu1 %v3975_v2  ;;  %3921 = vset.pattern.permute.xlu0 %v3981_v44 }
 0x27c   : > { %3839 = vmatmul.mubr.msk.f32.gmra.mxu0 %vm1185_vm9, %v1088_v51  ;;  %3922 = vset.pattern.permute.xlu1 %v3981_v44 }
 0x27d   : > { %v1168_v30 = vpop.permute.xlu1 %1167  ;;  %2013 = vmatprep.mubr.f32.mxu0 %v1830_v42 }
 0x32e   : > { %v1264_v37 = vpop.f32.mrf.mxu1 }
 0x32f   : > { %v1265_v43 = vadd.f32 %v1264_v37, %v1168_v30 }
 0x330   : > { %v1266_v26 = vpop.f32.mrf.mxu1  ;;  %v1353_v56 = vpop.f32.mrf.mxu0 }
 0x331   : > { %v1267_v40 = vadd.f32 %v1266_v26, %v1168_v30  ;;  %v1354_v41 = vadd.f32 %v1353_v56, %v1265_v43 }
 0x332   : > { %v1355_v52 = vpop.f32.mrf.mxu0  ;;  %v1270_v4 = vpop.f32.mrf.mxu1 }
 0x333   : > { %v4688_v57 = vmax.f32 %v1354_v41, 0.0  ;;  %v1356_v58 = vadd.f32 %v1355_v52, %v1267_v40  ;;  %v1271_v36 = vadd.f32 %v1270_v4, %v1173_v46 }
 0x334   : > { %v1272_v48 = vpop.f32.mrf.mxu1  ;;  %v1359_v35 = vpop.f32.mrf.mxu0 }
 0x335   : > { %v4690_v3 = vmax.f32 %v1356_v58, 0.0  ;;  %1540 = vrot.lane.b32.xlu0 %v4688_v57, %s3974_s15  ;;  %v1273_v19 = vadd.f32 %v1272_v48, %v1173_v46  ;;  %v1360_v63 = vadd.f32 %v1359_v35, %v1271_v36  ;;  %v4874_v46 = vld [vmem:[%s6111_s4 + $0x8] sm:$0xff] }
 0x336   : > { %v1361_v20 = vpop.f32.mrf.mxu0  ;;  %v1276_v15 = vpop.f32.mrf.mxu1 }
 0x337   : > { %1548 = vrot.lane.b32.xlu1 %v4690_v3, %s3974_s15  ;;  %v1362_v23 = vadd.f32 %v1361_v20, %v1273_v19  ;;  %v4710_v25 = vmax.f32 %v1360_v63, 0.0  ;;  %v1277_v24 = vadd.f32 %v1276_v15, %v1178_v1 }
 0x338   : > { %v1278_v29 = vpop.f32.mrf.mxu1  ;;  %v1365_v6 = vpop.f32.mrf.mxu0 }
 0x339   : > { %1488 = vrot.lane.b32.xlu0 %v4688_v57, %s3976_s16  ;;  %v4714_v28 = vmax.f32 %v1362_v23, 0.0  ;;  %v1279_v31 = vadd.f32 %v1278_v29, %v1178_v1  ;;  %v1366_v39 = vadd.f32 %v1365_v6, %v1277_v24  ;;  %v3842_v29 = vld [vmem:[%s6112_s5 + $0x3] ss:$8 sm:$0x3] }
 0x33a   : > { %v1367_v27 = vpop.f32.mrf.mxu0  ;;  %v1282_v32 = vpop.f32.mrf.mxu1 }
 0x33b   : > { %1496 = vrot.lane.b32.xlu1 %v4690_v3, %s3976_s16  ;;  %v1368_v53 = vadd.f32 %v1367_v27, %v1279_v31  ;;  %v4732_v62 = vmax.f32 %v1366_v39, 0.0  ;;  %v1283_v17 = vadd.f32 %v1282_v32, %v4686_v38  ;;  %v1569_v31 = vrot.slane %v3842_v29, %v4117_v11 }
 0x33c   : > { %v1284_v13 = vpop.f32.mrf.mxu1  ;;  %v1371_v5 = vpop.f32.mrf.mxu0  ;;  %v1573_v27 = vrot.slane %v3842_v29, %v4120_v12 }
 0x33d   : > { %1436 = vrot.lane.b32.xlu0 %v4688_v57, %s3977_s17  ;;  %v4738_v34 = vmax.f32 %v1368_v53, 0.0  ;;  %v1285_v61 = vadd.f32 %v1284_v13, %v4686_v38  ;;  %v1372_v59 = vadd.f32 %v1371_v5, %v1283_v17  ;;  %v4869_v38 = vld [vmem:[%s6111_s4] sm:$0xff] }
 0x33e   : > { %v1373_v60 = vpop.f32.mrf.mxu0 }
 0x33f   : > { %1444 = vrot.lane.b32.xlu1 %v4690_v3, %s3977_s17  ;;  %v1374_v0 = vadd.f32 %v1373_v60, %v1285_v61  ;;  %v4760_v18 = vmax.f32 %v1372_v59, 0.0 }
 0x341   : > { %1384 = vrot.lane.b32.xlu0 %v4688_v57, %s3978_s18  ;;  %v4764_v7 = vmax.f32 %v1374_v0, 0.0 }
 0x343   : > { %1392 = vrot.lane.b32.xlu1 %v4690_v3, %s3978_s18 }
 0x345   : > { %1724 = vrot.lane.b32.xlu0 %v4688_v57, %s3970_s11 }
 0x347   : > { %1732 = vrot.lane.b32.xlu1 %v4690_v3, %s3970_s11 }
 0x349   : > { %1542 = vrot.lane.b32.xlu0 %v4710_v25, %s3974_s15 }
 0x34b   : > { %1550 = vrot.lane.b32.xlu1 %v4714_v28, %s3974_s15 }
 0x34d   : > { %1490 = vrot.lane.b32.xlu0 %v4710_v25, %s3976_s16 }
 0x34f   : > { %1498 = vrot.lane.b32.xlu1 %v4714_v28, %s3976_s16 }
 0x351   : > { %1438 = vrot.lane.b32.xlu0 %v4710_v25, %s3977_s17 }
 0x353   : > { %1446 = vrot.lane.b32.xlu1 %v4714_v28, %s3977_s17 }
 0x355   : > { %1386 = vrot.lane.b32.xlu0 %v4710_v25, %s3978_s18 }
 0x357   : > { %1394 = vrot.lane.b32.xlu1 %v4714_v28, %s3978_s18 }
 0x359   : > { %1726 = vrot.lane.b32.xlu0 %v4710_v25, %s3970_s11 }
 0x35b   : > { %1734 = vrot.lane.b32.xlu1 %v4714_v28, %s3970_s11 }
 0x35d   : > { %1544 = vrot.lane.b32.xlu0 %v4732_v62, %s3974_s15 }
 0x35f   : > { %1552 = vrot.lane.b32.xlu1 %v4738_v34, %s3974_s15 }
 0x361   : > { %1492 = vrot.lane.b32.xlu0 %v4732_v62, %s3976_s16 }
 0x363   : > { %1500 = vrot.lane.b32.xlu1 %v4738_v34, %s3976_s16 }
 0x365   : > { %1440 = vrot.lane.b32.xlu0 %v4732_v62, %s3977_s17 }
 0x367   : > { %1448 = vrot.lane.b32.xlu1 %v4738_v34, %s3977_s17 }
 0x369   : > { %1388 = vrot.lane.b32.xlu0 %v4732_v62, %s3978_s18 }
 0x36b   : > { %1396 = vrot.lane.b32.xlu1 %v4738_v34, %s3978_s18 }
 0x36d   : > { %1728 = vrot.lane.b32.xlu0 %v4732_v62, %s3970_s11 }
 0x36f   : > { %1736 = vrot.lane.b32.xlu1 %v4738_v34, %s3970_s11 }
 0x371   : > { %1546 = vrot.lane.b32.xlu0 %v4760_v18, %s3974_s15 }
 0x373   : > { %1554 = vrot.lane.b32.xlu1 %v4764_v7, %s3974_s15 }
 0x375   : > { %1676 = vrot.lane.b32.xlu0 %v4732_v62, %s3972_s13 }
 0x377   : > { %1684 = vrot.lane.b32.xlu1 %v4738_v34, %s3972_s13 }
 0x379   : > { %1494 = vrot.lane.b32.xlu0 %v4760_v18, %s3976_s16 }
 0x37b   : > { %1502 = vrot.lane.b32.xlu1 %v4764_v7, %s3976_s16 }
 0x37d   : > { %1442 = vrot.lane.b32.xlu0 %v4760_v18, %s3977_s17 }
 0x37f   : > { %1682 = vrot.lane.b32.xlu1 %v4714_v28, %s3972_s13 }
 0x381   : > { %1390 = vrot.lane.b32.xlu0 %v4760_v18, %s3978_s18 }
 0x383   : > { %1450 = vrot.lane.b32.xlu1 %v4764_v7, %s3977_s17 }
 0x385   : > { %1730 = vrot.lane.b32.xlu0 %v4760_v18, %s3970_s11 }
 0x387   : > { %1680 = vrot.lane.b32.xlu1 %v4690_v3, %s3972_s13 }
 0x389   : > { %1678 = vrot.lane.b32.xlu0 %v4760_v18, %s3972_s13 }
 0x38b   : > { %1398 = vrot.lane.b32.xlu1 %v4764_v7, %s3978_s18 }
 0x38d   : > { %1674 = vrot.lane.b32.xlu0 %v4710_v25, %s3972_s13 }
 0x38f   : > { %1632 = vrot.lane.b32.xlu1 %v4738_v34, %s3973_s14 }
 0x391   : > { %1672 = vrot.lane.b32.xlu0 %v4688_v57, %s3972_s13 }
 0x393   : > { %1738 = vrot.lane.b32.xlu1 %v4764_v7, %s3970_s11 }
 0x395   : > { %1626 = vrot.lane.b32.xlu0 %v4760_v18, %s3973_s14 }
 0x397   : > { %1630 = vrot.lane.b32.xlu1 %v4714_v28, %s3973_s14 }
 0x399   : > { %1624 = vrot.lane.b32.xlu0 %v4732_v62, %s3973_s14 }
 0x39b   : > { %1686 = vrot.lane.b32.xlu1 %v4764_v7, %s3972_s13 }
 0x39d   : > { %1622 = vrot.lane.b32.xlu0 %v4710_v25, %s3973_s14 }
 0x39f   : > { %1628 = vrot.lane.b32.xlu1 %v4690_v3, %s3973_s14 }
 0x3a1   : > { %1620 = vrot.lane.b32.xlu0 %v4688_v57, %s3973_s14 }
 0x3a3   : > { %1634 = vrot.lane.b32.xlu1 %v4764_v7, %s3973_s14 }
 0x3a5   : > { %1782 = vrot.lane.b32.xlu0 %v4760_v18, %s3971_s12 }
 0x3a7   : > { %1788 = vrot.lane.b32.xlu1 %v4738_v34, %s3971_s12  ;;  %v4822_v55 = vpop.permute.xlu0 %1540 }
 0x3a9   : > { %v4824_v49 = vpop.permute.xlu1 %1548  ;;  %1780 = vrot.lane.b32.xlu0 %v4732_v62, %s3971_s12 }
 0x3aa   : > { %v1556_v29 = vsel %vm344_vm4, %v4822_v55, %v4824_v49 }
 0x3ab   : > { %1790 = vrot.lane.b32.xlu1 %v4764_v7, %s3971_s12  ;;  %v4830_v54 = vpop.permute.xlu0 %1488 }
 0x3ad   : > { %v4832_v50 = vpop.permute.xlu1 %1496  ;;  %1778 = vrot.lane.b32.xlu0 %v4710_v25, %s3971_s12 }
 0x3af   : > { %1786 = vrot.lane.b32.xlu1 %v4714_v28, %s3971_s12  ;;  %v4838_v14 = vpop.permute.xlu0 %1436 }
 0x3b1   : > { %v4840_v47 = vpop.permute.xlu1 %1444  ;;  %1776 = vrot.lane.b32.xlu0 %v4688_v57, %s3971_s12 }
 0x3b3   : > { %1784 = vrot.lane.b32.xlu1 %v4690_v3, %s3971_s12  ;;  %v4846_v16 = vpop.permute.xlu0 %1384 }
 0x3b5   : > { %v4848_v33 = vpop.permute.xlu1 %1392  ;;  %1934 = vperm.xlu0 %3921, %v4855_v21  }
 0x3b7   : > { %v4850_v45 = vpop.permute.xlu0 %1724  ;;  %1929 = vperm.xlu1 %3922, %v4860_v22  }
 0x3b9   : > { %v4862_v51 = vpop.permute.xlu1 %1732  ;;  %1919 = vperm.xlu0 %3921, %v4869_v38  }
 0x3bb   : > { %v1543_v30 = vpop.permute.xlu0 %1542  ;;  %1924 = vperm.xlu1 %3922, %v4874_v46  }
 0x3bd   : > { %v1551_v37 = vpop.permute.xlu1 %1550 }
 0x3be   : > { %v1557_v59 = vsel %vm344_vm4, %v1543_v30, %v1551_v37  ;;  %v1561_v0 = vsel %vm344_vm4, %v1551_v37, %v1543_v30  ;;  %v1560_v30 = vsel %vm344_vm4, %v4824_v49, %v4822_v55 }
 0x3bf   : > { %v4878_v43 = vpop.permute.xlu0 %1490  ;;  %v1576_v8 = vmul.f32 %v1569_v31, %v1560_v30 }
 0x3c1   : > { %v1499_v26 = vpop.permute.xlu1 %1498 }
 0x3c3   : > { %v4880_v56 = vpop.permute.xlu0 %1438 }
 0x3c5   : > { %v4882_v40 = vpop.permute.xlu1 %1446 }
 0x3c7   : > { %v4884_v41 = vpop.permute.xlu0 %1386 }
 0x3c9   : > { %v4886_v52 = vpop.permute.xlu1 %1394 }
 0x3cb   : > { %v4888_v58 = vpop.permute.xlu0 %1726 }
 0x3cd   : > { %v4890_v4 = vpop.permute.xlu1 %1734 }
 0x3cf   : > { %v1545_v48 = vpop.permute.xlu0 %1544 }
 0x3d1   : > { %v1553_v35 = vpop.permute.xlu1 %1552 }
 0x3d2   : > { %v1558_v53 = vsel %vm344_vm4, %v1545_v48, %v1553_v35  ;;  %v1562_v5 = vsel %vm344_vm4, %v1553_v35, %v1545_v48  ;;  %v3841_v48 = vld [vmem:[%s6112_s5 + $0x2] ss:$8 sm:$0x3] }
 0x3d3   : > { %v1493_v36 = vpop.permute.xlu0 %1492  ;;  %v1581_v44 = vmul.f32 %v1573_v27, %v1558_v53  ;;  %v1580_v35 = vmul.f32 %v1569_v31, %v1562_v5  ;;  %v1517_v53 = vrot.slane %v3841_v48, %v4117_v11 }
 0x3d5   : > { %v1501_v19 = vpop.permute.xlu1 %1500 }
 0x3d6   : > { %v1506_v5 = vsel %vm320_vm5, %v1493_v36, %v1501_v19  ;;  %v1510_v49 = vsel %vm320_vm5, %v1501_v19, %v1493_v36  ;;  %v1504_v36 = vsel %vm320_vm5, %v4830_v54, %v4832_v50  ;;  %v3840_v19 = vld [vmem:[%s6112_s5 + $0x1] ss:$8 sm:$0x3] }
 0x3d7   : > { %v4892_v20 = vpop.permute.xlu0 %1440 }
 0x3d9   : > { %v4894_v63 = vpop.permute.xlu1 %1448 }
 0x3db   : > { %v4896_v23 = vpop.permute.xlu0 %1388 }
 0x3dd   : > { %v4898_v1 = vpop.permute.xlu1 %1396 }
 0x3df   : > { %v4900_v15 = vpop.permute.xlu0 %1728 }
 0x3e1   : > { %v4902_v24 = vpop.permute.xlu1 %1736 }
 0x3e3   : > { %v1547_v6 = vpop.permute.xlu0 %1546 }
 0x3e5   : > { %v1555_v39 = vpop.permute.xlu1 %1554 }
 0x3e6   : > { %v1559_v32 = vsel %vm344_vm4, %v1547_v6, %v1555_v39  ;;  %v1563_v13 = vsel %vm344_vm4, %v1555_v39, %v1547_v6  ;;  %v1579_v6 = vmul.f32 %v1573_v27, %v1557_v59  ;;  %v1578_v39 = vmul.f32 %v1569_v31, %v1561_v0 }
 0x3e7   : > { %v1582_v17 = vmul.f32 %v1569_v31, %v1563_v13  ;;  %v4917_v61 = vpop.permute.xlu0 %1676  ;;  %v1583_v60 = vmul.f32 %v1573_v27, %v1559_v32  ;;  %v1577_v13 = vmul.f32 %v1573_v27, %v1556_v29  ;;  %v1505_v31 = vsel %vm320_vm5, %v4878_v43, %v1499_v26 }
 0x3e9   : > { %v4923_v42 = vpop.permute.xlu1 %1684  ;;  %1949 = vmatprep.subr.mxu0 %v1583_v60  ;;  %v1521_v60 = vrot.slane %v3841_v48, %v4120_v12 }
 0x3ea   : > { %1950 = vmatpush1.msra.mxu0 %v1582_v17 }
 0x3eb   : > { %1951 = vmatprep.subr.mxu0 %v1581_v44  ;;  %v1495_v37 = vpop.permute.xlu0 %1494  ;;  %v1509_v44 = vsel %vm320_vm5, %v1499_v26, %v4878_v43  ;;  %v1529_v48 = vmul.f32 %v1521_v60, %v1506_v5  ;;  %v1527_v26 = vmul.f32 %v1521_v60, %v1505_v31  ;;  %v1454_v5 = vsel %vm296_vm6, %v4892_v20, %v4894_v63 }
 0x3ec   : > { %1952 = vmatpush1.msra.mxu0 %v1580_v35  ;;  %v1528_v35 = vmul.f32 %v1517_v53, %v1510_v49  ;;  %v1526_v30 = vmul.f32 %v1517_v53, %v1509_v44  ;;  %v1453_v49 = vsel %vm296_vm6, %v4880_v56, %v4882_v40 }
 0x3ed   : > { %v1503_v32 = vpop.permute.xlu1 %1502  ;;  %1953 = vmatprep.subr.mxu0 %v1579_v6 }
 0x3ee   : > { %v1507_v17 = vsel %vm320_vm5, %v1495_v37, %v1503_v32  ;;  %v1511_v55 = vsel %vm320_vm5, %v1503_v32, %v1495_v37  ;;  %1954 = vmatpush1.msra.mxu0 %v1578_v39  ;;  %v1465_v37 = vrot.slane %v3840_v19, %v4117_v11  ;;  %v1525_v39 = vmul.f32 %v1521_v60, %v1504_v36 }
 0x3ef   : > { %v1530_v59 = vmul.f32 %v1517_v53, %v1511_v55  ;;  %1955 = vmatprep.subr.mxu0 %v1577_v13  ;;  %v1443_v0 = vpop.permute.xlu0 %1442  ;;  %v1531_v27 = vmul.f32 %v1521_v60, %v1507_v17  ;;  %v1469_v32 = vrot.slane %v3840_v19, %v4120_v12  ;;  %v1458_v60 = vsel %vm296_vm6, %v4894_v63, %v4892_v20  ;;  %v1408_v63 = vld [vmem:[%s6112_s5] ss:$8 sm:$0x3] }
 0x3f0   : > { %1956 = vmatpush1.msra.mxu0 %v1576_v8  ;;  %v1508_v8 = vsel %vm320_vm5, %v4832_v50, %v4830_v54  ;;  %v1452_v20 = vsel %vm296_vm6, %v4838_v14, %v4840_v47  ;;  %v1476_v31 = vmul.f32 %v1465_v37, %v1458_v60  ;;  %v1413_v36 = vrot.slane %v1408_v63, %v4117_v11 }
 0x3f1   : > { %v4952_v29 = vpop.permute.xlu1 %1682  ;;  %1957 = vmatprep.subr.mxu0 %v1531_v27  ;;  %v1524_v13 = vmul.f32 %v1517_v53, %v1508_v8  ;;  %v1477_v27 = vmul.f32 %v1469_v32, %v1454_v5  ;;  %v1475_v44 = vmul.f32 %v1469_v32, %v1453_v49  ;;  %v1417_v8 = vrot.slane %v1408_v63, %v4120_v12 }
 0x3f2   : > { %1958 = vmatpush1.msra.mxu0 %v1530_v59  ;;  %v1457_v59 = vsel %vm296_vm6, %v4882_v40, %v4880_v56  ;;  %v1456_v56 = vsel %vm296_vm6, %v4840_v47, %v4838_v14  ;;  %v1746_v63 = vsel %vm433_vm0, %v4902_v24, %v4900_v15 }
 0x3f3   : > { %1959 = vmatprep.subr.mxu0 %v1529_v48  ;;  %v1391_v43 = vpop.permute.xlu0 %1390  ;;  %v1474_v48 = vmul.f32 %v1465_v37, %v1457_v59 }
 0x3f4   : > { %1960 = vmatpush1.msra.mxu0 %v1528_v35  ;;  %v1473_v35 = vmul.f32 %v1469_v32, %v1452_v20 }
 0x3f5   : > { %v1451_v6 = vpop.permute.xlu1 %1450  ;;  %1961 = vmatprep.subr.mxu0 %v1527_v26  ;;  %v1472_v26 = vmul.f32 %v1465_v37, %v1456_v56 }
 0x3f6   : > { %v1455_v54 = vsel %vm296_vm6, %v1443_v0, %v1451_v6  ;;  %v1459_v50 = vsel %vm296_vm6, %v1451_v6, %v1443_v0  ;;  %1962 = vmatpush1.msra.mxu0 %v1526_v30  ;;  %v1402_v30 = vsel %vm273_vm7, %v4896_v23, %v4898_v1  ;;  %v1406_v6 = vsel %vm273_vm7, %v4898_v1, %v4896_v23 }
 0x3f7   : > { %v1478_v17 = vmul.f32 %v1465_v37, %v1459_v50  ;;  %1963 = vmatprep.subr.mxu0 %v1525_v39  ;;  %v1731_v53 = vpop.permute.xlu0 %1730  ;;  %v1479_v55 = vmul.f32 %v1469_v32, %v1455_v54  ;;  %v1425_v23 = vmul.f32 %v1417_v8, %v1402_v30  ;;  %v1400_v1 = vsel %vm273_vm7, %v4846_v16, %v4848_v33  ;;  %v3846_v54 = vld [vmem:[%s6112_s5 + $0x7] ss:$8 sm:$0x3] }
 0x3f8   : > { %1964 = vmatpush1.msra.mxu0 %v1524_v13  ;;  %v1401_v13 = vsel %vm273_vm7, %v4884_v41, %v4886_v52  ;;  %v1424_v50 = vmul.f32 %v1413_v36, %v1406_v6  ;;  %v1421_v59 = vmul.f32 %v1417_v8, %v1400_v1 }
 0x3f9   : > { %v4987_v0 = vpop.permute.xlu1 %1680  ;;  %1965 = vmatprep.subr.mxu0 %v1479_v55  ;;  %v1423_v60 = vmul.f32 %v1417_v8, %v1401_v13  ;;  %v1753_v55 = vrot.slane %v3846_v54, %v4117_v11  ;;  %v1694_v13 = vsel %vm409_vm2, %v4923_v42, %v4917_v61 }
 0x3fa   : > { %1966 = vmatpush1.msra.mxu0 %v1478_v17 }
 0x3fb   : > { %1967 = vmatprep.subr.mxu0 %v1477_v27  ;;  %v5000_v40 = vpop.permute.xlu0 %1678  ;;  %v1757_v27 = vrot.slane %v3846_v54, %v4120_v12 }
 0x3fc   : > { %1968 = vmatpush1.msra.mxu0 %v1476_v31  ;;  %v1742_v31 = vsel %vm433_vm0, %v4900_v15, %v4902_v24  ;;  %v1744_v15 = vsel %vm433_vm0, %v4862_v51, %v4850_v45 }
 0x3fd   : > { %v1399_v19 = vpop.permute.xlu1 %1398  ;;  %1969 = vmatprep.subr.mxu0 %v1475_v44  ;;  %v1764_v24 = vmul.f32 %v1753_v55, %v1742_v31  ;;  %v1761_v6 = vmul.f32 %v1757_v27, %v1744_v15 }
 0x3fe   : > { %v1403_v14 = vsel %vm273_vm7, %v1391_v43, %v1399_v19  ;;  %v1407_v47 = vsel %vm273_vm7, %v1399_v19, %v1391_v43  ;;  %1970 = vmatpush1.msra.mxu0 %v1474_v48  ;;  %v1405_v43 = vsel %vm273_vm7, %v4886_v52, %v4884_v41  ;;  %v1404_v41 = vsel %vm273_vm7, %v4848_v33, %v4846_v16 }
 0x3ff   : > { %v1426_v39 = vmul.f32 %v1413_v36, %v1407_v47  ;;  %1971 = vmatprep.subr.mxu0 %v1473_v35  ;;  %v5016_v37 = vpop.permute.xlu0 %1674  ;;  %v1427_v32 = vmul.f32 %v1417_v8, %v1403_v14  ;;  %v1422_v17 = vmul.f32 %v1413_v36, %v1405_v43  ;;  %v1420_v20 = vmul.f32 %v1413_v36, %v1404_v41  ;;  %v3845_v8 = vld [vmem:[%s6112_s5 + $0x6] ss:$8 sm:$0x3] }
 0x400   : > { %1972 = vmatpush1.msra.mxu0 %v1472_v26  ;;  %v1745_v36 = vsel %vm433_vm0, %v4890_v4, %v4888_v58  ;;  %v1765_v35 = vmul.f32 %v1757_v27, %v1746_v63  ;;  %v1740_v26 = vsel %vm433_vm0, %v4850_v45, %v4862_v51  ;;  %v1701_v14 = vrot.slane %v3845_v8, %v4117_v11 }
 0x401   : > { %v5026_v5 = vpop.permute.xlu1 %1632  ;;  %1973 = vmatprep.subr.mxu0 %v1427_v32  ;;  %v1760_v32 = vmul.f32 %v1753_v55, %v1740_v26  ;;  %v1690_v43 = vsel %vm409_vm2, %v4917_v61, %v4923_v42  ;;  %v3844_v42 = vld [vmem:[%s6112_s5 + $0x5] ss:$8 sm:$0x3]  ;;  %v3847_v26 = vld [vmem:[%s6112_s5 + $0x10] ss:$8 sm:$0x3] }
 0x402   : > { %1974 = vmatpush1.msra.mxu0 %v1426_v39  ;;  %v1705_v39 = vrot.slane %v3845_v8, %v4120_v12  ;;  %v1653_v63 = vrot.slane %v3844_v42, %v4120_v12 }
 0x403   : > { %1975 = vmatprep.subr.mxu0 %v1425_v23  ;;  %v1673_v52 = vpop.permute.xlu0 %1672 }
 0x404   : > { %1976 = vmatpush1.msra.mxu0 %v1424_v50  ;;  %v1693_v50 = vsel %vm409_vm2, %v4952_v29, %v5016_v37  ;;  %v1692_v61 = vsel %vm409_vm2, %v4987_v0, %v1673_v52 }
 0x405   : > { %v1739_v49 = vpop.permute.xlu1 %1738  ;;  %1977 = vmatprep.subr.mxu0 %v1423_v60  ;;  %v1713_v60 = vmul.f32 %v1705_v39, %v1694_v13  ;;  %v1809_v13 = vrot.slane %v3847_v26, %v4120_v12 }
 0x406   : > { %v1743_v16 = vsel %vm433_vm0, %v1731_v53, %v1739_v49  ;;  %v1747_v33 = vsel %vm433_vm0, %v1739_v49, %v1731_v53  ;;  %1978 = vmatpush1.msra.mxu0 %v1422_v17  ;;  %v1741_v53 = vsel %vm433_vm0, %v4888_v58, %v4890_v4  ;;  %v1763_v4 = vmul.f32 %v1757_v27, %v1745_v36 }
 0x407   : > { %v1766_v56 = vmul.f32 %v1753_v55, %v1743_v16  ;;  %1979 = vmatprep.subr.mxu0 %v1421_v59  ;;  %v1627_v44 = vpop.permute.xlu0 %1626  ;;  %v1767_v48 = vmul.f32 %v1757_v27, %v1747_v33  ;;  %v1762_v30 = vmul.f32 %v1753_v55, %v1741_v53  ;;  %v1712_v17 = vmul.f32 %v1701_v14, %v1690_v43 }
 0x408   : > { %1980 = vmatpush1.msra.mxu0 %v1420_v20  ;;  %v1688_v55 = vsel %vm409_vm2, %v1673_v52, %v4987_v0  ;;  %v1649_v59 = vrot.slane %v3844_v42, %v4117_v11  ;;  %v1709_v20 = vmul.f32 %v1705_v39, %v1692_v61 }
 0x409   : > { %v1631_v19 = vpop.permute.xlu1 %1630  ;;  %1981 = vmatprep.subr.mxu0 %v1767_v48  ;;  %v1708_v16 = vmul.f32 %v1701_v14, %v1688_v55 }
 0x40a   : > { %1982 = vmatpush2.msra.mxu0 %v1766_v56 }
 0x40b   : > { %1983 = vmatprep.subr.mxu0 %v1765_v35  ;;  %v1625_v58 = vpop.permute.xlu0 %1624 }
 0x40c   : > { %1984 = vmatpush2.msra.mxu0 %v1764_v24  ;;  %v1642_v33 = vsel %vm385_vm3, %v5026_v5, %v1625_v58  ;;  %v1638_v31 = vsel %vm385_vm3, %v1625_v58, %v5026_v5 }
 0x40d   : > { %v1687_v47 = vpop.permute.xlu1 %1686  ;;  %1985 = vmatprep.subr.mxu0 %v1763_v4  ;;  %v1661_v24 = vmul.f32 %v1653_v63, %v1642_v33  ;;  %v1660_v8 = vmul.f32 %v1649_v59, %v1638_v31  ;;  %v1829_v33 = vld [vmem:[#allocation3 + $0x60] sm:$0xff]  ;;  %v1831_v31 = vld [vmem:[#allocation3 + $0x70] sm:$0xff] }
 0x40e   : > { %v1691_v45 = vsel %vm409_vm2, %v5000_v40, %v1687_v47  ;;  %v1695_v51 = vsel %vm409_vm2, %v1687_v47, %v5000_v40  ;;  %1986 = vmatpush2.msra.mxu0 %v1762_v30  ;;  %v1689_v40 = vsel %vm409_vm2, %v5016_v37, %v4952_v29  ;;  %v1711_v29 = vmul.f32 %v1705_v39, %v1693_v50 }
 0x40f   : > { %v1714_v23 = vmul.f32 %v1701_v14, %v1691_v45  ;;  %1987 = vmatprep.subr.mxu0 %v1761_v6  ;;  %v1623_v1 = vpop.permute.xlu0 %1622  ;;  %v1715_v54 = vmul.f32 %v1705_v39, %v1695_v51  ;;  %v1710_v37 = vmul.f32 %v1701_v14, %v1689_v40  ;;  %v1805_v47 = vrot.slane %v3847_v26, %v4117_v11 }
 0x410   : > { %1988 = vmatpush2.msra.mxu0 %v1760_v32  ;;  %v1641_v53 = vsel %vm385_vm3, %v1631_v19, %v1623_v1  ;;  %v1637_v35 = vsel %vm385_vm3, %v1623_v1, %v1631_v19 }
 0x411   : > { %v1629_v41 = vpop.permute.xlu1 %1628  ;;  %1989 = vmatprep.subr.mxu0 %v1715_v54  ;;  %v1659_v4 = vmul.f32 %v1653_v63, %v1641_v53  ;;  %v1658_v30 = vmul.f32 %v1649_v59, %v1637_v35  ;;  %v1837_v53 = vld [vmem:[#allocation3 + $0xa0] sm:$0xff]  ;;  %v1838_v35 = vld [vmem:[#allocation3 + $0xa8] sm:$0xff] }
 0x412   : > { %1990 = vmatpush2.msra.mxu0 %v1714_v23 }
 0x413   : > { %1991 = vmatprep.subr.mxu0 %v1713_v60  ;;  %v1621_v49 = vpop.permute.xlu0 %1620 }
 0x414   : > { %1992 = vmatpush2.msra.mxu0 %v1712_v17  ;;  %v1640_v5 = vsel %vm385_vm3, %v1629_v41, %v1621_v49  ;;  %v1636_v58 = vsel %vm385_vm3, %v1621_v49, %v1629_v41 }
 0x415   : > { %v1635_v27 = vpop.permute.xlu1 %1634  ;;  %1993 = vmatprep.subr.mxu0 %v1711_v29  ;;  %v1657_v39 = vmul.f32 %v1653_v63, %v1640_v5  ;;  %v1656_v45 = vmul.f32 %v1649_v59, %v1636_v58 }
 0x416   : > { %v1639_v0 = vsel %vm385_vm3, %v1627_v44, %v1635_v27  ;;  %v1643_v52 = vsel %vm385_vm3, %v1635_v27, %v1627_v44  ;;  %1994 = vmatpush2.msra.mxu0 %v1710_v37  ;;  %v3843_v44 = vld [vmem:[%s6112_s5 + $0x4] ss:$8 sm:$0x3] }
 0x417   : > { %v1662_v56 = vmul.f32 %v1649_v59, %v1639_v0  ;;  %1995 = vmatprep.subr.mxu0 %v1709_v20  ;;  %v1783_v48 = vpop.permute.xlu0 %1782  ;;  %v1663_v36 = vmul.f32 %v1653_v63, %v1643_v52  ;;  %v1597_v14 = vrot.slane %v3843_v44, %v4117_v11  ;;  %v1601_v32 = vrot.slane %v3843_v44, %v4120_v12  ;;  %v1833_v52 = vld [vmem:[#allocation3 + $0x80] sm:$0xff] }
 0x418   : > { %1996 = vmatpush2.msra.mxu0 %v1708_v16 }
 0x419   : > { %v1789_v15 = vpop.permute.xlu1 %1788  ;;  %1997 = vmatprep.subr.mxu0 %v1663_v36  ;;  %v1611_v40 = vmul.f32 %v1601_v32, %v4764_v7  ;;  %v1610_v60 = vmul.f32 %v1597_v14, %v4760_v18  ;;  %v1609_v61 = vmul.f32 %v1601_v32, %v4738_v34  ;;  %v1608_v55 = vmul.f32 %v1597_v14, %v4732_v62  ;;  %v1839_v36 = vld [vmem:[#allocation3 + $0xb0] sm:$0xff] }
 0x41a   : > { %1998 = vmatpush2.msra.mxu0 %v1662_v56  ;;  %v1607_v18 = vmul.f32 %v1601_v32, %v4714_v28  ;;  %v1606_v34 = vmul.f32 %v1597_v14, %v4710_v25  ;;  %v1605_v20 = vmul.f32 %v1601_v32, %v4690_v3  ;;  %v1604_v28 = vmul.f32 %v1597_v14, %v4688_v57  ;;  %v1832_v3 = vld [vmem:[#allocation3 + $0x78] sm:$0xff]  ;;  %v1835_v57 = vld [vmem:[#allocation3 + $0x90] sm:$0xff] }
 0x41b   : > { %1999 = vmatprep.subr.mxu0 %v1661_v24  ;;  %v1781_v19 = vpop.permute.xlu0 %1780  ;;  %v1836_v56 = vld [vmem:[#allocation3 + $0x98] sm:$0xff] }
 0x41c   : > { %2000 = vmatpush2.msra.mxu0 %v1660_v8  ;;  %v1798_v51 = vsel %vm457_vm1, %v1789_v15, %v1781_v19  ;;  %v1794_v1 = vsel %vm457_vm1, %v1781_v19, %v1789_v15  ;;  %v1840_v15 = vld [vmem:[#allocation3 + $0xb8] sm:$0xff] }
 0x41d   : > { %v1791_v6 = vpop.permute.xlu1 %1790  ;;  %2001 = vmatprep.subr.mxu0 %v1659_v4  ;;  %v1817_v42 = vmul.f32 %v1809_v13, %v1798_v51  ;;  %v1816_v49 = vmul.f32 %v1805_v47, %v1794_v1 }
 0x41e   : > { %v1795_v43 = vsel %vm457_vm1, %v1783_v48, %v1791_v6  ;;  %v1799_v23 = vsel %vm457_vm1, %v1791_v6, %v1783_v48  ;;  %2002 = vmatpush2.msra.mxu0 %v1658_v30  ;;  %v1834_v48 = vld [vmem:[#allocation3 + $0x88] sm:$0xff] }
 0x41f   : > { %v1818_v54 = vmul.f32 %v1805_v47, %v1795_v43  ;;  %2003 = vmatprep.subr.mxu0 %v1657_v39  ;;  %v1779_v50 = vpop.permute.xlu0 %1778  ;;  %v1819_v41 = vmul.f32 %v1809_v13, %v1799_v23 }
 0x420   : > { %2004 = vmatpush2.msra.mxu0 %v1656_v45 }
 0x421   : > { %v1787_v17 = vpop.permute.xlu1 %1786  ;;  %2005 = vmatprep.subr.mxu0 %v1611_v40  ;;  %2062 = vmatprep.subr.mxu1 %v1819_v41 }
 0x422   : > { %v1793_v29 = vsel %vm457_vm1, %v1779_v50, %v1787_v17  ;;  %v1797_v37 = vsel %vm457_vm1, %v1787_v17, %v1779_v50  ;;  %2006 = vmatpush2.msra.mxu0 %v1610_v60  ;;  %2063 = vmatpush1.msra.mxu1 %v1818_v54 }
 0x423   : > { %v1814_v7 = vmul.f32 %v1805_v47, %v1793_v29  ;;  %2007 = vmatprep.subr.mxu0 %v1609_v61  ;;  %2064 = vmatprep.subr.mxu1 %v1817_v42  ;;  %v1815_v59 = vmul.f32 %v1809_v13, %v1797_v37  ;;  %v1777_v62 = vpop.permute.xlu0 %1776 }
 0x424   : > { %2008 = vmatpush2.msra.mxu0 %v1608_v55  ;;  %2065 = vmatpush1.msra.mxu1 %v1816_v49 }
 0x425   : > { %v1785_v27 = vpop.permute.xlu1 %1784  ;;  %2009 = vmatprep.subr.mxu0 %v1607_v18  ;;  %2066 = vmatprep.subr.mxu1 %v1815_v59 }
 0x426   : > { %v1792_v63 = vsel %vm457_vm1, %v1777_v62, %v1785_v27  ;;  %v1796_v16 = vsel %vm457_vm1, %v1785_v27, %v1777_v62  ;;  %2010 = vmatpush2.msra.mxu0 %v1606_v34  ;;  %2067 = vmatpush1.msra.mxu1 %v1814_v7 }
 0x427   : > { %v1812_v0 = vmul.f32 %v1805_v47, %v1792_v63  ;;  %2011 = vmatprep.subr.mxu0 %v1605_v20  ;;  %v1813_v25 = vmul.f32 %v1809_v13, %v1796_v16 }
 0x428   : > { %2012 = vmatpush2.msra.mxu0 %v1604_v28 }
 0x429   : > { %2014 = vmatmul.mubr.f32.vlgmr.msra.gmra.mxu0 %v1829_v33  ;;  %2068 = vmatprep.subr.mxu1 %v1813_v25 }
 0x42a   : > { %2069 = vmatpush1.msra.mxu1 %v1812_v0  ;;  %2019 = vmatprep.mubr.f32.mxu0 %v1833_v52  ;;  %v2581_v52 = vld [vmem:[#allocation3 + $0xc8] sm:$0xff] }
 0x42b   : > { %3848 = vmatmul.mubr.msk.f32.vlgmr.msra.gmra.mxu1 %vm1185_vm9, %v1831_v31 }
 0x42c   : > { %2108 = vmatprep.mubr.f32.mxu1 %v3975_v2 }
 0x42d   : > { %2020 = vmatmul.mubr.f32.gmra.mxu0 %v1832_v3 }
 0x42e   : > { %2025 = vmatprep.mubr.f32.mxu0 %v1836_v56 }
 0x42f   : > { %3849 = vmatmul.mubr.msk.f32.gmra.mxu1 %vm1185_vm9, %v1834_v48 }
 0x430   : > { %2114 = vmatprep.mubr.f32.mxu1 %v3975_v2  ;;  %v5167_v24 = vpop.permute.xlu0 %1934 }
 0x431   : > { %2026 = vmatmul.mubr.f32.gmra.mxu0 %v1835_v57 }
 0x432   : > { %2031 = vmatprep.mubr.f32.mxu0 %v1839_v36  ;;  %v1930_v39 = vpop.permute.xlu1 %1929 }
 0x433   : > { %3850 = vmatmul.mubr.msk.f32.gmra.mxu1 %vm1185_vm9, %v1837_v53 }
 0x434   : > { %2120 = vmatprep.mubr.f32.mxu1 %v3975_v2  ;;  %v1920_v44 = vpop.permute.xlu0 %1919 }
 0x435   : > { %2032 = vmatmul.mubr.f32.gmra.mxu0 %v1838_v35 }
 0x436   : > { %2853 = vmatprep.mubr.f32.mxu0 %v3975_v2  ;;  %v1925_v13 = vpop.permute.xlu1 %1924 }
 0x437   : > { %3851 = vmatmul.mubr.msk.f32.gmra.mxu1 %vm1185_vm9, %v1840_v15  ;;  %v3982_v15 = vmov 3  }
 0x438   : > { %2764 = vmatprep.mubr.f32.mxu1 %v2581_v52  ;;  %3923 = vset.pattern.permute.xlu1 %v3982_v15 }
 0x439   : > { %3924 = vset.pattern.permute.xlu0 %v3982_v15 }
 0x4e9   : > { %v2015_v8 = vpop.f32.mrf.mxu0 }
 0x4ea   : > { %v2016_v5 = vadd.f32 %v2015_v8, %v1920_v44 }
 0x4eb   : > { %v2017_v26 = vpop.f32.mrf.mxu0  ;;  %v2104_v58 = vpop.f32.mrf.mxu1 }
 0x4ec   : > { %v2018_v19 = vadd.f32 %v2017_v26, %v1920_v44  ;;  %v2105_v4 = vadd.f32 %v2104_v58, %v2016_v5 }
 0x4ed   : > { %v2106_v30 = vpop.f32.mrf.mxu1  ;;  %v2021_v32 = vpop.f32.mrf.mxu0 }
 0x4ee   : > { %v5169_v14 = vmax.f32 %v2105_v4, 0.0  ;;  %v2107_v47 = vadd.f32 %v2106_v30, %v2018_v19  ;;  %v2022_v45 = vadd.f32 %v2021_v32, %v1925_v13 }
 0x4ef   : > { %v2023_v51 = vpop.f32.mrf.mxu0  ;;  %v2110_v43 = vpop.f32.mrf.mxu1 }
 0x4f0   : > { %v5171_v6 = vmax.f32 %v2107_v47, 0.0  ;;  %2291 = vrot.lane.b32.xlu1 %v5169_v14, %s3974_s15  ;;  %v2024_v23 = vadd.f32 %v2023_v51, %v1925_v13  ;;  %v2111_v1 = vadd.f32 %v2110_v43, %v2022_v45 }
 0x4f1   : > { %v2112_v54 = vpop.f32.mrf.mxu1  ;;  %v2027_v60 = vpop.f32.mrf.mxu0 }
 0x4f2   : > { %2299 = vrot.lane.b32.xlu0 %v5171_v6, %s3974_s15  ;;  %v2113_v50 = vadd.f32 %v2112_v54, %v2024_v23  ;;  %v5191_v40 = vmax.f32 %v2111_v1, 0.0  ;;  %v2028_v17 = vadd.f32 %v2027_v60, %v1930_v39  ;;  %v3854_v1 = vld [vmem:[%s6112_s5 + $0x3] ss:$8 sm:$0x3] }
 0x4f3   : > { %v2029_v61 = vpop.f32.mrf.mxu0  ;;  %v2116_v42 = vpop.f32.mrf.mxu1 }
 0x4f4   : > { %2239 = vrot.lane.b32.xlu1 %v5169_v14, %s3976_s16  ;;  %v5195_v41 = vmax.f32 %v2113_v50, 0.0  ;;  %v2030_v55 = vadd.f32 %v2029_v61, %v1930_v39  ;;  %v2117_v49 = vadd.f32 %v2116_v42, %v2028_v17  ;;  %v2320_v50 = vrot.slane %v3854_v1, %v4117_v11 }
 0x4f5   : > { %v2118_v29 = vpop.f32.mrf.mxu1  ;;  %v2033_v59 = vpop.f32.mrf.mxu0  ;;  %v2324_v17 = vrot.slane %v3854_v1, %v4120_v12 }
 0x4f6   : > { %2247 = vrot.lane.b32.xlu0 %v5171_v6, %s3976_s16  ;;  %v2119_v37 = vadd.f32 %v2118_v29, %v2030_v55  ;;  %v5215_v7 = vmax.f32 %v2117_v49, 0.0  ;;  %v2034_v27 = vadd.f32 %v2033_v59, %v5167_v24 }
 0x4f7   : > { %v2035_v34 = vpop.f32.mrf.mxu0  ;;  %v2122_v62 = vpop.f32.mrf.mxu1 }
 0x4f8   : > { %2187 = vrot.lane.b32.xlu1 %v5169_v14, %s3977_s17  ;;  %v5219_v18 = vmax.f32 %v2119_v37, 0.0  ;;  %v2036_v20 = vadd.f32 %v2035_v34, %v5167_v24  ;;  %v2123_v16 = vadd.f32 %v2122_v62, %v2034_v27 }
 0x4f9   : > { %v2124_v63 = vpop.f32.mrf.mxu1 }
 0x4fa   : > { %2195 = vrot.lane.b32.xlu0 %v5171_v6, %s3977_s17  ;;  %v2125_v28 = vadd.f32 %v2124_v63, %v2036_v20  ;;  %v5241_v33 = vmax.f32 %v2123_v16, 0.0  ;;  %v3853_v16 = vld [vmem:[%s6112_s5 + $0x2] ss:$8 sm:$0x3] }
 0x4fc   : > { %2135 = vrot.lane.b32.xlu1 %v5169_v14, %s3978_s18  ;;  %v5245_v0 = vmax.f32 %v2125_v28, 0.0 }
 0x4fe   : > { %2143 = vrot.lane.b32.xlu0 %v5171_v6, %s3978_s18 }
 0x500   : > { %2475 = vrot.lane.b32.xlu1 %v5169_v14, %s3970_s11 }
 0x502   : > { %2483 = vrot.lane.b32.xlu0 %v5171_v6, %s3970_s11 }
 0x504   : > { %2293 = vrot.lane.b32.xlu1 %v5191_v40, %s3974_s15 }
 0x506   : > { %2301 = vrot.lane.b32.xlu0 %v5195_v41, %s3974_s15 }
 0x508   : > { %2241 = vrot.lane.b32.xlu1 %v5191_v40, %s3976_s16 }
 0x50a   : > { %2249 = vrot.lane.b32.xlu0 %v5195_v41, %s3976_s16 }
 0x50c   : > { %2189 = vrot.lane.b32.xlu1 %v5191_v40, %s3977_s17 }
 0x50e   : > { %2197 = vrot.lane.b32.xlu0 %v5195_v41, %s3977_s17 }
 0x510   : > { %2137 = vrot.lane.b32.xlu1 %v5191_v40, %s3978_s18 }
 0x512   : > { %2145 = vrot.lane.b32.xlu0 %v5195_v41, %s3978_s18 }
 0x514   : > { %2477 = vrot.lane.b32.xlu1 %v5191_v40, %s3970_s11 }
 0x516   : > { %2485 = vrot.lane.b32.xlu0 %v5195_v41, %s3970_s11 }
 0x518   : > { %2295 = vrot.lane.b32.xlu1 %v5215_v7, %s3974_s15 }
 0x51a   : > { %2303 = vrot.lane.b32.xlu0 %v5219_v18, %s3974_s15 }
 0x51c   : > { %2243 = vrot.lane.b32.xlu1 %v5215_v7, %s3976_s16 }
 0x51e   : > { %2251 = vrot.lane.b32.xlu0 %v5219_v18, %s3976_s16 }
 0x520   : > { %2191 = vrot.lane.b32.xlu1 %v5215_v7, %s3977_s17 }
 0x522   : > { %2199 = vrot.lane.b32.xlu0 %v5219_v18, %s3977_s17 }
 0x524   : > { %2139 = vrot.lane.b32.xlu1 %v5215_v7, %s3978_s18 }
 0x526   : > { %2147 = vrot.lane.b32.xlu0 %v5219_v18, %s3978_s18 }
 0x528   : > { %2479 = vrot.lane.b32.xlu1 %v5215_v7, %s3970_s11 }
 0x52a   : > { %2487 = vrot.lane.b32.xlu0 %v5219_v18, %s3970_s11 }
 0x52c   : > { %2297 = vrot.lane.b32.xlu1 %v5241_v33, %s3974_s15 }
 0x52e   : > { %2305 = vrot.lane.b32.xlu0 %v5245_v0, %s3974_s15 }
 0x530   : > { %2427 = vrot.lane.b32.xlu1 %v5215_v7, %s3972_s13 }
 0x532   : > { %2435 = vrot.lane.b32.xlu0 %v5219_v18, %s3972_s13 }
 0x534   : > { %2245 = vrot.lane.b32.xlu1 %v5241_v33, %s3976_s16 }
 0x536   : > { %2253 = vrot.lane.b32.xlu0 %v5245_v0, %s3976_s16 }
 0x538   : > { %2193 = vrot.lane.b32.xlu1 %v5241_v33, %s3977_s17 }
 0x53a   : > { %2433 = vrot.lane.b32.xlu0 %v5195_v41, %s3972_s13 }
 0x53c   : > { %2141 = vrot.lane.b32.xlu1 %v5241_v33, %s3978_s18 }
 0x53e   : > { %2201 = vrot.lane.b32.xlu0 %v5245_v0, %s3977_s17 }
 0x540   : > { %2481 = vrot.lane.b32.xlu1 %v5241_v33, %s3970_s11 }
 0x542   : > { %2431 = vrot.lane.b32.xlu0 %v5171_v6, %s3972_s13 }
 0x544   : > { %2429 = vrot.lane.b32.xlu1 %v5241_v33, %s3972_s13 }
 0x546   : > { %2149 = vrot.lane.b32.xlu0 %v5245_v0, %s3978_s18 }
 0x548   : > { %2425 = vrot.lane.b32.xlu1 %v5191_v40, %s3972_s13 }
 0x54a   : > { %2383 = vrot.lane.b32.xlu0 %v5219_v18, %s3973_s14 }
 0x54c   : > { %2423 = vrot.lane.b32.xlu1 %v5169_v14, %s3972_s13 }
 0x54e   : > { %2489 = vrot.lane.b32.xlu0 %v5245_v0, %s3970_s11 }
 0x550   : > { %2377 = vrot.lane.b32.xlu1 %v5241_v33, %s3973_s14 }
 0x552   : > { %2381 = vrot.lane.b32.xlu0 %v5195_v41, %s3973_s14 }
 0x554   : > { %2375 = vrot.lane.b32.xlu1 %v5215_v7, %s3973_s14 }
 0x556   : > { %2437 = vrot.lane.b32.xlu0 %v5245_v0, %s3972_s13 }
 0x558   : > { %2373 = vrot.lane.b32.xlu1 %v5191_v40, %s3973_s14 }
 0x55a   : > { %2379 = vrot.lane.b32.xlu0 %v5171_v6, %s3973_s14 }
 0x55c   : > { %2371 = vrot.lane.b32.xlu1 %v5169_v14, %s3973_s14 }
 0x55e   : > { %2385 = vrot.lane.b32.xlu0 %v5245_v0, %s3973_s14 }
 0x560   : > { %2533 = vrot.lane.b32.xlu1 %v5241_v33, %s3971_s12 }
 0x562   : > { %2539 = vrot.lane.b32.xlu0 %v5219_v18, %s3971_s12  ;;  %v5303_v25 = vpop.permute.xlu1 %2291 }
 0x564   : > { %v5305_v31 = vpop.permute.xlu0 %2299  ;;  %2531 = vrot.lane.b32.xlu1 %v5215_v7, %s3971_s12 }
 0x565   : > { %v2307_v63 = vsel %vm344_vm4, %v5303_v25, %v5305_v31  ;;  %v2311_v52 = vsel %vm344_vm4, %v5305_v31, %v5303_v25 }
 0x566   : > { %2541 = vrot.lane.b32.xlu0 %v5245_v0, %s3971_s12  ;;  %v5311_v3 = vpop.permute.xlu1 %2239  ;;  %v2328_v1 = vmul.f32 %v2324_v17, %v2307_v63 }
 0x568   : > { %v5313_v56 = vpop.permute.xlu0 %2247  ;;  %2529 = vrot.lane.b32.xlu1 %v5191_v40, %s3971_s12 }
 0x56a   : > { %2537 = vrot.lane.b32.xlu0 %v5195_v41, %s3971_s12  ;;  %v5319_v48 = vpop.permute.xlu1 %2187 }
 0x56c   : > { %v5321_v57 = vpop.permute.xlu0 %2195  ;;  %2527 = vrot.lane.b32.xlu1 %v5169_v14, %s3971_s12 }
 0x56e   : > { %2535 = vrot.lane.b32.xlu0 %v5171_v6, %s3971_s12  ;;  %v5327_v36 = vpop.permute.xlu1 %2135 }
 0x570   : > { %v5329_v53 = vpop.permute.xlu0 %2143  ;;  %2685 = vperm.xlu1 %3923, %v4855_v21  }
 0x572   : > { %v5331_v35 = vpop.permute.xlu1 %2475  ;;  %2680 = vperm.xlu0 %3924, %v4860_v22  }
 0x574   : > { %v5333_v24 = vpop.permute.xlu0 %2483  ;;  %2675 = vperm.xlu1 %3923, %v4874_v46  }
 0x576   : > { %v2294_v44 = vpop.permute.xlu1 %2293 }
 0x578   : > { %v2302_v8 = vpop.permute.xlu0 %2301  ;;  %2670 = vperm.xlu1 %3923, %v4869_v38  }
 0x579   : > { %v2308_v34 = vsel %vm344_vm4, %v2294_v44, %v2302_v8  ;;  %v2312_v62 = vsel %vm344_vm4, %v2302_v8, %v2294_v44 }
 0x57a   : > { %v5338_v5 = vpop.permute.xlu1 %2241  ;;  %v2330_v44 = vmul.f32 %v2324_v17, %v2308_v34  ;;  %v2329_v8 = vmul.f32 %v2320_v50, %v2312_v62 }
 0x57c   : > { %v5340_v26 = vpop.permute.xlu0 %2249 }
 0x57e   : > { %v5343_v58 = vpop.permute.xlu1 %2189 }
 0x580   : > { %v5345_v19 = vpop.permute.xlu0 %2197 }
 0x582   : > { %v5347_v4 = vpop.permute.xlu1 %2137 }
 0x584   : > { %v5349_v30 = vpop.permute.xlu0 %2145 }
 0x586   : > { %v5351_v21 = vpop.permute.xlu1 %2477 }
 0x588   : > { %v5353_v22 = vpop.permute.xlu0 %2485 }
 0x58a   : > { %v2296_v47 = vpop.permute.xlu1 %2295 }
 0x58c   : > { %v2304_v46 = vpop.permute.xlu0 %2303 }
 0x58d   : > { %v2309_v61 = vsel %vm344_vm4, %v2296_v47, %v2304_v46  ;;  %v2313_v49 = vsel %vm344_vm4, %v2304_v46, %v2296_v47  ;;  %v2268_v47 = vrot.slane %v3853_v16, %v4117_v11 }
 0x58e   : > { %v2244_v39 = vpop.permute.xlu1 %2243  ;;  %v2332_v20 = vmul.f32 %v2324_v17, %v2309_v61  ;;  %v2331_v28 = vmul.f32 %v2320_v50, %v2313_v49 }
 0x590   : > { %v2252_v32 = vpop.permute.xlu0 %2251 }
 0x591   : > { %v2257_v61 = vsel %vm320_vm5, %v2244_v39, %v2252_v32  ;;  %v2261_v31 = vsel %vm320_vm5, %v2252_v32, %v2244_v39  ;;  %v2255_v39 = vsel %vm320_vm5, %v5311_v3, %v5313_v56  ;;  %v3852_v32 = vld [vmem:[%s6112_s5 + $0x1] ss:$8 sm:$0x3] }
 0x592   : > { %v5355_v13 = vpop.permute.xlu1 %2191  ;;  %v2279_v62 = vmul.f32 %v2268_v47, %v2261_v31 }
 0x594   : > { %v5357_v45 = vpop.permute.xlu0 %2199 }
 0x596   : > { %v5359_v38 = vpop.permute.xlu1 %2139 }
 0x598   : > { %v5361_v51 = vpop.permute.xlu0 %2147 }
 0x59a   : > { %v5363_v43 = vpop.permute.xlu1 %2479 }
 0x59c   : > { %v5365_v23 = vpop.permute.xlu0 %2487 }
 0x59e   : > { %v2298_v54 = vpop.permute.xlu1 %2297 }
 0x5a0   : > { %v2306_v60 = vpop.permute.xlu0 %2305 }
 0x5a1   : > { %v2310_v42 = vsel %vm344_vm4, %v2298_v54, %v2306_v60  ;;  %v2314_v55 = vsel %vm344_vm4, %v2306_v60, %v2298_v54  ;;  %v2272_v54 = vrot.slane %v3853_v16, %v4120_v12  ;;  %v2327_v60 = vmul.f32 %v2320_v50, %v2311_v52 }
 0x5a2   : > { %v2333_v29 = vmul.f32 %v2320_v50, %v2314_v55  ;;  %v5380_v37 = vpop.permute.xlu1 %2427  ;;  %v2334_v59 = vmul.f32 %v2324_v17, %v2310_v42  ;;  %v2256_v50 = vsel %vm320_vm5, %v5338_v5, %v5340_v26  ;;  %v2216_v16 = vrot.slane %v3852_v32, %v4117_v11 }
 0x5a3   : > { %v2280_v34 = vmul.f32 %v2272_v54, %v2257_v61  ;;  %v2208_v61 = vsel %vm296_vm6, %v5345_v19, %v5343_v58 }
 0x5a4   : > { %v5386_v27 = vpop.permute.xlu0 %2435  ;;  %2700 = vmatprep.subr.mxu1 %v2334_v59 }
 0x5a5   : > { %2701 = vmatpush1.msra.mxu1 %v2333_v29  ;;  %v2260_v29 = vsel %vm320_vm5, %v5340_v26, %v5338_v5  ;;  %v2259_v5 = vsel %vm320_vm5, %v5313_v56, %v5311_v3 }
 0x5a6   : > { %2702 = vmatprep.subr.mxu1 %v2332_v20  ;;  %v2246_v15 = vpop.permute.xlu1 %2245  ;;  %v2278_v20 = vmul.f32 %v2272_v54, %v2256_v50  ;;  %v2277_v63 = vmul.f32 %v2268_v47, %v2260_v29 }
 0x5a7   : > { %2703 = vmatpush1.msra.mxu1 %v2331_v28  ;;  %v2220_v28 = vrot.slane %v3852_v32, %v4120_v12  ;;  %v2153_v32 = vsel %vm273_vm7, %v5359_v38, %v5361_v51 }
 0x5a8   : > { %v2254_v46 = vpop.permute.xlu0 %2253  ;;  %2704 = vmatprep.subr.mxu1 %v2330_v44  ;;  %v2275_v44 = vmul.f32 %v2268_v47, %v2259_v5 }
 0x5a9   : > { %v2258_v42 = vsel %vm320_vm5, %v2246_v15, %v2254_v46  ;;  %v2262_v25 = vsel %vm320_vm5, %v2254_v46, %v2246_v15  ;;  %2705 = vmatpush1.msra.mxu1 %v2329_v8  ;;  %v2276_v15 = vmul.f32 %v2272_v54, %v2255_v39  ;;  %v2205_v8 = vsel %vm296_vm6, %v5355_v13, %v5357_v45 }
 0x5aa   : > { %v2281_v55 = vmul.f32 %v2268_v47, %v2262_v25  ;;  %2706 = vmatprep.subr.mxu1 %v2328_v1  ;;  %v2194_v49 = vpop.permute.xlu1 %2193  ;;  %v2282_v17 = vmul.f32 %v2272_v54, %v2258_v42  ;;  %v2209_v46 = vsel %vm296_vm6, %v5357_v45, %v5355_v13  ;;  %v2228_v25 = vmul.f32 %v2220_v28, %v2205_v8  ;;  %v2159_v45 = vld [vmem:[%s6112_s5] ss:$8 sm:$0x3] }
 0x5ab   : > { %2707 = vmatpush1.msra.mxu1 %v2327_v60  ;;  %v2204_v60 = vsel %vm296_vm6, %v5343_v58, %v5345_v19  ;;  %v2203_v13 = vsel %vm296_vm6, %v5319_v48, %v5321_v57  ;;  %v2227_v31 = vmul.f32 %v2216_v16, %v2209_v46  ;;  %v2207_v58 = vsel %vm296_vm6, %v5321_v57, %v5319_v48 }
 0x5ac   : > { %v5417_v59 = vpop.permute.xlu0 %2433  ;;  %2708 = vmatprep.subr.mxu1 %v2282_v17  ;;  %v2164_v17 = vrot.slane %v2159_v45, %v4117_v11  ;;  %v2168_v50 = vrot.slane %v2159_v45, %v4120_v12  ;;  %v2223_v39 = vmul.f32 %v2216_v16, %v2207_v58 }
 0x5ad   : > { %2709 = vmatpush1.msra.mxu1 %v2281_v55  ;;  %v2226_v55 = vmul.f32 %v2220_v28, %v2204_v60  ;;  %v2497_v60 = vsel %vm433_vm0, %v5365_v23, %v5363_v43 }
 0x5ae   : > { %2710 = vmatprep.subr.mxu1 %v2280_v34  ;;  %v2142_v26 = vpop.permute.xlu1 %2141  ;;  %v2224_v34 = vmul.f32 %v2220_v28, %v2203_v13 }
 0x5af   : > { %2711 = vmatpush1.msra.mxu1 %v2279_v62  ;;  %v2157_v62 = vsel %vm273_vm7, %v5361_v51, %v5359_v38  ;;  %v2176_v38 = vmul.f32 %v2168_v50, %v2153_v32  ;;  %v2151_v51 = vsel %vm273_vm7, %v5327_v36, %v5329_v53 }
 0x5b0   : > { %v2202_v52 = vpop.permute.xlu0 %2201  ;;  %2712 = vmatprep.subr.mxu1 %v2278_v20 }
 0x5b1   : > { %v2206_v3 = vsel %vm296_vm6, %v2194_v49, %v2202_v52  ;;  %v2210_v56 = vsel %vm296_vm6, %v2202_v52, %v2194_v49  ;;  %2713 = vmatpush1.msra.mxu1 %v2277_v63  ;;  %v2225_v49 = vmul.f32 %v2216_v16, %v2208_v61  ;;  %v3858_v52 = vld [vmem:[%s6112_s5 + $0x7] ss:$8 sm:$0x3]  ;;  %v2493_v61 = vsel %vm433_vm0, %v5363_v43, %v5365_v23 }
 0x5b2   : > { %v2229_v1 = vmul.f32 %v2216_v16, %v2210_v56  ;;  %v2230_v54 = vmul.f32 %v2220_v28, %v2206_v3  ;;  %2714 = vmatprep.subr.mxu1 %v2276_v15  ;;  %v2482_v47 = vpop.permute.xlu1 %2481  ;;  %v2152_v16 = vsel %vm273_vm7, %v5347_v4, %v5349_v30  ;;  %v2175_v15 = vmul.f32 %v2164_v17, %v2157_v62 }
 0x5b3   : > { %2715 = vmatpush1.msra.mxu1 %v2275_v44  ;;  %v2174_v44 = vmul.f32 %v2168_v50, %v2152_v16  ;;  %v2504_v3 = vrot.slane %v3858_v52, %v4117_v11  ;;  %v2508_v56 = vrot.slane %v3858_v52, %v4120_v12  ;;  %v2495_v43 = vsel %vm433_vm0, %v5333_v24, %v5331_v35 }
 0x5b4   : > { %v5452_v42 = vpop.permute.xlu0 %2431  ;;  %2716 = vmatprep.subr.mxu1 %v2230_v54  ;;  %v2441_v62 = vsel %vm409_vm2, %v5380_v37, %v5386_v27 }
 0x5b5   : > { %2717 = vmatpush1.msra.mxu1 %v2229_v1  ;;  %v2172_v1 = vmul.f32 %v2168_v50, %v2151_v51  ;;  %v2515_v23 = vmul.f32 %v2504_v3, %v2493_v61  ;;  %v2512_v32 = vmul.f32 %v2508_v56, %v2495_v43 }
 0x5b6   : > { %2718 = vmatprep.subr.mxu1 %v2228_v25  ;;  %v5465_v19 = vpop.permute.xlu1 %2429 }
 0x5b7   : > { %2719 = vmatpush1.msra.mxu1 %v2227_v31  ;;  %v2496_v31 = vsel %vm433_vm0, %v5353_v22, %v5351_v21 }
 0x5b8   : > { %v2150_v29 = vpop.permute.xlu0 %2149  ;;  %2720 = vmatprep.subr.mxu1 %v2226_v55  ;;  %v2516_v55 = vmul.f32 %v2508_v56, %v2497_v60 }
 0x5b9   : > { %v2154_v48 = vsel %vm273_vm7, %v2142_v26, %v2150_v29  ;;  %v2158_v57 = vsel %vm273_vm7, %v2150_v29, %v2142_v26  ;;  %2721 = vmatpush1.msra.mxu1 %v2225_v49  ;;  %v2156_v26 = vsel %vm273_vm7, %v5349_v30, %v5347_v4  ;;  %v2155_v4 = vsel %vm273_vm7, %v5329_v53, %v5327_v36  ;;  %v3857_v49 = vld [vmem:[%s6112_s5 + $0x6] ss:$8 sm:$0x3] }
 0x5ba   : > { %v2177_v5 = vmul.f32 %v2164_v17, %v2158_v57  ;;  %v2178_v20 = vmul.f32 %v2168_v50, %v2154_v48  ;;  %2722 = vmatprep.subr.mxu1 %v2224_v34  ;;  %v5481_v63 = vpop.permute.xlu1 %2425  ;;  %v2173_v8 = vmul.f32 %v2164_v17, %v2156_v26  ;;  %v2171_v54 = vmul.f32 %v2164_v17, %v2155_v4 }
 0x5bb   : > { %2723 = vmatpush1.msra.mxu1 %v2223_v39  ;;  %v2514_v17 = vmul.f32 %v2508_v56, %v2496_v31  ;;  %v2452_v29 = vrot.slane %v3857_v49, %v4117_v11  ;;  %v2456_v34 = vrot.slane %v3857_v49, %v4120_v12  ;;  %v2445_v57 = vsel %vm409_vm2, %v5386_v27, %v5380_v37  ;;  %v3856_v27 = vld [vmem:[%s6112_s5 + $0x5] ss:$8 sm:$0x3] }
 0x5bc   : > { %v5491_v28 = vpop.permute.xlu0 %2383  ;;  %2724 = vmatprep.subr.mxu1 %v2178_v20  ;;  %v2444_v26 = vsel %vm409_vm2, %v5417_v59, %v5481_v63 }
 0x5bd   : > { %2725 = vmatpush1.msra.mxu1 %v2177_v5  ;;  %v2464_v51 = vmul.f32 %v2456_v34, %v2445_v57  ;;  %v2463_v52 = vmul.f32 %v2452_v29, %v2441_v62 }
 0x5be   : > { %2726 = vmatprep.subr.mxu1 %v2176_v38  ;;  %v2424_v30 = vpop.permute.xlu1 %2423 }
 0x5bf   : > { %2727 = vmatpush1.msra.mxu1 %v2175_v15  ;;  %v2443_v37 = vsel %vm409_vm2, %v5452_v42, %v2424_v30  ;;  %v2462_v15 = vmul.f32 %v2456_v34, %v2444_v26  ;;  %v2439_v4 = vsel %vm409_vm2, %v2424_v30, %v5452_v42 }
 0x5c0   : > { %v2490_v46 = vpop.permute.xlu0 %2489  ;;  %2728 = vmatprep.subr.mxu1 %v2174_v44  ;;  %v2460_v44 = vmul.f32 %v2456_v34, %v2443_v37 }
 0x5c1   : > { %v2494_v36 = vsel %vm433_vm0, %v2482_v47, %v2490_v46  ;;  %v2498_v53 = vsel %vm433_vm0, %v2490_v46, %v2482_v47  ;;  %2729 = vmatpush1.msra.mxu1 %v2173_v8  ;;  %v2492_v47 = vsel %vm433_vm0, %v5351_v21, %v5353_v22  ;;  %v2491_v21 = vsel %vm433_vm0, %v5331_v35, %v5333_v24 }
 0x5c2   : > { %v2517_v25 = vmul.f32 %v2504_v3, %v2494_v36  ;;  %v2518_v13 = vmul.f32 %v2508_v56, %v2498_v53  ;;  %2730 = vmatprep.subr.mxu1 %v2172_v1  ;;  %v2378_v45 = vpop.permute.xlu1 %2377  ;;  %v2513_v50 = vmul.f32 %v2504_v3, %v2492_v47  ;;  %v2511_v48 = vmul.f32 %v2504_v3, %v2491_v21 }
 0x5c3   : > { %2731 = vmatpush1.msra.mxu1 %v2171_v54  ;;  %v2400_v8 = vrot.slane %v3856_v27, %v4117_v11  ;;  %v2404_v3 = vrot.slane %v3856_v27, %v4120_v12  ;;  %v2459_v46 = vmul.f32 %v2452_v29, %v2439_v4 }
 0x5c4   : > { %v5526_v58 = vpop.permute.xlu0 %2381  ;;  %2732 = vmatprep.subr.mxu1 %v2518_v13 }
 0x5c5   : > { %2733 = vmatpush2.msra.mxu1 %v2517_v25 }
 0x5c6   : > { %2734 = vmatprep.subr.mxu1 %v2516_v55  ;;  %v2376_v22 = vpop.permute.xlu1 %2375  ;;  %v3859_v55 = vld [vmem:[%s6112_s5 + $0x10] ss:$8 sm:$0x3] }
 0x5c7   : > { %2735 = vmatpush2.msra.mxu1 %v2515_v23  ;;  %v2393_v1 = vsel %vm385_vm3, %v5491_v28, %v2376_v22  ;;  %v2389_v30 = vsel %vm385_vm3, %v2376_v22, %v5491_v28  ;;  %v3855_v28 = vld [vmem:[%s6112_s5 + $0x4] ss:$8 sm:$0x3] }
 0x5c8   : > { %v2438_v39 = vpop.permute.xlu0 %2437  ;;  %2736 = vmatprep.subr.mxu1 %v2514_v17  ;;  %v2412_v25 = vmul.f32 %v2404_v3, %v2393_v1  ;;  %v2411_v31 = vmul.f32 %v2400_v8, %v2389_v30  ;;  %v2348_v21 = vrot.slane %v3855_v28, %v4117_v11  ;;  %v2556_v17 = vrot.slane %v3859_v55, %v4117_v11  ;;  %v2587_v1 = vld [vmem:[#allocation3 + $0xf8] sm:$0xff]  ;;  %v2588_v30 = vld [vmem:[#allocation3 + $0x100] sm:$0xff] }
 0x5c9   : > { %v2442_v35 = vsel %vm409_vm2, %v5465_v19, %v2438_v39  ;;  %v2446_v24 = vsel %vm409_vm2, %v2438_v39, %v5465_v19  ;;  %2737 = vmatpush2.msra.mxu1 %v2513_v50  ;;  %v2440_v19 = vsel %vm409_vm2, %v5481_v63, %v5417_v59  ;;  %v2560_v50 = vrot.slane %v3859_v55, %v4120_v12 }
 0x5ca   : > { %v2465_v5 = vmul.f32 %v2452_v29, %v2442_v35  ;;  %v2466_v20 = vmul.f32 %v2456_v34, %v2446_v24  ;;  %2738 = vmatprep.subr.mxu1 %v2512_v32  ;;  %v2374_v16 = vpop.permute.xlu1 %2373  ;;  %v2461_v63 = vmul.f32 %v2452_v29, %v2440_v19  ;;  %v2352_v34 = vrot.slane %v3855_v28, %v4120_v12 }
 0x5cb   : > { %2739 = vmatpush2.msra.mxu1 %v2511_v48  ;;  %v2392_v61 = vsel %vm385_vm3, %v5526_v58, %v2374_v16  ;;  %v2388_v13 = vsel %vm385_vm3, %v2374_v16, %v5526_v58  ;;  %v2361_v16 = vmul.f32 %v2348_v21, %v5241_v33 }
 0x5cc   : > { %v2380_v38 = vpop.permute.xlu0 %2379  ;;  %2740 = vmatprep.subr.mxu1 %v2466_v20  ;;  %v2410_v43 = vmul.f32 %v2404_v3, %v2392_v61  ;;  %v2409_v49 = vmul.f32 %v2400_v8, %v2388_v13  ;;  %v2362_v20 = vmul.f32 %v2352_v34, %v5245_v0  ;;  %v2358_v33 = vmul.f32 %v2352_v34, %v5195_v41 }
 0x5cd   : > { %2741 = vmatpush2.msra.mxu1 %v2465_v5  ;;  %v2355_v41 = vmul.f32 %v2348_v21, %v5169_v14  ;;  %v2586_v14 = vld [vmem:[#allocation3 + $0xf0] sm:$0xff] }
 0x5ce   : > { %2742 = vmatprep.subr.mxu1 %v2464_v51  ;;  %v2372_v59 = vpop.permute.xlu1 %2371  ;;  %v2359_v51 = vmul.f32 %v2348_v21, %v5215_v7 }
 0x5cf   : > { %2743 = vmatpush2.msra.mxu1 %v2463_v52  ;;  %v2391_v47 = vsel %vm385_vm3, %v2380_v38, %v2372_v59  ;;  %v2387_v23 = vsel %vm385_vm3, %v2372_v59, %v2380_v38  ;;  %v2360_v38 = vmul.f32 %v2352_v34, %v5219_v18  ;;  %v2357_v18 = vmul.f32 %v2348_v21, %v5191_v40  ;;  %v2584_v40 = vld [vmem:[#allocation3 + $0xe0] sm:$0xff] }
 0x5d0   : > { %v2386_v56 = vpop.permute.xlu0 %2385  ;;  %2744 = vmatprep.subr.mxu1 %v2462_v15  ;;  %v2408_v22 = vmul.f32 %v2404_v3, %v2391_v47  ;;  %v2407_v39 = vmul.f32 %v2400_v8, %v2387_v23  ;;  %v2356_v59 = vmul.f32 %v2352_v34, %v5171_v6  ;;  %v2583_v6 = vld [vmem:[#allocation3 + $0xd8] sm:$0xff] }
 0x5d1   : > { %v2390_v54 = vsel %vm385_vm3, %v2378_v45, %v2386_v56  ;;  %v2394_v42 = vsel %vm385_vm3, %v2386_v56, %v2378_v45  ;;  %2745 = vmatpush2.msra.mxu1 %v2461_v63 }
 0x5d2   : > { %v2413_v60 = vmul.f32 %v2400_v8, %v2390_v54  ;;  %v2414_v36 = vmul.f32 %v2404_v3, %v2394_v42  ;;  %2746 = vmatprep.subr.mxu1 %v2460_v44  ;;  %v2534_v53 = vpop.permute.xlu1 %2533  ;;  %v2580_v8 = vld [vmem:[#allocation3 + $0xc0] sm:$0xff]  ;;  %v2585_v54 = vld [vmem:[#allocation3 + $0xe8] sm:$0xff]  ;;  %v2590_v42 = vld [vmem:[#allocation3 + $0x110] sm:$0xff] }
 0x5d3   : > { %2747 = vmatpush2.msra.mxu1 %v2459_v46  ;;  %v2582_v46 = vld [vmem:[#allocation3 + $0xd0] sm:$0xff] }
 0x5d4   : > { %v2540_v45 = vpop.permute.xlu0 %2539  ;;  %2748 = vmatprep.subr.mxu1 %v2414_v36  ;;  %v2591_v36 = vld [vmem:[#allocation3 + $0x118] sm:$0xff] }
 0x5d5   : > { %2749 = vmatpush2.msra.mxu1 %v2413_v60  ;;  %v2589_v60 = vld [vmem:[#allocation3 + $0x108] sm:$0xff] }
 0x5d6   : > { %2750 = vmatprep.subr.mxu1 %v2412_v25  ;;  %v2532_v58 = vpop.permute.xlu1 %2531 }
 0x5d7   : > { %2751 = vmatpush2.msra.mxu1 %v2411_v31  ;;  %v2549_v32 = vsel %vm457_vm1, %v2540_v45, %v2532_v58  ;;  %v2545_v35 = vsel %vm457_vm1, %v2532_v58, %v2540_v45 }
 0x5d8   : > { %v2542_v29 = vpop.permute.xlu0 %2541  ;;  %2752 = vmatprep.subr.mxu1 %v2410_v43  ;;  %v2568_v26 = vmul.f32 %v2560_v50, %v2549_v32  ;;  %v2567_v52 = vmul.f32 %v2556_v17, %v2545_v35 }
 0x5d9   : > { %v2546_v48 = vsel %vm457_vm1, %v2534_v53, %v2542_v29  ;;  %v2550_v57 = vsel %vm457_vm1, %v2542_v29, %v2534_v53  ;;  %2753 = vmatpush2.msra.mxu1 %v2409_v49 }
 0x5da   : > { %v2569_v24 = vmul.f32 %v2556_v17, %v2546_v48  ;;  %v2570_v62 = vmul.f32 %v2560_v50, %v2550_v57  ;;  %2754 = vmatprep.subr.mxu1 %v2408_v22  ;;  %v2530_v5 = vpop.permute.xlu1 %2529 }
 0x5db   : > { %2755 = vmatpush2.msra.mxu1 %v2407_v39 }
 0x5dc   : > { %v2538_v19 = vpop.permute.xlu0 %2537  ;;  %2756 = vmatprep.subr.mxu1 %v2362_v20  ;;  %2813 = vmatprep.subr.mxu0 %v2570_v62 }
 0x5dd   : > { %v2544_v37 = vsel %vm457_vm1, %v2530_v5, %v2538_v19  ;;  %v2548_v27 = vsel %vm457_vm1, %v2538_v19, %v2530_v5  ;;  %2757 = vmatpush2.msra.mxu1 %v2361_v16  ;;  %2814 = vmatpush1.msra.mxu0 %v2569_v24 }
 0x5de   : > { %v2565_v0 = vmul.f32 %v2556_v17, %v2544_v37  ;;  %v2566_v15 = vmul.f32 %v2560_v50, %v2548_v27  ;;  %2758 = vmatprep.subr.mxu1 %v2360_v38  ;;  %2815 = vmatprep.subr.mxu0 %v2568_v26  ;;  %v2528_v7 = vpop.permute.xlu1 %2527 }
 0x5df   : > { %2759 = vmatpush2.msra.mxu1 %v2359_v51  ;;  %2816 = vmatpush1.msra.mxu0 %v2567_v52 }
 0x5e0   : > { %v2536_v4 = vpop.permute.xlu0 %2535  ;;  %2760 = vmatprep.subr.mxu1 %v2358_v33  ;;  %2817 = vmatprep.subr.mxu0 %v2566_v15 }
 0x5e1   : > { %v2543_v63 = vsel %vm457_vm1, %v2528_v7, %v2536_v4  ;;  %v2547_v44 = vsel %vm457_vm1, %v2536_v4, %v2528_v7  ;;  %2761 = vmatpush2.msra.mxu1 %v2357_v18  ;;  %2818 = vmatpush1.msra.mxu0 %v2565_v0 }
 0x5e2   : > { %v2563_v3 = vmul.f32 %v2556_v17, %v2543_v63  ;;  %v2564_v56 = vmul.f32 %v2560_v50, %v2547_v44  ;;  %2762 = vmatprep.subr.mxu1 %v2356_v59 }
 0x5e3   : > { %2763 = vmatpush2.msra.mxu1 %v2355_v41  ;;  %v3332_v41 = vld [vmem:[#allocation3 + $0x128] sm:$0xff] }
 0x5e4   : > { %2765 = vmatmul.mubr.f32.vlgmr.msra.gmra.mxu1 %v2580_v8  ;;  %2819 = vmatprep.subr.mxu0 %v2564_v56 }
 0x5e5   : > { %2820 = vmatpush1.msra.mxu0 %v2563_v3  ;;  %2770 = vmatprep.mubr.f32.mxu1 %v2584_v40 }
 0x5e6   : > { %3860 = vmatmul.mubr.msk.f32.vlgmr.msra.gmra.mxu0 %vm1185_vm9, %v2582_v46 }
 0x5e7   : > { %2859 = vmatprep.mubr.f32.mxu0 %v3975_v2 }
 0x5e8   : > { %2771 = vmatmul.mubr.f32.gmra.mxu1 %v2583_v6 }
 0x5e9   : > { %2776 = vmatprep.mubr.f32.mxu1 %v2587_v1 }
 0x5ea   : > { %3861 = vmatmul.mubr.msk.f32.gmra.mxu0 %vm1185_vm9, %v2585_v54 }
 0x5eb   : > { %2865 = vmatprep.mubr.f32.mxu0 %v3975_v2  ;;  %v5636_v53 = vpop.permute.xlu1 %2685 }
 0x5ec   : > { %2777 = vmatmul.mubr.f32.gmra.mxu1 %v2586_v14 }
 0x5ed   : > { %2782 = vmatprep.mubr.f32.mxu1 %v2590_v42  ;;  %v2681_v35 = vpop.permute.xlu0 %2680 }
 0x5ee   : > { %3862 = vmatmul.mubr.msk.f32.gmra.mxu0 %vm1185_vm9, %v2588_v30 }
 0x5ef   : > { %2871 = vmatprep.mubr.f32.mxu0 %v3975_v2  ;;  %v2676_v61 = vpop.permute.xlu1 %2675 }
 0x5f0   : > { %2783 = vmatmul.mubr.f32.gmra.mxu1 %v2589_v60 }
 0x5f1   : > { %3604 = vmatprep.mubr.f32.mxu1 %v3975_v2 }
 0x5f2   : > { %3863 = vmatmul.mubr.msk.f32.gmra.mxu0 %vm1185_vm9, %v2591_v36 }
 0x5f3   : > { %v2671_v25 = vpop.permute.xlu1 %2670  ;;  %3515 = vmatprep.mubr.f32.mxu0 %v3332_v41 }
 0x6a4   : > { %v2766_v13 = vpop.f32.mrf.mxu1 }
 0x6a5   : > { %v2767_v45 = vadd.f32 %v2766_v13, %v2671_v25  ;;  %v3418_v13 = vld [vmem:[%s6111_s4 + $0x18] sm:$0xff] }
 0x6a6   : > { %v2768_v28 = vpop.f32.mrf.mxu1  ;;  %v2855_v31 = vpop.f32.mrf.mxu0 }
 0x6a7   : > { %v2769_v47 = vadd.f32 %v2768_v28, %v2671_v25  ;;  %v2856_v55 = vadd.f32 %v2855_v31, %v2767_v45  ;;  %v3417_v45 = vld [vmem:[%s6111_s4 + $0x10] sm:$0xff]  ;;  %v3983_v28 = vmov 4  }
 0x6a8   : > { %v2857_v43 = vpop.f32.mrf.mxu0  ;;  %v2772_v21 = vpop.f32.mrf.mxu1  ;;  %3925 = vset.pattern.permute.xlu0 %v3983_v28  ;;  %3926 = vset.pattern.permute.xlu1 %v3983_v28 }
 0x6a9   : > { %v5638_v23 = vmax.f32 %v2856_v55, 0.0  ;;  %v2858_v58 = vadd.f32 %v2857_v43, %v2769_v47  ;;  %v2773_v50 = vadd.f32 %v2772_v21, %v2676_v61  ;;  %v3415_v43 = vld [vmem:[%s6111_s4] sm:$0xff] }
 0x6aa   : > { %v2774_v22 = vpop.f32.mrf.mxu1  ;;  %v2861_v17 = vpop.f32.mrf.mxu0 }
 0x6ab   : > { %v5640_v49 = vmax.f32 %v2858_v58, 0.0  ;;  %3042 = vrot.lane.b32.xlu0 %v5638_v23, %s3974_s15  ;;  %v2775_v29 = vadd.f32 %v2774_v22, %v2676_v61  ;;  %v2862_v39 = vadd.f32 %v2861_v17, %v2773_v50  ;;  %v3416_v58 = vld [vmem:[%s6111_s4 + $0x8] sm:$0xff] }
 0x6ac   : > { %v2863_v34 = vpop.f32.mrf.mxu0  ;;  %v2778_v24 = vpop.f32.mrf.mxu1 }
 0x6ad   : > { %3050 = vrot.lane.b32.xlu1 %v5640_v49, %s3974_s15  ;;  %v2864_v32 = vadd.f32 %v2863_v34, %v2775_v29  ;;  %v5660_v48 = vmax.f32 %v2862_v39, 0.0  ;;  %v2779_v62 = vadd.f32 %v2778_v24, %v2681_v35 }
 0x6ae   : > { %v2780_v5 = vpop.f32.mrf.mxu1  ;;  %v2867_v20 = vpop.f32.mrf.mxu0 }
 0x6af   : > { %2990 = vrot.lane.b32.xlu0 %v5638_v23, %s3976_s16  ;;  %v5664_v57 = vmax.f32 %v2864_v32, 0.0  ;;  %v2781_v16 = vadd.f32 %v2780_v5, %v2681_v35  ;;  %v2868_v26 = vadd.f32 %v2867_v20, %v2779_v62 }
 0x6b0   : > { %v2869_v19 = vpop.f32.mrf.mxu0  ;;  %v2784_v37 = vpop.f32.mrf.mxu1 }
 0x6b1   : > { %2998 = vrot.lane.b32.xlu1 %v5640_v49, %s3976_s16  ;;  %v2870_v38 = vadd.f32 %v2869_v19, %v2781_v16  ;;  %v5682_v51 = vmax.f32 %v2868_v26, 0.0  ;;  %v2785_v15 = vadd.f32 %v2784_v37, %v5636_v53 }
 0x6b2   : > { %v2786_v27 = vpop.f32.mrf.mxu1  ;;  %v2873_v0 = vpop.f32.mrf.mxu0 }
 0x6b3   : > { %2938 = vrot.lane.b32.xlu0 %v5638_v23, %s3977_s17  ;;  %v5688_v52 = vmax.f32 %v2870_v38, 0.0  ;;  %v2787_v33 = vadd.f32 %v2786_v27, %v5636_v53  ;;  %v2874_v7 = vadd.f32 %v2873_v0, %v2785_v15  ;;  %v3866_v15 = vld [vmem:[%s6112_s5 + $0x3] ss:$8 sm:$0x3] }
 0x6b4   : > { %v2875_v18 = vpop.f32.mrf.mxu0 }
 0x6b5   : > { %2946 = vrot.lane.b32.xlu1 %v5640_v49, %s3977_s17  ;;  %v2876_v4 = vadd.f32 %v2875_v18, %v2787_v33  ;;  %v5710_v59 = vmax.f32 %v2874_v7, 0.0  ;;  %v3071_v18 = vrot.slane %v3866_v15, %v4117_v11  ;;  %v3075_v7 = vrot.slane %v3866_v15, %v4120_v12 }
 0x6b7   : > { %2886 = vrot.lane.b32.xlu0 %v5638_v23, %s3978_s18  ;;  %v5714_v63 = vmax.f32 %v2876_v4, 0.0 }
 0x6b9   : > { %2894 = vrot.lane.b32.xlu1 %v5640_v49, %s3978_s18 }
 0x6bb   : > { %3226 = vrot.lane.b32.xlu0 %v5638_v23, %s3970_s11 }
 0x6bd   : > { %3234 = vrot.lane.b32.xlu1 %v5640_v49, %s3970_s11 }
 0x6bf   : > { %3044 = vrot.lane.b32.xlu0 %v5660_v48, %s3974_s15 }
 0x6c1   : > { %3052 = vrot.lane.b32.xlu1 %v5664_v57, %s3974_s15 }
 0x6c3   : > { %2992 = vrot.lane.b32.xlu0 %v5660_v48, %s3976_s16 }
 0x6c5   : > { %3000 = vrot.lane.b32.xlu1 %v5664_v57, %s3976_s16 }
 0x6c7   : > { %2940 = vrot.lane.b32.xlu0 %v5660_v48, %s3977_s17 }
 0x6c9   : > { %2948 = vrot.lane.b32.xlu1 %v5664_v57, %s3977_s17 }
 0x6cb   : > { %2888 = vrot.lane.b32.xlu0 %v5660_v48, %s3978_s18 }
 0x6cd   : > { %2896 = vrot.lane.b32.xlu1 %v5664_v57, %s3978_s18 }
 0x6cf   : > { %3228 = vrot.lane.b32.xlu0 %v5660_v48, %s3970_s11 }
 0x6d1   : > { %3236 = vrot.lane.b32.xlu1 %v5664_v57, %s3970_s11 }
 0x6d3   : > { %3046 = vrot.lane.b32.xlu0 %v5682_v51, %s3974_s15 }
 0x6d5   : > { %3054 = vrot.lane.b32.xlu1 %v5688_v52, %s3974_s15 }
 0x6d7   : > { %2994 = vrot.lane.b32.xlu0 %v5682_v51, %s3976_s16 }
 0x6d9   : > { %3002 = vrot.lane.b32.xlu1 %v5688_v52, %s3976_s16 }
 0x6db   : > { %2942 = vrot.lane.b32.xlu0 %v5682_v51, %s3977_s17 }
 0x6dd   : > { %2950 = vrot.lane.b32.xlu1 %v5688_v52, %s3977_s17 }
 0x6df   : > { %2890 = vrot.lane.b32.xlu0 %v5682_v51, %s3978_s18 }
 0x6e1   : > { %2898 = vrot.lane.b32.xlu1 %v5688_v52, %s3978_s18 }
 0x6e3   : > { %3230 = vrot.lane.b32.xlu0 %v5682_v51, %s3970_s11 }
 0x6e5   : > { %3238 = vrot.lane.b32.xlu1 %v5688_v52, %s3970_s11 }
 0x6e7   : > { %3048 = vrot.lane.b32.xlu0 %v5710_v59, %s3974_s15 }
 0x6e9   : > { %3056 = vrot.lane.b32.xlu1 %v5714_v63, %s3974_s15 }
 0x6eb   : > { %3178 = vrot.lane.b32.xlu0 %v5682_v51, %s3972_s13 }
 0x6ed   : > { %3186 = vrot.lane.b32.xlu1 %v5688_v52, %s3972_s13 }
 0x6ef   : > { %2996 = vrot.lane.b32.xlu0 %v5710_v59, %s3976_s16 }
 0x6f1   : > { %3004 = vrot.lane.b32.xlu1 %v5714_v63, %s3976_s16 }
 0x6f3   : > { %2944 = vrot.lane.b32.xlu0 %v5710_v59, %s3977_s17 }
 0x6f5   : > { %3184 = vrot.lane.b32.xlu1 %v5664_v57, %s3972_s13 }
 0x6f7   : > { %2892 = vrot.lane.b32.xlu0 %v5710_v59, %s3978_s18 }
 0x6f9   : > { %2952 = vrot.lane.b32.xlu1 %v5714_v63, %s3977_s17 }
 0x6fb   : > { %3232 = vrot.lane.b32.xlu0 %v5710_v59, %s3970_s11 }
 0x6fd   : > { %3182 = vrot.lane.b32.xlu1 %v5640_v49, %s3972_s13 }
 0x6ff   : > { %3180 = vrot.lane.b32.xlu0 %v5710_v59, %s3972_s13 }
 0x701   : > { %2900 = vrot.lane.b32.xlu1 %v5714_v63, %s3978_s18 }
 0x703   : > { %3176 = vrot.lane.b32.xlu0 %v5660_v48, %s3972_s13 }
 0x705   : > { %3134 = vrot.lane.b32.xlu1 %v5688_v52, %s3973_s14 }
 0x707   : > { %3174 = vrot.lane.b32.xlu0 %v5638_v23, %s3972_s13 }
 0x709   : > { %3240 = vrot.lane.b32.xlu1 %v5714_v63, %s3970_s11 }
 0x70b   : > { %3128 = vrot.lane.b32.xlu0 %v5710_v59, %s3973_s14 }
 0x70d   : > { %3132 = vrot.lane.b32.xlu1 %v5664_v57, %s3973_s14 }
 0x70f   : > { %3126 = vrot.lane.b32.xlu0 %v5682_v51, %s3973_s14 }
 0x711   : > { %3188 = vrot.lane.b32.xlu1 %v5714_v63, %s3972_s13 }
 0x713   : > { %3124 = vrot.lane.b32.xlu0 %v5660_v48, %s3973_s14 }
 0x715   : > { %3130 = vrot.lane.b32.xlu1 %v5640_v49, %s3973_s14 }
 0x717   : > { %3122 = vrot.lane.b32.xlu0 %v5638_v23, %s3973_s14 }
 0x719   : > { %3136 = vrot.lane.b32.xlu1 %v5714_v63, %s3973_s14 }
 0x71b   : > { %3284 = vrot.lane.b32.xlu0 %v5710_v59, %s3971_s12 }
 0x71d   : > { %3290 = vrot.lane.b32.xlu1 %v5688_v52, %s3971_s12  ;;  %v3043_v44 = vpop.permute.xlu0 %3042 }
 0x71f   : > { %v3051_v8 = vpop.permute.xlu1 %3050  ;;  %3282 = vrot.lane.b32.xlu0 %v5682_v51, %s3971_s12 }
 0x720   : > { %v5776_v3 = vsel %vm344_vm4, %v3043_v44, %v3051_v8  ;;  %v5780_v56 = vsel %vm344_vm4, %v3051_v8, %v3043_v44 }
 0x721   : > { %3292 = vrot.lane.b32.xlu1 %v5714_v63, %s3971_s12  ;;  %v2991_v40 = vpop.permute.xlu0 %2990  ;;  %v3078_v15 = vmul.f32 %v3071_v18, %v5780_v56 }
 0x723   : > { %v2999_v46 = vpop.permute.xlu1 %2998  ;;  %3280 = vrot.lane.b32.xlu0 %v5660_v48, %s3971_s12 }
 0x724   : > { %v5788_v6 = vsel %vm320_vm5, %v2991_v40, %v2999_v46  ;;  %v5792_v1 = vsel %vm320_vm5, %v2999_v46, %v2991_v40 }
 0x725   : > { %3288 = vrot.lane.b32.xlu1 %v5664_v57, %s3971_s12  ;;  %v2939_v54 = vpop.permute.xlu0 %2938 }
 0x727   : > { %v2947_v14 = vpop.permute.xlu1 %2946  ;;  %3278 = vrot.lane.b32.xlu0 %v5638_v23, %s3971_s12 }
 0x728   : > { %v5800_v42 = vsel %vm296_vm6, %v2939_v54, %v2947_v14  ;;  %v5804_v30 = vsel %vm296_vm6, %v2947_v14, %v2939_v54 }
 0x729   : > { %3286 = vrot.lane.b32.xlu1 %v5640_v49, %s3971_s12  ;;  %v2887_v60 = vpop.permute.xlu0 %2886 }
 0x72b   : > { %v2895_v36 = vpop.permute.xlu1 %2894  ;;  %3436 = vperm.xlu0 %3925, %v3418_v13  }
 0x72c   : > { %v5810_v53 = vsel %vm273_vm7, %v2887_v60, %v2895_v36  ;;  %v5814_v61 = vsel %vm273_vm7, %v2895_v36, %v2887_v60 }
 0x72d   : > { %v3227_v25 = vpop.permute.xlu0 %3226  ;;  %3431 = vperm.xlu1 %3926, %v3417_v45   ;;  %v3865_v45 = vld [vmem:[%s6112_s5 + $0x2] ss:$8 sm:$0x3] }
 0x72f   : > { %v3235_v31 = vpop.permute.xlu1 %3234  ;;  %3421 = vperm.xlu0 %3925, %v3415_v43  }
 0x730   : > { %v5824_v47 = vsel %vm433_vm0, %v3227_v25, %v3235_v31  ;;  %v5828_v55 = vsel %vm433_vm0, %v3235_v31, %v3227_v25 }
 0x731   : > { %v3045_v21 = vpop.permute.xlu0 %3044  ;;  %3426 = vperm.xlu1 %3926, %v3416_v58  }
 0x733   : > { %v3053_v22 = vpop.permute.xlu1 %3052 }
 0x734   : > { %v3059_v60 = vsel %vm344_vm4, %v3045_v21, %v3053_v22  ;;  %v3063_v36 = vsel %vm344_vm4, %v3053_v22, %v3045_v21  ;;  %v3023_v21 = vrot.slane %v3865_v45, %v4120_v12 }
 0x735   : > { %v2993_v17 = vpop.permute.xlu0 %2992  ;;  %v3081_v31 = vmul.f32 %v3075_v7, %v3059_v60  ;;  %v3080_v58 = vmul.f32 %v3071_v18, %v3063_v36 }
 0x737   : > { %v3001_v50 = vpop.permute.xlu1 %3000 }
 0x738   : > { %v3007_v56 = vsel %vm320_vm5, %v2993_v17, %v3001_v50 }
 0x739   : > { %v5836_v29 = vpop.permute.xlu0 %2940 }
 0x73b   : > { %v5838_v34 = vpop.permute.xlu1 %2948 }
 0x73d   : > { %v5840_v39 = vpop.permute.xlu0 %2888 }
 0x73f   : > { %v5842_v32 = vpop.permute.xlu1 %2896 }
 0x741   : > { %v5844_v35 = vpop.permute.xlu0 %3228 }
 0x743   : > { %v5846_v24 = vpop.permute.xlu1 %3236 }
 0x745   : > { %v3047_v62 = vpop.permute.xlu0 %3046 }
 0x747   : > { %v3055_v5 = vpop.permute.xlu1 %3054 }
 0x748   : > { %v3060_v44 = vsel %vm344_vm4, %v3047_v62, %v3055_v5  ;;  %v3064_v40 = vsel %vm344_vm4, %v3055_v5, %v3047_v62  ;;  %v3079_v62 = vmul.f32 %v3075_v7, %v5776_v3  ;;  %v3019_v5 = vrot.slane %v3865_v45, %v4117_v11 }
 0x749   : > { %v2995_v20 = vpop.permute.xlu0 %2994  ;;  %v3083_v25 = vmul.f32 %v3075_v7, %v3060_v44  ;;  %v3082_v28 = vmul.f32 %v3071_v18, %v3064_v40 }
 0x74b   : > { %v3003_v16 = vpop.permute.xlu1 %3002 }
 0x74c   : > { %v3012_v3 = vsel %vm320_vm5, %v3003_v16, %v2995_v20 }
 0x74d   : > { %v5848_v26 = vpop.permute.xlu0 %2942 }
 0x74f   : > { %v5850_v19 = vpop.permute.xlu1 %2950 }
 0x751   : > { %v5852_v38 = vpop.permute.xlu0 %2890 }
 0x753   : > { %v5854_v37 = vpop.permute.xlu1 %2898 }
 0x755   : > { %v5856_v27 = vpop.permute.xlu0 %3230 }
 0x757   : > { %v5858_v0 = vpop.permute.xlu1 %3238 }
 0x759   : > { %v3049_v33 = vpop.permute.xlu0 %3048 }
 0x75b   : > { %v3057_v4 = vpop.permute.xlu1 %3056 }
 0x75c   : > { %v3061_v41 = vsel %vm344_vm4, %v3049_v33, %v3057_v4  ;;  %v3065_v8 = vsel %vm344_vm4, %v3057_v4, %v3049_v33  ;;  %v3008_v33 = vsel %vm320_vm5, %v2995_v20, %v3003_v16  ;;  %v3030_v20 = vmul.f32 %v3019_v5, %v3012_v3 }
 0x75d   : > { %v3084_v46 = vmul.f32 %v3071_v18, %v3065_v8  ;;  %v3085_v54 = vmul.f32 %v3075_v7, %v3061_v41  ;;  %v5873_v14 = vpop.permute.xlu0 %3178  ;;  %v3011_v18 = vsel %vm320_vm5, %v3001_v50, %v2993_v17  ;;  %v3031_v40 = vmul.f32 %v3023_v21, %v3008_v33 }
 0x75e   : > { %v3029_v16 = vmul.f32 %v3023_v21, %v3007_v56  ;;  %v3028_v36 = vmul.f32 %v3019_v5, %v3011_v18  ;;  %v2904_v56 = vsel %vm273_vm7, %v5852_v38, %v5854_v37 }
 0x75f   : > { %v5879_v13 = vpop.permute.xlu1 %3186  ;;  %3451 = vmatprep.subr.mxu0 %v3085_v54  ;;  %v3864_v54 = vld [vmem:[%s6112_s5 + $0x1] ss:$8 sm:$0x3] }
 0x760   : > { %3452 = vmatpush1.msra.mxu0 %v3084_v46  ;;  %v2967_v45 = vrot.slane %v3864_v54, %v4117_v11  ;;  %v2971_v17 = vrot.slane %v3864_v54, %v4120_v12 }
 0x761   : > { %3453 = vmatprep.subr.mxu0 %v3083_v25  ;;  %v2997_v43 = vpop.permute.xlu0 %2996  ;;  %v3027_v25 = vmul.f32 %v3023_v21, %v5788_v6  ;;  %v2960_v6 = vsel %vm296_vm6, %v5850_v19, %v5848_v26 }
 0x762   : > { %3454 = vmatpush1.msra.mxu0 %v3082_v28  ;;  %v3026_v28 = vmul.f32 %v3019_v5, %v5792_v1 }
 0x763   : > { %v3005_v22 = vpop.permute.xlu1 %3004  ;;  %3455 = vmatprep.subr.mxu0 %v3081_v31  ;;  %v2956_v31 = vsel %vm296_vm6, %v5848_v26, %v5850_v19  ;;  %v2910_v26 = vld [vmem:[%s6112_s5] ss:$8 sm:$0x3]  ;;  %v2978_v19 = vmul.f32 %v2967_v45, %v2960_v6 }
 0x764   : > { %v3009_v4 = vsel %vm320_vm5, %v2997_v43, %v3005_v22  ;;  %v3013_v44 = vsel %vm320_vm5, %v3005_v22, %v2997_v43  ;;  %3456 = vmatpush1.msra.mxu0 %v3080_v58  ;;  %v2959_v22 = vsel %vm296_vm6, %v5838_v34, %v5836_v29 }
 0x765   : > { %v3032_v7 = vmul.f32 %v3019_v5, %v3013_v44  ;;  %v3033_v41 = vmul.f32 %v3023_v21, %v3009_v4  ;;  %3457 = vmatprep.subr.mxu0 %v3079_v62  ;;  %v2945_v8 = vpop.permute.xlu0 %2944  ;;  %v2955_v5 = vsel %vm296_vm6, %v5836_v29, %v5838_v34  ;;  %v2976_v3 = vmul.f32 %v2967_v45, %v2959_v22 }
 0x766   : > { %3458 = vmatpush1.msra.mxu0 %v3078_v15  ;;  %v2979_v15 = vmul.f32 %v2971_v17, %v2956_v31  ;;  %v2977_v4 = vmul.f32 %v2971_v17, %v2955_v5  ;;  %v2915_v29 = vrot.slane %v2910_v26, %v4117_v11  ;;  %v2919_v34 = vrot.slane %v2910_v26, %v4120_v12 }
 0x767   : > { %v5900_v46 = vpop.permute.xlu1 %3184  ;;  %3459 = vmatprep.subr.mxu0 %v3033_v41  ;;  %v3247_v22 = vsel %vm433_vm0, %v5846_v24, %v5844_v35 }
 0x768   : > { %3460 = vmatpush1.msra.mxu0 %v3032_v7  ;;  %v2975_v7 = vmul.f32 %v2971_v17, %v5800_v42  ;;  %v2908_v42 = vsel %vm273_vm7, %v5854_v37, %v5852_v38  ;;  %v3870_v38 = vld [vmem:[%s6112_s5 + $0x7] ss:$8 sm:$0x3] }
 0x769   : > { %3461 = vmatprep.subr.mxu0 %v3031_v40  ;;  %v2893_v60 = vpop.permute.xlu0 %2892  ;;  %v2926_v37 = vmul.f32 %v2915_v29, %v2908_v42  ;;  %v3255_v31 = vrot.slane %v3870_v38, %v4117_v11 }
 0x76a   : > { %3462 = vmatpush1.msra.mxu0 %v3030_v20 }
 0x76b   : > { %v2953_v50 = vpop.permute.xlu1 %2952  ;;  %3463 = vmatprep.subr.mxu0 %v3029_v16  ;;  %v2903_v16 = vsel %vm273_vm7, %v5840_v39, %v5842_v32 }
 0x76c   : > { %v2957_v43 = vsel %vm296_vm6, %v2945_v8, %v2953_v50  ;;  %v2961_v58 = vsel %vm296_vm6, %v2953_v50, %v2945_v8  ;;  %3464 = vmatpush1.msra.mxu0 %v3028_v36  ;;  %v2974_v8 = vmul.f32 %v2967_v45, %v5804_v30  ;;  %v2927_v36 = vmul.f32 %v2919_v34, %v2904_v56 }
 0x76d   : > { %v2980_v62 = vmul.f32 %v2967_v45, %v2961_v58  ;;  %v2981_v21 = vmul.f32 %v2971_v17, %v2957_v43  ;;  %3465 = vmatprep.subr.mxu0 %v3027_v25  ;;  %v3233_v1 = vpop.permute.xlu0 %3232  ;;  %v2925_v45 = vmul.f32 %v2919_v34, %v2903_v16  ;;  %v2922_v43 = vmul.f32 %v2915_v29, %v5814_v61 }
 0x76e   : > { %3466 = vmatpush1.msra.mxu0 %v3026_v28  ;;  %v2923_v28 = vmul.f32 %v2919_v34, %v5810_v53  ;;  %v3248_v58 = vsel %vm433_vm0, %v5858_v0, %v5856_v27  ;;  %v3244_v53 = vsel %vm433_vm0, %v5856_v27, %v5858_v0  ;;  %v3869_v27 = vld [vmem:[%s6112_s5 + $0x6] ss:$8 sm:$0x3]  ;;  %v3192_v56 = vsel %vm409_vm2, %v5873_v14, %v5879_v13 }
 0x76f   : > { %v5929_v33 = vpop.permute.xlu1 %3182  ;;  %3467 = vmatprep.subr.mxu0 %v2981_v21 }
 0x770   : > { %3468 = vmatpush1.msra.mxu0 %v2980_v62 }
 0x771   : > { %3469 = vmatprep.subr.mxu0 %v2979_v15  ;;  %v5934_v44 = vpop.permute.xlu0 %3180 }
 0x772   : > { %3470 = vmatpush1.msra.mxu0 %v2978_v19  ;;  %v3266_v19 = vmul.f32 %v3255_v31, %v3244_v53 }
 0x773   : > { %v2901_v41 = vpop.permute.xlu1 %2900  ;;  %3471 = vmatprep.subr.mxu0 %v2977_v4 }
 0x774   : > { %v2905_v18 = vsel %vm273_vm7, %v2893_v60, %v2901_v41  ;;  %v2909_v40 = vsel %vm273_vm7, %v2901_v41, %v2893_v60  ;;  %3472 = vmatpush1.msra.mxu0 %v2976_v3  ;;  %v2907_v60 = vsel %vm273_vm7, %v5842_v32, %v5840_v39  ;;  %v3259_v39 = vrot.slane %v3870_v38, %v4120_v12 }
 0x775   : > { %v2928_v54 = vmul.f32 %v2915_v29, %v2909_v40  ;;  %v2929_v20 = vmul.f32 %v2919_v34, %v2905_v18  ;;  %3473 = vmatprep.subr.mxu0 %v2975_v7  ;;  %v5952_v30 = vpop.permute.xlu0 %3176  ;;  %v2924_v50 = vmul.f32 %v2915_v29, %v2907_v60  ;;  %v3203_v29 = vrot.slane %v3869_v27, %v4117_v11 }
 0x776   : > { %3474 = vmatpush1.msra.mxu0 %v2974_v8  ;;  %v3267_v15 = vmul.f32 %v3259_v39, %v3248_v58  ;;  %v3265_v0 = vmul.f32 %v3259_v39, %v3247_v22  ;;  %v3263_v7 = vmul.f32 %v3259_v39, %v5828_v55  ;;  %v3262_v34 = vmul.f32 %v3255_v31, %v5824_v47  ;;  %v3871_v22 = vld [vmem:[%s6112_s5 + $0x10] ss:$8 sm:$0x3] }
 0x777   : > { %v5962_v25 = vpop.permute.xlu1 %3134  ;;  %3475 = vmatprep.subr.mxu0 %v2929_v20  ;;  %v3196_v41 = vsel %vm409_vm2, %v5879_v13, %v5873_v14  ;;  %v3195_v42 = vsel %vm409_vm2, %v5900_v46, %v5952_v30  ;;  %v3214_v16 = vmul.f32 %v3203_v29, %v3192_v56  ;;  %v3868_v13 = vld [vmem:[%s6112_s5 + $0x5] ss:$8 sm:$0x3] }
 0x778   : > { %3476 = vmatpush1.msra.mxu0 %v2928_v54 }
 0x779   : > { %3477 = vmatprep.subr.mxu0 %v2927_v36  ;;  %v3175_v17 = vpop.permute.xlu0 %3174 }
 0x77a   : > { %3478 = vmatpush1.msra.mxu0 %v2926_v37  ;;  %v3194_v14 = vsel %vm409_vm2, %v5929_v33, %v3175_v17  ;;  %v3190_v36 = vsel %vm409_vm2, %v3175_v17, %v5929_v33  ;;  %v3151_v37 = vrot.slane %v3868_v13, %v4117_v11 }
 0x77b   : > { %v3241_v32 = vpop.permute.xlu1 %3240  ;;  %3479 = vmatprep.subr.mxu0 %v2925_v45  ;;  %v3155_v45 = vrot.slane %v3868_v13, %v4120_v12 }
 0x77c   : > { %v3245_v6 = vsel %vm433_vm0, %v3233_v1, %v3241_v32  ;;  %v3249_v62 = vsel %vm433_vm0, %v3241_v32, %v3233_v1  ;;  %3480 = vmatpush1.msra.mxu0 %v2924_v50  ;;  %v3243_v1 = vsel %vm433_vm0, %v5844_v35, %v5846_v24  ;;  %v3207_v35 = vrot.slane %v3869_v27, %v4120_v12 }
 0x77d   : > { %v3268_v21 = vmul.f32 %v3255_v31, %v3245_v6  ;;  %v3269_v5 = vmul.f32 %v3259_v39, %v3249_v62  ;;  %3481 = vmatprep.subr.mxu0 %v2923_v28  ;;  %v3129_v61 = vpop.permute.xlu0 %3128  ;;  %v3264_v3 = vmul.f32 %v3255_v31, %v3243_v1  ;;  %v3210_v28 = vmul.f32 %v3203_v29, %v3190_v36 }
 0x77e   : > { %3482 = vmatpush1.msra.mxu0 %v2922_v43  ;;  %v3215_v54 = vmul.f32 %v3207_v35, %v3196_v41  ;;  %v3213_v60 = vmul.f32 %v3207_v35, %v3195_v42 }
 0x77f   : > { %v3133_v26 = vpop.permute.xlu1 %3132  ;;  %3483 = vmatprep.subr.mxu0 %v3269_v5  ;;  %v3867_v5 = vld [vmem:[%s6112_s5 + $0x4] ss:$8 sm:$0x3] }
 0x780   : > { %3484 = vmatpush2.msra.mxu0 %v3268_v21  ;;  %v3099_v27 = vrot.slane %v3867_v5, %v4117_v11 }
 0x781   : > { %3485 = vmatprep.subr.mxu0 %v3267_v15  ;;  %v3127_v4 = vpop.permute.xlu0 %3126 }
 0x782   : > { %3486 = vmatpush2.msra.mxu0 %v3266_v19  ;;  %v3144_v31 = vsel %vm385_vm3, %v5962_v25, %v3127_v4  ;;  %v3140_v17 = vsel %vm385_vm3, %v3127_v4, %v5962_v25  ;;  %v3307_v4 = vrot.slane %v3871_v22, %v4117_v11 }
 0x783   : > { %v3189_v24 = vpop.permute.xlu1 %3188  ;;  %3487 = vmatprep.subr.mxu0 %v3265_v0  ;;  %v3163_v62 = vmul.f32 %v3155_v45, %v3144_v31  ;;  %v3339_v31 = vld [vmem:[#allocation3 + $0x160] sm:$0xff] }
 0x784   : > { %v3193_v8 = vsel %vm409_vm2, %v5934_v44, %v3189_v24  ;;  %v3197_v55 = vsel %vm409_vm2, %v3189_v24, %v5934_v44  ;;  %3488 = vmatpush2.msra.mxu0 %v3264_v3  ;;  %v3191_v44 = vsel %vm409_vm2, %v5952_v30, %v5900_v46  ;;  %v3211_v30 = vmul.f32 %v3207_v35, %v3194_v14 }
 0x785   : > { %v3216_v47 = vmul.f32 %v3203_v29, %v3193_v8  ;;  %v3217_v18 = vmul.f32 %v3207_v35, %v3197_v55  ;;  %3489 = vmatprep.subr.mxu0 %v3263_v7  ;;  %v3125_v40 = vpop.permute.xlu0 %3124  ;;  %v3212_v46 = vmul.f32 %v3203_v29, %v3191_v44  ;;  %v3311_v3 = vrot.slane %v3871_v22, %v4120_v12 }
 0x786   : > { %3490 = vmatpush2.msra.mxu0 %v3262_v34  ;;  %v3143_v6 = vsel %vm385_vm3, %v3133_v26, %v3125_v40  ;;  %v3139_v53 = vsel %vm385_vm3, %v3125_v40, %v3133_v26  ;;  %v3103_v29 = vrot.slane %v3867_v5, %v4120_v12 }
 0x787   : > { %v3131_v20 = vpop.permute.xlu1 %3130  ;;  %3491 = vmatprep.subr.mxu0 %v3217_v18  ;;  %v3161_v1 = vmul.f32 %v3155_v45, %v3143_v6  ;;  %v3160_v19 = vmul.f32 %v3151_v37, %v3139_v53 }
 0x788   : > { %3492 = vmatpush2.msra.mxu0 %v3216_v47  ;;  %v3113_v12 = vmul.f32 %v3103_v29, %v5714_v63  ;;  %v3112_v47 = vmul.f32 %v3099_v27, %v5710_v59  ;;  %v3111_v42 = vmul.f32 %v3103_v29, %v5688_v52  ;;  %v3109_v59 = vmul.f32 %v3103_v29, %v5664_v57 }
 0x789   : > { %3493 = vmatprep.subr.mxu0 %v3215_v54  ;;  %v3123_v38 = vpop.permute.xlu0 %3122  ;;  %v3110_v54 = vmul.f32 %v3099_v27, %v5682_v51  ;;  %v3108_v52 = vmul.f32 %v3099_v27, %v5660_v48  ;;  %v3106_v57 = vmul.f32 %v3099_v27, %v5638_v23  ;;  %v3335_v48 = vld [vmem:[#allocation3 + $0x140] sm:$0xff]  ;;  %v3337_v23 = vld [vmem:[#allocation3 + $0x150] sm:$0xff] }
 0x78a   : > { %3494 = vmatpush2.msra.mxu0 %v3214_v16  ;;  %v3142_v25 = vsel %vm385_vm3, %v3131_v20, %v3123_v38  ;;  %v3138_v15 = vsel %vm385_vm3, %v3123_v38, %v3131_v20 }
 0x78b   : > { %v3137_v50 = vpop.permute.xlu1 %3136  ;;  %3495 = vmatprep.subr.mxu0 %v3213_v60  ;;  %v3159_v0 = vmul.f32 %v3155_v45, %v3142_v25  ;;  %v3158_v35 = vmul.f32 %v3151_v37, %v3138_v15  ;;  %v3107_v60 = vmul.f32 %v3103_v29, %v5640_v49  ;;  %v3334_v49 = vld [vmem:[#allocation3 + $0x138] sm:$0xff] }
 0x78c   : > { %v3141_v39 = vsel %vm385_vm3, %v3129_v61, %v3137_v50  ;;  %v3145_v33 = vsel %vm385_vm3, %v3137_v50, %v3129_v61  ;;  %3496 = vmatpush2.msra.mxu0 %v3212_v46  ;;  %v3162_v61 = vmul.f32 %v3151_v37, %v3140_v17  ;;  %v3331_v46 = vld [vmem:[#allocation3 + $0x120] sm:$0xff]  ;;  %v3336_v50 = vld [vmem:[#allocation3 + $0x148] sm:$0xff] }
 0x78d   : > { %v3164_v32 = vmul.f32 %v3151_v37, %v3141_v39  ;;  %v3165_v43 = vmul.f32 %v3155_v45, %v3145_v33  ;;  %3497 = vmatprep.subr.mxu0 %v3211_v30  ;;  %v3285_v58 = vpop.permute.xlu0 %3284  ;;  %v3333_v45 = vld [vmem:[#allocation3 + $0x130] sm:$0xff]  ;;  %v3340_v39 = vld [vmem:[#allocation3 + $0x168] sm:$0xff]  ;;  %v3342_v33 = vld [vmem:[#allocation3 + $0x178] sm:$0xff] }
 0x78e   : > { %3498 = vmatpush2.msra.mxu0 %v3210_v28  ;;  %v3341_v28 = vld [vmem:[#allocation3 + $0x170] sm:$0xff]  ;;  %v3638_v17 = vld [vmem:[%s6111_s4] sm:$0x1] }
 0x78f   : > { %v3291_v21 = vpop.permute.xlu1 %3290  ;;  %3499 = vmatprep.subr.mxu0 %v3165_v43 }
 0x790   : > { %3500 = vmatpush2.msra.mxu0 %v3164_v32  ;;  %v3984_v32 = vmov 5  }
 0x791   : > { %3501 = vmatprep.subr.mxu0 %v3163_v62  ;;  %v3283_v26 = vpop.permute.xlu0 %3282  ;;  %3927 = vset.pattern.permute.xlu1 %v3984_v32 }
 0x792   : > { %3502 = vmatpush2.msra.mxu0 %v3162_v61  ;;  %v3300_v24 = vsel %vm457_vm1, %v3291_v21, %v3283_v26  ;;  %v3296_v11 = vsel %vm457_vm1, %v3283_v26, %v3291_v21  ;;  %3928 = vset.pattern.permute.xlu0 %v3984_v32 }
 0x793   : > { %v3293_v7 = vpop.permute.xlu1 %3292  ;;  %3503 = vmatprep.subr.mxu0 %v3161_v1  ;;  %v3319_v18 = vmul.f32 %v3311_v3, %v3300_v24  ;;  %v3318_v44 = vmul.f32 %v3307_v4, %v3296_v11  ;;  %3641 = vperm.xlu1 %3927, %v3638_v17  }
 0x794   : > { %v3297_v34 = vsel %vm457_vm1, %v3285_v58, %v3293_v7  ;;  %v3301_v41 = vsel %vm457_vm1, %v3293_v7, %v3285_v58  ;;  %3504 = vmatpush2.msra.mxu0 %v3160_v19 }
 0x795   : > { %v3320_v8 = vmul.f32 %v3307_v4, %v3297_v34  ;;  %v3321_v55 = vmul.f32 %v3311_v3, %v3301_v41  ;;  %3505 = vmatprep.subr.mxu0 %v3159_v0  ;;  %v3281_v56 = vpop.permute.xlu0 %3280 }
 0x796   : > { %3506 = vmatpush2.msra.mxu0 %v3158_v35 }
 0x797   : > { %v3289_v40 = vpop.permute.xlu1 %3288  ;;  %3507 = vmatprep.subr.mxu0 %v3113_v12  ;;  %3564 = vmatprep.subr.mxu1 %v3321_v55 }
 0x798   : > { %v3295_v20 = vsel %vm457_vm1, %v3281_v56, %v3289_v40  ;;  %v3299_v16 = vsel %vm457_vm1, %v3289_v40, %v3281_v56  ;;  %3508 = vmatpush2.msra.mxu0 %v3112_v47  ;;  %3565 = vmatpush1.msra.mxu1 %v3320_v8 }
 0x799   : > { %v3316_v63 = vmul.f32 %v3307_v4, %v3295_v20  ;;  %v3317_v14 = vmul.f32 %v3311_v3, %v3299_v16  ;;  %3509 = vmatprep.subr.mxu0 %v3111_v42  ;;  %3566 = vmatprep.subr.mxu1 %v3319_v18  ;;  %v3279_v51 = vpop.permute.xlu0 %3278 }
 0x79a   : > { %3510 = vmatpush2.msra.mxu0 %v3110_v54  ;;  %3567 = vmatpush1.msra.mxu1 %v3318_v44 }
 0x79b   : > { %v3287_v13 = vpop.permute.xlu1 %3286  ;;  %3511 = vmatprep.subr.mxu0 %v3109_v59  ;;  %3568 = vmatprep.subr.mxu1 %v3317_v14 }
 0x79c   : > { %v3294_v36 = vsel %vm457_vm1, %v3279_v51, %v3287_v13  ;;  %v3298_v38 = vsel %vm457_vm1, %v3287_v13, %v3279_v51  ;;  %3512 = vmatpush2.msra.mxu0 %v3108_v52  ;;  %3569 = vmatpush1.msra.mxu1 %v3316_v63 }
 0x79d   : > { %v3314_v30 = vmul.f32 %v3307_v4, %v3294_v36  ;;  %v3315_v37 = vmul.f32 %v3311_v3, %v3298_v38  ;;  %3513 = vmatprep.subr.mxu0 %v3107_v60  ;;  %v3637_v60 = vld [vmem:[%s6110_s3] sm:$0x1]  ;;  %v3985_v36 = vmov 1966171168  }
 0x79e   : > { %3514 = vmatpush2.msra.mxu0 %v3106_v57  ;;  %v3722_v38 = vunpack.c.l.s4 %v3985_v36 }
 0x79f   : > { %3516 = vmatmul.mubr.f32.vlgmr.msra.gmra.mxu0 %v3331_v46  ;;  %3570 = vmatprep.subr.mxu1 %v3315_v37 }
 0x7a0   : > { %3571 = vmatpush1.msra.mxu1 %v3314_v30  ;;  %3521 = vmatprep.mubr.f32.mxu0 %v3335_v48  ;;  %v3723_v57 = vunpack.c.0.s8 %v3722_v38 }
 0x7a1   : > { %3872 = vmatmul.mubr.msk.f32.vlgmr.msra.gmra.mxu1 %vm1185_vm9, %v3333_v45 }
 0x7a2   : > { %3610 = vmatprep.mubr.f32.mxu1 %v3975_v2 }
 0x7a3   : > { %3522 = vmatmul.mubr.f32.gmra.mxu0 %v3334_v49  ;;  %v3726_v49 = vsub.s32 %v3723_v57, %v4111_v9 }
 0x7a4   : > { %3527 = vmatprep.mubr.f32.mxu0 %v3338_v10 }
 0x7a5   : > { %3873 = vmatmul.mubr.msk.f32.gmra.mxu1 %vm1185_vm9, %v3336_v50 }
 0x7a6   : > { %3616 = vmatprep.mubr.f32.mxu1 %v3975_v2  ;;  %v3437_v1 = vpop.permute.xlu0 %3436 }
 0x7a7   : > { %3528 = vmatmul.mubr.f32.gmra.mxu0 %v3337_v23  ;;  %v6116_v23 = vlaneseq }
 0x7a8   : > { %3533 = vmatprep.mubr.f32.mxu0 %v3341_v28  ;;  %v3432_v61 = vpop.permute.xlu1 %3431 }
 0x7a9   : > { %3874 = vmatmul.mubr.msk.f32.gmra.mxu1 %vm1185_vm9, %v3339_v31  ;;  %vm3738_vm10 = vcmp.lt.s32.totalorder %v6116_v23, 256 }
 0x7aa   : > { %3622 = vmatprep.mubr.f32.mxu1 %v3975_v2  ;;  %v3422_v35 = vpop.permute.xlu0 %3421 }
 0x7ab   : > { %3534 = vmatmul.mubr.f32.gmra.mxu0 %v3340_v39 }
 0x7ac   : > { %v3427_v27 = vpop.permute.xlu1 %3426 }
 0x7ad   : > { %3875 = vmatmul.mubr.msk.f32.gmra.mxu1 %vm1185_vm9, %v3342_v33 }
 0x7ae   : > { %3711 = vmatprep.mubr.f32.mxu1 %v3975_v2 }
 0x80e   : > { %v3642_v30 = vpop.permute.xlu1 %3641 }
 0x85f   : > { %v3517_v43 = vpop.f32.mrf.mxu0 }
 0x860   : > { %v3518_v47 = vadd.f32 %v3517_v43, %v3422_v35 }
 0x861   : > { %v3519_v58 = vpop.f32.mrf.mxu0  ;;  %v3606_v6 = vpop.f32.mrf.mxu1 }
 0x862   : > { %v3520_v55 = vadd.f32 %v3519_v58, %v3422_v35  ;;  %v3607_v63 = vadd.f32 %v3606_v6, %v3518_v47 }
 0x863   : > { %v3523_v62 = vpop.f32.mrf.mxu0  ;;  %v3608_v53 = vpop.f32.mrf.mxu1 }
 0x864   : > { %v3524_v41 = vadd.f32 %v3523_v62, %v3427_v27  ;;  %v3609_v20 = vadd.f32 %v3608_v53, %v3520_v55  ;;  %v3629_v13 = vmax.f32 %v3607_v63, 0.0 }
 0x865   : > { %v3525_v21 = vpop.f32.mrf.mxu0  ;;  %v3612_v5 = vpop.f32.mrf.mxu1 }
 0x866   : > { %v3526_v24 = vadd.f32 %v3525_v21, %v3427_v27  ;;  %v3613_v54 = vadd.f32 %v3612_v5, %v3524_v41  ;;  %v3630_v51 = vmax.f32 %v3609_v20, 0.0 }
 0x867   : > { %v3529_v25 = vpop.f32.mrf.mxu0  ;;  %v3614_v22 = vpop.f32.mrf.mxu1 }
 0x868   : > { %v3530_v3 = vadd.f32 %v3529_v25, %v3432_v61  ;;  %v3615_v40 = vadd.f32 %v3614_v22, %v3526_v24  ;;  %v3631_v52 = vmax.f32 %v3613_v54, 0.0 }
 0x869   : > { %v3531_v2 = vpop.f32.mrf.mxu0  ;;  %v3618_v15 = vpop.f32.mrf.mxu1 }
 0x86a   : > { %v3532_v0 = vadd.f32 %v3531_v2, %v3432_v61  ;;  %v3619_v18 = vadd.f32 %v3618_v15, %v3530_v3  ;;  %v3632_v59 = vmax.f32 %v3615_v40, 0.0 }
 0x86b   : > { %v3535_v26 = vpop.f32.mrf.mxu0  ;;  %v3620_v19 = vpop.f32.mrf.mxu1 }
 0x86c   : > { %v3536_v4 = vadd.f32 %v3535_v26, %v3437_v1  ;;  %v3621_v56 = vadd.f32 %v3620_v19, %v3532_v0  ;;  %v3633_v14 = vmax.f32 %v3619_v18, 0.0 }
 0x86d   : > { %v3537_v7 = vpop.f32.mrf.mxu0  ;;  %v3624_v29 = vpop.f32.mrf.mxu1 }
 0x86e   : > { %v3538_v34 = vadd.f32 %v3537_v7, %v3437_v1  ;;  %v3625_v11 = vadd.f32 %v3624_v29, %v3536_v4  ;;  %v3634_v16 = vmax.f32 %v3621_v56, 0.0 }
 0x86f   : > { %v3626_v8 = vpop.f32.mrf.mxu1 }
 0x870   : > { %v3627_v12 = vadd.f32 %v3626_v8, %v3538_v34  ;;  %v3635_v44 = vmax.f32 %v3625_v11, 0.0 }
 0x872   : > { %v3636_v42 = vmax.f32 %v3627_v12, 0.0 }
 0x874   : > { %3671 = vmatprep.subr.mxu1 %v3636_v42 }
 0x875   : > { %3672 = vmatpush1.msra.mxu1 %v3635_v44 }
 0x876   : > { %3673 = vmatprep.subr.mxu1 %v3634_v16 }
 0x877   : > { %3674 = vmatpush1.msra.mxu1 %v3633_v14 }
 0x878   : > { %3675 = vmatprep.subr.mxu1 %v3632_v59 }
 0x879   : > { %3676 = vmatpush1.msra.mxu1 %v3631_v52 }
 0x87a   : > { %3677 = vmatprep.subr.mxu1 %v3630_v51 }
 0x87b   : > { %3678 = vmatpush1.msra.mxu1 %v3629_v13 }
 0x87c   : > { %3876 = vmatmul.mubr.msk.f32.vlgmr.msra.gmra.mxu1 %vm1185_vm9, %v3637_v60 }
 0x93c   : > { %v3713_v46 = vpop.f32.mrf.mxu1 }
 0x93d   : > { %v3714_v48 = vadd.f32 %v3713_v46, %v3642_v30 }
 0x93e   : > { %v3715_v37 = vpop.f32.mrf.mxu1 }
 0x93f   : > { %v3716_v45 = vadd.f32 %v3715_v37, %v3642_v30 }
 0x941   : > { %v3720_v10 = vcombine.low %v3714_v48, %v3716_v45 }
 0x943   : > { %v3727_v50 = vrot.slane %v3720_v10, %v3726_v49 }
 0x945   : > { %v3734_v28 = vrot.slane %v3727_v50, %v3726_v49 }
 0x947   : > { %3740 = vst.msk [vmem:[%s264_s20] sm:$0x3] %vm3738_vm10, %v3734_v28 }
 0x948 PF: > { %s17_s21 = sadd.s32 1, %s3965_s21  }
 0x949   : > { %p14_p1 = scmp.ge.s32.totalorder %s17_s21, 4  }
 0x94b   :  { %16 = sbr.rel (!%p14_p1) target bundleno = 1 (0x1), region = 90 }
 0x950   :  { %3760 = vsyncpa [#allocation4], 1 }
 0x951   :  { %3762 = vsyncpa [#allocation4 + $0x1], 1 }

</bundles_post_ra>
